<compile_context>
chip_gen: v7x
topology: tpu7x:2x2x1
jax: 0.10.0
libtpu: 0.0.40
codegen_flags: <defaults>
</compile_context>

<pallas_src>
import jax
import jax.numpy as jnp
from jax.experimental import pallas as pl
from jax.experimental.pallas import tpu as pltpu


# --------------------------- in-kernel helpers -------------------------------

def _concat_lanes(pieces):
    """Lane-dim concatenation of 64-wide pieces: 64+64 -> 128 pairs first, then a concat of
    128-aligned slabs (every lane concat is either rope-style or lane-tile aligned)."""
    assert len(pieces) % 2 == 0
    pairs = [jnp.concatenate(pieces[i:i + 2], axis=-1) for i in range(0, len(pieces), 2)]
    return pairs[0] if len(pairs) == 1 else jnp.concatenate(pairs, axis=-1)


def _pool2x2_store(y, H, W, yv_ref, o_ref):
    """y: (H*W, 64) f32 activations in row-major (h*W + w) order.  Fused 2x2/stride-2
    max-pool and lane-dense store of the pooled (H/2, (W/2)*64) slab into o_ref."""
    Hh, Wh = H // 2, W // 2
    # vertical pair-max: clean leading-dim split (sublane dim stays W, a multiple of 8)
    y4 = y.reshape(Hh, 2, W, 64)
    yv_ref[...] = jnp.maximum(y4[:, 0], y4[:, 1])                      # (Hh, W, 64)
    # horizontal pair-max via static column reads of the VMEM scratch, then a lane-dense
    # ((W/2)*64-wide, multiple of 128) store => unmasked vst.
    cols = [jnp.maximum(yv_ref[:, 2 * j, :], yv_ref[:, 2 * j + 1, :]) for j in range(Wh)]
    o_ref[...] = _concat_lanes(cols)                                   # (Hh, Wh*64)


# ------------------------------ Pallas kernels --------------------------------

def _make_conv1_kernel(H, W):
    """conv1: one K=25*Cin matmul on the precomputed im2col rows, + bias + ReLU + 2x2 pool."""
    assert H % 2 == 0 and W % 8 == 0 and (W // 2) % 2 == 0

    def kernel(p_ref, w_ref, b_ref, o_ref, yv_ref):
        y = jnp.dot(p_ref[...], w_ref[...], preferred_element_type=jnp.float32)
        y = jnp.maximum(y + b_ref[...], 0.0)                           # bias + ReLU
        _pool2x2_store(y, H, W, yv_ref, o_ref)

    return kernel


def _make_conv2_kernel(H, W, C, group, n_groups):
    """conv2: in-VMEM 'same' padding, 25 taps fused into n_groups K=group*C matmuls,
    bias + ReLU + residual add of the un-padded input, fused 2x2 pool, lane-dense store."""
    HW = H * W
    taps = [(kh, kw) for kh in range(5) for kw in range(5)]
    assert C == 64                                   # residual reshape assumes 64 channels
    assert H % 2 == 0 and W % 8 == 0 and (W // 2) % 2 == 0
    assert group % 2 == 0 and group * n_groups >= len(taps)

    def kernel(x_ref, w_ref, b_ref, o_ref, xp_ref, acc_ref, yv_ref):
        # 'same' padding entirely in VMEM: zero-fill the bf16 scratch, write the interior.
        xp_ref[...] = jnp.zeros_like(xp_ref)
        xp_ref[2:2 + H, 2:2 + W, :] = x_ref[...].astype(jnp.bfloat16)

        # 25 taps fused into n_groups matmuls of contraction depth K = group*C.
        for g in range(n_groups):
            gt = taps[g * group:(g + 1) * group]
            parts = [xp_ref[kh:kh + H, kw:kw + W, :] for kh, kw in gt]
            while len(parts) < group:          # ragged last group: its weight rows are zero
                parts.append(parts[-1])
            lhs = _concat_lanes(parts).reshape(HW, group * C)   # W % 8 == 0: clean collapse
            contrib = jnp.dot(lhs, w_ref[g], preferred_element_type=jnp.float32)
            if g == 0:
                acc_ref[...] = contrib          # VMEM accumulator bounds live ranges
            else:
                acc_ref[...] += contrib

        # PyTorch order: x = relu(conv2(x)); x += shortcut.  The shortcut is exactly the
        # un-padded kernel input.
        y = jnp.maximum(acc_ref[...] + b_ref[...], 0.0)
        y = y + x_ref[...].reshape(HW, C)
        _pool2x2_store(y, H, W, yv_ref, o_ref)

    return kernel


def _fc_head_kernel(x_ref, w1_ref, b1_ref, w2_ref, b2_ref, o_ref):
    """Fused fc1 (+bias, ReLU; Dropout(p=0.4) is identity at inference), fc2 (+bias),
    and Softmax(dim=1).  fc1 width is zero-padded to 128 so its result is lane-dense."""
    x = x_ref[...].astype(jnp.bfloat16)
    h = jnp.dot(x, w1_ref[...], preferred_element_type=jnp.float32) + b1_ref[...]
    h = jnp.maximum(h, 0.0)
    logits = jnp.dot(h.astype(jnp.bfloat16), w2_ref[...],
                     preferred_element_type=jnp.float32) + b2_ref[...]
    m = jnp.max(logits, axis=1, keepdims=True)
    e = jnp.exp(logits - m)
    denom = jnp.sum(e, axis=1, keepdims=True)
    o_ref[...] = e * pl.reciprocal(denom, approx=True)                 # EUP reciprocal


# --------------------------------- wrappers -----------------------------------

def _im2col5x5(x):
    """NHWC image -> per-pixel 5x5 patch rows (B, H*W, 25*C) bf16, columns ordered (kh, kw, c)
    to match conv1_w's rows.  Tiny (tens of KiB), so building it in XLA is the review-endorsed
    way to give conv1 a single full-depth matmul."""
    B, H, W, C = x.shape
    xp = jnp.pad(x, ((0, 0), (2, 2), (2, 2), (0, 0)))
    cols = [xp[:, kh:kh + H, kw:kw + W, :] for kh in range(5) for kw in range(5)]
    p = jnp.concatenate(cols, axis=-1)                                 # (B, H, W, 25*C)
    return p.reshape(B, H * W, 25 * C).astype(jnp.bfloat16)


def conv1_block(patches, w, b, H, W):
    """patches: (B, H*W, 25*Cin) bf16.  Returns lane-dense (B, H/2, (W/2)*64) f32 with
    conv+bias+ReLU and the full 2x2 max-pool applied."""
    B, HW, K = patches.shape
    assert HW == H * W
    Hh, Wh = H // 2, W // 2
    flops = 2 * B * HW * K * 64
    bytes_accessed = B * HW * K * 2 + K * 64 * 2 + 64 * 4 + B * Hh * Wh * 64 * 4
    return pl.pallas_call(
        _make_conv1_kernel(H, W),
        out_shape=jax.ShapeDtypeStruct((B, Hh, Wh * 64), jnp.float32),
        grid=(B,),
        in_specs=[
            pl.BlockSpec((None, HW, K), lambda bi: (bi, 0, 0)),
            pl.BlockSpec((K, 64), lambda bi: (0, 0)),
            pl.BlockSpec((1, 64), lambda bi: (0, 0)),
        ],
        out_specs=pl.BlockSpec((None, Hh, Wh * 64), lambda bi: (bi, 0, 0)),
        scratch_shapes=[pltpu.VMEM((Hh, W, 64), jnp.float32)],
        compiler_params=pltpu.CompilerParams(dimension_semantics=("parallel",)),
        cost_estimate=pl.CostEstimate(flops=flops, transcendentals=0,
                                      bytes_accessed=bytes_accessed),
    )(patches, w, b.reshape(1, 64))


def conv2_block(x, w, b):
    """x: (B, H, W, 64) f32.  conv5x5('same') + bias + ReLU + residual(x) + 2x2 max-pool,
    padding done in VMEM inside the kernel.  Returns lane-dense (B, H/2, (W/2)*64) f32."""
    B, H, W, C = x.shape
    n_groups, K, _ = w.shape
    group = K // C
    Hh, Wh = H // 2, W // 2
    flops = 2 * B * H * W * 25 * C * 64
    bytes_accessed = (B * H * W * C * 4 + n_groups * K * 64 * 2 + 64 * 4
                      + B * Hh * Wh * 64 * 4)
    return pl.pallas_call(
        _make_conv2_kernel(H, W, C, group, n_groups),
        out_shape=jax.ShapeDtypeStruct((B, Hh, Wh * 64), jnp.float32),
        grid=(B,),
        in_specs=[
            pl.BlockSpec((None, H, W, C), lambda bi: (bi, 0, 0, 0)),
            pl.BlockSpec((n_groups, K, 64), lambda bi: (0, 0, 0)),
            pl.BlockSpec((1, 64), lambda bi: (0, 0)),
        ],
        out_specs=pl.BlockSpec((None, Hh, Wh * 64), lambda bi: (bi, 0, 0)),
        scratch_shapes=[
            pltpu.VMEM((H + 4, W + 4, C), jnp.bfloat16),   # zero-padded image (in-VMEM 'same' pad)
            pltpu.VMEM((H * W, 64), jnp.float32),          # conv accumulator
            pltpu.VMEM((Hh, W, 64), jnp.float32),          # vertically-pooled rows
        ],
        compiler_params=pltpu.CompilerParams(dimension_semantics=("parallel",)),
        cost_estimate=pl.CostEstimate(flops=flops, transcendentals=0,
                                      bytes_accessed=bytes_accessed),
    )(x, w, b.reshape(1, 64))


def fc_head(x, w1, b1, w2, b2):
    """softmax(relu(x @ w1 + b1) @ w2 + b2, axis=1) in one Pallas kernel."""
    B, K1 = x.shape
    N1 = w1.shape[1]
    N2 = w2.shape[1]
    flops = 2 * B * (K1 * N1 + N1 * N2)
    bytes_accessed = (B * K1 * 4 + K1 * N1 * 2 + N1 * 4 + N1 * N2 * 2 + N2 * 4
                      + B * N2 * 4)
    return pl.pallas_call(
        _fc_head_kernel,
        out_shape=jax.ShapeDtypeStruct((B, N2), jnp.float32),
        grid=(1,),
        in_specs=[pl.BlockSpec((B, K1), lambda i: (0, 0)),
                  pl.BlockSpec((K1, N1), lambda i: (0, 0)),
                  pl.BlockSpec((1, N1), lambda i: (0, 0)),
                  pl.BlockSpec((N1, N2), lambda i: (0, 0)),
                  pl.BlockSpec((1, N2), lambda i: (0, 0))],
        out_specs=pl.BlockSpec((B, N2), lambda i: (0, 0)),
        cost_estimate=pl.CostEstimate(flops=flops, transcendentals=B * N2,
                                      bytes_accessed=bytes_accessed),
    )(x, w1, b1.reshape(1, N1), w2, b2.reshape(1, N2))


# -------------------------------- parameters ----------------------------------

def init_params(key, img_H, img_W, in_chans):
    ks = jax.random.split(key, 8)
    h4, w4 = img_H // 4, img_W // 4
    s = 0.05

    # conv1: rows ordered (kh, kw, c_in) to match the XLA im2col column order -> (75, 64).
    w1 = s * jax.random.normal(ks[0], (5, 5, in_chans, 64), jnp.float32)
    conv1_w = w1.reshape(25 * in_chans, 64).astype(jnp.bfloat16)

    # conv2: 25 taps grouped 4-at-a-time along the contraction dim (K = 256); the ragged
    # last group is zero-padded so the in-kernel patch repetition is inert.
    w2 = (s * jax.random.normal(ks[2], (5, 5, 64, 64), jnp.float32)).reshape(25, 64, 64)
    n_groups = 7
    w2g = jnp.zeros((n_groups, 4, 64, 64), jnp.float32)
    w2g = w2g.at[:6].set(w2[:24].reshape(6, 4, 64, 64))
    w2g = w2g.at[6, 0].set(w2[24])
    conv2_w = w2g.reshape(n_groups, 256, 64).astype(jnp.bfloat16)

    # fc1: rows generated in PyTorch's NCHW flatten order (c, h, w) and permuted ONCE to the
    # NHWC (h, w, c) order the conv kernels produce; columns zero-padded 100 -> 128 so the
    # fc1 result / fc2 lhs are lane-dense.  Matching fc2 rows are zero.
    fc1 = s * jax.random.normal(ks[4], (64, h4, w4, 100), jnp.float32)     # (C, H, W, out)
    fc1 = jnp.transpose(fc1, (1, 2, 0, 3)).reshape(h4 * w4 * 64, 100)      # (H, W, C) rows
    fc1_w = jnp.zeros((h4 * w4 * 64, 128), jnp.float32).at[:, :100].set(fc1)
    fc1_b = jnp.zeros((128,), jnp.float32).at[:100].set(
        s * jax.random.normal(ks[5], (100,), jnp.float32))
    fc2 = s * jax.random.normal(ks[6], (100, 10), jnp.float32)
    fc2_w = jnp.zeros((128, 10), jnp.float32).at[:100].set(fc2)

    return {
        "conv1_w": conv1_w,
        "conv1_b": s * jax.random.normal(ks[1], (64,), jnp.float32),
        "conv2_w": conv2_w,
        "conv2_b": s * jax.random.normal(ks[3], (64,), jnp.float32),
        "fc1_w": fc1_w.astype(jnp.bfloat16),
        "fc1_b": fc1_b,
        "fc2_w": fc2_w.astype(jnp.bfloat16),
        "fc2_b": s * jax.random.normal(ks[7], (10,), jnp.float32),
    }


# -------------------------------- forward pass ---------------------------------

def resnet_forward(x_nchw, params):
    B, _, H, W = x_nchw.shape
    x = jnp.transpose(x_nchw, (0, 2, 3, 1)).astype(jnp.float32)        # NCHW -> NHWC

    # conv1 + ReLU + maxpool1 (pool fully fused in-kernel, lane-dense output)
    patches = _im2col5x5(x)                                            # (B, H*W, 25*C) bf16
    y1 = conv1_block(patches, params["conv1_w"], params["conv1_b"], H, W)
    x1 = y1.reshape(B, H // 2, W // 2, 64)                             # free bitcast

    # conv2 + ReLU + residual (shortcut == conv2 input, re-read inside the kernel)
    # + maxpool2; 'same' padding is done in VMEM inside the kernel.
    y2 = conv2_block(x1, params["conv2_w"], params["conv2_b"])         # (B, H/4, (W/4)*64)

    # fc1 (+ReLU, Dropout=identity in eval) -> fc2 -> Softmax, one fused kernel.
    xf = y2.reshape(B, -1)                                             # NHWC flatten (fc1_w permuted at init)
    return fc_head(xf, params["fc1_w"], params["fc1_b"], params["fc2_w"], params["fc2_b"])


# ------------------------------------ main --------------------------------------

if __name__ == "__main__":
    IMG_H, IMG_W, IN_CHANS, BATCH = 16, 16, 3, 2

    key = jax.random.PRNGKey(0)
    k_x, k_p = jax.random.split(key)
    x = jax.random.normal(k_x, (BATCH, IN_CHANS, IMG_H, IMG_W), jnp.float32)
    params = init_params(k_p, IMG_H, IMG_W, IN_CHANS)

    out = jax.jit(resnet_forward)(x, params)
    out = jax.block_until_ready(out)

    assert out.shape == (BATCH, 10), out.shape
    # softmax rows sum to 1 (loose tolerance: bf16 matmuls + approx EUP reciprocal)
    assert bool(jnp.all(jnp.abs(jnp.sum(out, axis=1) - 1.0) < 2e-3))
    print("KERNEL_OK")
</pallas_src>

<mosaic_0001>
module attributes {stable_mosaic.version = 11 : i64} {
  func.func @kernel(%arg0: i32, %arg1: memref<1x256x75xbf16, #tpu.memory_space<vmem>>, %arg2: memref<75x64xbf16, #tpu.memory_space<vmem>>, %arg3: memref<1x64xf32, #tpu.memory_space<vmem>>, %arg4: memref<1x8x512xf32, #tpu.memory_space<vmem>>, %arg5: memref<8x16x64xf32, #tpu.memory_space<vmem>>) attributes {dimension_semantics = [#tpu.dimension_semantics<parallel>], iteration_bounds = array<i64: 2>, scalar_prefetch = 0 : i64, scratch_operands = 1 : i64, tpu.core_type = #tpu.core_type<tc>, window_params = [{transform_indices = @transform_0, window_bounds = array<i64: 1, 256, 75>}, {pipeline_mode = #tpu.pipeline_mode<synchronous>, transform_indices = @transform_1, window_bounds = array<i64: 75, 64>}, {pipeline_mode = #tpu.pipeline_mode<synchronous>, transform_indices = @transform_2, window_bounds = array<i64: 1, 64>}, {transform_indices = @transform_3, window_bounds = array<i64: 1, 8, 512>}]} {
    %c0 = arith.constant 0 : index
    %c0_0 = arith.constant 0 : index
    %c0_1 = arith.constant 0 : index
    %0 = vector.load %arg1[%c0, %c0_0, %c0_1] : memref<1x256x75xbf16, #tpu.memory_space<vmem>>, vector<1x256x75xbf16>
    %1 = vector.shape_cast %0 : vector<1x256x75xbf16> to vector<256x75xbf16>
    %c0_2 = arith.constant 0 : index
    %c0_3 = arith.constant 0 : index
    %2 = vector.load %arg2[%c0_2, %c0_3] : memref<75x64xbf16, #tpu.memory_space<vmem>>, vector<75x64xbf16>
    %cst = arith.constant dense<0.000000e+00> : vector<256x64xf32>
    %3 = tpu.matmul %1, %2, %cst {dimension_numbers = #tpu.dot_dimension_numbers<[1], [0], [0], [1], [0, 0, 1, 1], [], []>} : vector<256x75xbf16>, vector<75x64xbf16>, vector<256x64xf32> -> vector<256x64xf32>
    %c0_4 = arith.constant 0 : index
    %c0_5 = arith.constant 0 : index
    %4 = vector.load %arg3[%c0_4, %c0_5] : memref<1x64xf32, #tpu.memory_space<vmem>>, vector<1x64xf32>
    %5 = vector.broadcast %4 : vector<1x64xf32> to vector<256x64xf32>
    %6 = arith.addf %3, %5 : vector<256x64xf32>
    %cst_6 = arith.constant 0.000000e+00 : f32
    %7 = vector.broadcast %cst_6 : f32 to vector<256x64xf32>
    %8 = arith.maximumf %6, %7 : vector<256x64xf32>
    %9 = vector.shape_cast %8 : vector<256x64xf32> to vector<8x2x16x64xf32>
    %10 = vector.extract_strided_slice %9 {offsets = [0, 0, 0, 0], sizes = [8, 1, 16, 64], strides = [1, 1, 1, 1]} : vector<8x2x16x64xf32> to vector<8x1x16x64xf32>
    %11 = vector.shape_cast %10 : vector<8x1x16x64xf32> to vector<8x16x64xf32>
    %12 = vector.extract_strided_slice %9 {offsets = [0, 1, 0, 0], sizes = [8, 1, 16, 64], strides = [1, 1, 1, 1]} : vector<8x2x16x64xf32> to vector<8x1x16x64xf32>
    %13 = vector.shape_cast %12 : vector<8x1x16x64xf32> to vector<8x16x64xf32>
    %14 = arith.maximumf %11, %13 : vector<8x16x64xf32>
    %c0_7 = arith.constant 0 : index
    %c0_8 = arith.constant 0 : index
    %c0_9 = arith.constant 0 : index
    %15 = vector.load %arg5[%c0_7, %c0_8, %c0_9] : memref<8x16x64xf32, #tpu.memory_space<vmem>>, vector<8x16x64xf32>
    tpu.vector_store %arg5[%c0_7, %c0_8, %c0_9], %14 {strides = array<i32>} : memref<8x16x64xf32, #tpu.memory_space<vmem>>, vector<8x16x64xf32>,
    %c0_10 = arith.constant 0 : index
    %c0_11 = arith.constant 0 : index
    %c0_12 = arith.constant 0 : index
    %16 = vector.load %arg5[%c0_10, %c0_11, %c0_12] : memref<8x16x64xf32, #tpu.memory_space<vmem>>, vector<8x1x64xf32>
    %17 = vector.shape_cast %16 : vector<8x1x64xf32> to vector<8x64xf32>
    %c0_13 = arith.constant 0 : index
    %c1 = arith.constant 1 : index
    %c0_14 = arith.constant 0 : index
    %18 = vector.load %arg5[%c0_13, %c1, %c0_14] : memref<8x16x64xf32, #tpu.memory_space<vmem>>, vector<8x1x64xf32>
    %19 = vector.shape_cast %18 : vector<8x1x64xf32> to vector<8x64xf32>
    %20 = arith.maximumf %17, %19 : vector<8x64xf32>
    %c0_15 = arith.constant 0 : index
    %c2 = arith.constant 2 : index
    %c0_16 = arith.constant 0 : index
    %21 = vector.load %arg5[%c0_15, %c2, %c0_16] : memref<8x16x64xf32, #tpu.memory_space<vmem>>, vector<8x1x64xf32>
    %22 = vector.shape_cast %21 : vector<8x1x64xf32> to vector<8x64xf32>
    %c0_17 = arith.constant 0 : index
    %c3 = arith.constant 3 : index
    %c0_18 = arith.constant 0 : index
    %23 = vector.load %arg5[%c0_17, %c3, %c0_18] : memref<8x16x64xf32, #tpu.memory_space<vmem>>, vector<8x1x64xf32>
    %24 = vector.shape_cast %23 : vector<8x1x64xf32> to vector<8x64xf32>
    %25 = arith.maximumf %22, %24 : vector<8x64xf32>
    %c0_19 = arith.constant 0 : index
    %c4 = arith.constant 4 : index
    %c0_20 = arith.constant 0 : index
    %26 = vector.load %arg5[%c0_19, %c4, %c0_20] : memref<8x16x64xf32, #tpu.memory_space<vmem>>, vector<8x1x64xf32>
    %27 = vector.shape_cast %26 : vector<8x1x64xf32> to vector<8x64xf32>
    %c0_21 = arith.constant 0 : index
    %c5 = arith.constant 5 : index
    %c0_22 = arith.constant 0 : index
    %28 = vector.load %arg5[%c0_21, %c5, %c0_22] : memref<8x16x64xf32, #tpu.memory_space<vmem>>, vector<8x1x64xf32>
    %29 = vector.shape_cast %28 : vector<8x1x64xf32> to vector<8x64xf32>
    %30 = arith.maximumf %27, %29 : vector<8x64xf32>
    %c0_23 = arith.constant 0 : index
    %c6 = arith.constant 6 : index
    %c0_24 = arith.constant 0 : index
    %31 = vector.load %arg5[%c0_23, %c6, %c0_24] : memref<8x16x64xf32, #tpu.memory_space<vmem>>, vector<8x1x64xf32>
    %32 = vector.shape_cast %31 : vector<8x1x64xf32> to vector<8x64xf32>
    %c0_25 = arith.constant 0 : index
    %c7 = arith.constant 7 : index
    %c0_26 = arith.constant 0 : index
    %33 = vector.load %arg5[%c0_25, %c7, %c0_26] : memref<8x16x64xf32, #tpu.memory_space<vmem>>, vector<8x1x64xf32>
    %34 = vector.shape_cast %33 : vector<8x1x64xf32> to vector<8x64xf32>
    %35 = arith.maximumf %32, %34 : vector<8x64xf32>
    %c0_27 = arith.constant 0 : index
    %c8 = arith.constant 8 : index
    %c0_28 = arith.constant 0 : index
    %36 = vector.load %arg5[%c0_27, %c8, %c0_28] : memref<8x16x64xf32, #tpu.memory_space<vmem>>, vector<8x1x64xf32>
    %37 = vector.shape_cast %36 : vector<8x1x64xf32> to vector<8x64xf32>
    %c0_29 = arith.constant 0 : index
    %c9 = arith.constant 9 : index
    %c0_30 = arith.constant 0 : index
    %38 = vector.load %arg5[%c0_29, %c9, %c0_30] : memref<8x16x64xf32, #tpu.memory_space<vmem>>, vector<8x1x64xf32>
    %39 = vector.shape_cast %38 : vector<8x1x64xf32> to vector<8x64xf32>
    %40 = arith.maximumf %37, %39 : vector<8x64xf32>
    %c0_31 = arith.constant 0 : index
    %c10 = arith.constant 10 : index
    %c0_32 = arith.constant 0 : index
    %41 = vector.load %arg5[%c0_31, %c10, %c0_32] : memref<8x16x64xf32, #tpu.memory_space<vmem>>, vector<8x1x64xf32>
    %42 = vector.shape_cast %41 : vector<8x1x64xf32> to vector<8x64xf32>
    %c0_33 = arith.constant 0 : index
    %c11 = arith.constant 11 : index
    %c0_34 = arith.constant 0 : index
    %43 = vector.load %arg5[%c0_33, %c11, %c0_34] : memref<8x16x64xf32, #tpu.memory_space<vmem>>, vector<8x1x64xf32>
    %44 = vector.shape_cast %43 : vector<8x1x64xf32> to vector<8x64xf32>
    %45 = arith.maximumf %42, %44 : vector<8x64xf32>
    %c0_35 = arith.constant 0 : index
    %c12 = arith.constant 12 : index
    %c0_36 = arith.constant 0 : index
    %46 = vector.load %arg5[%c0_35, %c12, %c0_36] : memref<8x16x64xf32, #tpu.memory_space<vmem>>, vector<8x1x64xf32>
    %47 = vector.shape_cast %46 : vector<8x1x64xf32> to vector<8x64xf32>
    %c0_37 = arith.constant 0 : index
    %c13 = arith.constant 13 : index
    %c0_38 = arith.constant 0 : index
    %48 = vector.load %arg5[%c0_37, %c13, %c0_38] : memref<8x16x64xf32, #tpu.memory_space<vmem>>, vector<8x1x64xf32>
    %49 = vector.shape_cast %48 : vector<8x1x64xf32> to vector<8x64xf32>
    %50 = arith.maximumf %47, %49 : vector<8x64xf32>
    %c0_39 = arith.constant 0 : index
    %c14 = arith.constant 14 : index
    %c0_40 = arith.constant 0 : index
    %51 = vector.load %arg5[%c0_39, %c14, %c0_40] : memref<8x16x64xf32, #tpu.memory_space<vmem>>, vector<8x1x64xf32>
    %52 = vector.shape_cast %51 : vector<8x1x64xf32> to vector<8x64xf32>
    %c0_41 = arith.constant 0 : index
    %c15 = arith.constant 15 : index
    %c0_42 = arith.constant 0 : index
    %53 = vector.load %arg5[%c0_41, %c15, %c0_42] : memref<8x16x64xf32, #tpu.memory_space<vmem>>, vector<8x1x64xf32>
    %54 = vector.shape_cast %53 : vector<8x1x64xf32> to vector<8x64xf32>
    %55 = arith.maximumf %52, %54 : vector<8x64xf32>
    %56 = tpu.concatenate %20, %25 in 1 : vector<8x64xf32>, vector<8x64xf32> -> vector<8x128xf32>
    %57 = tpu.concatenate %30, %35 in 1 : vector<8x64xf32>, vector<8x64xf32> -> vector<8x128xf32>
    %58 = tpu.concatenate %40, %45 in 1 : vector<8x64xf32>, vector<8x64xf32> -> vector<8x128xf32>
    %59 = tpu.concatenate %50, %55 in 1 : vector<8x64xf32>, vector<8x64xf32> -> vector<8x128xf32>
    %60 = tpu.concatenate %56, %57, %58, %59 in 1 : vector<8x128xf32>, vector<8x128xf32>, vector<8x128xf32>, vector<8x128xf32> -> vector<8x512xf32>
    %c0_43 = arith.constant 0 : index
    %c0_44 = arith.constant 0 : index
    %c0_45 = arith.constant 0 : index
    %61 = vector.load %arg4[%c0_43, %c0_44, %c0_45] : memref<1x8x512xf32, #tpu.memory_space<vmem>>, vector<1x8x512xf32>
    %62 = vector.shape_cast %61 : vector<1x8x512xf32> to vector<8x512xf32>
    %63 = vector.shape_cast %60 : vector<8x512xf32> to vector<1x8x512xf32>
    tpu.vector_store %arg4[%c0_43, %c0_44, %c0_45], %63 {strides = array<i32>} : memref<1x8x512xf32, #tpu.memory_space<vmem>>, vector<1x8x512xf32>,
    return
  }
  func.func @transform_0(%arg0: i32) -> (i32, i32, i32) {
    %c0_i32 = arith.constant 0 : i32
    %c0_i32_0 = arith.constant 0 : i32
    %c0_i32_1 = arith.constant 0 : i32
    return %arg0, %c0_i32, %c0_i32_0 : i32, i32, i32
  }
  func.func @transform_1(%arg0: i32) -> (i32, i32) {
    %c0_i32 = arith.constant 0 : i32
    %c0_i32_0 = arith.constant 0 : i32
    %c0_i32_1 = arith.constant 0 : i32
    return %c0_i32, %c0_i32_0 : i32, i32
  }
  func.func @transform_2(%arg0: i32) -> (i32, i32) {
    %c0_i32 = arith.constant 0 : i32
    %c0_i32_0 = arith.constant 0 : i32
    %c0_i32_1 = arith.constant 0 : i32
    return %c0_i32, %c0_i32_0 : i32, i32
  }
  func.func @transform_3(%arg0: i32) -> (i32, i32, i32) {
    %c0_i32 = arith.constant 0 : i32
    %c0_i32_0 = arith.constant 0 : i32
    %c0_i32_1 = arith.constant 0 : i32
    return %arg0, %c0_i32, %c0_i32_0 : i32, i32, i32
  }
}

module attributes {stable_mosaic.version = 11 : i64} {
  func.func @kernel(%arg0: i32, %arg1: memref<1x8x8x64xf32, #tpu.memory_space<vmem>>, %arg2: memref<7x256x64xbf16, #tpu.memory_space<vmem>>, %arg3: memref<1x64xf32, #tpu.memory_space<vmem>>, %arg4: memref<1x4x256xf32, #tpu.memory_space<vmem>>, %arg5: memref<12x12x64xbf16, #tpu.memory_space<vmem>>, %arg6: memref<64x64xf32, #tpu.memory_space<vmem>>, %arg7: memref<4x8x64xf32, #tpu.memory_space<vmem>>) attributes {dimension_semantics = [#tpu.dimension_semantics<parallel>], iteration_bounds = array<i64: 2>, scalar_prefetch = 0 : i64, scratch_operands = 3 : i64, tpu.core_type = #tpu.core_type<tc>, window_params = [{transform_indices = @transform_0, window_bounds = array<i64: 1, 8, 8, 64>}, {pipeline_mode = #tpu.pipeline_mode<synchronous>, transform_indices = @transform_1, window_bounds = array<i64: 7, 256, 64>}, {pipeline_mode = #tpu.pipeline_mode<synchronous>, transform_indices = @transform_2, window_bounds = array<i64: 1, 64>}, {transform_indices = @transform_3, window_bounds = array<i64: 1, 4, 256>}]} {
    %cst = arith.constant 0.000000e+00 : bf16
    %0 = vector.broadcast %cst : bf16 to vector<12x12x64xbf16>
    %c0 = arith.constant 0 : index
    %c0_0 = arith.constant 0 : index
    %c0_1 = arith.constant 0 : index
    %1 = vector.load %arg5[%c0, %c0_0, %c0_1] : memref<12x12x64xbf16, #tpu.memory_space<vmem>>, vector<12x12x64xbf16>
    tpu.vector_store %arg5[%c0, %c0_0, %c0_1], %0 {strides = array<i32>} : memref<12x12x64xbf16, #tpu.memory_space<vmem>>, vector<12x12x64xbf16>,
    %c0_2 = arith.constant 0 : index
    %c0_3 = arith.constant 0 : index
    %c0_4 = arith.constant 0 : index
    %c0_5 = arith.constant 0 : index
    %2 = vector.load %arg1[%c0_2, %c0_3, %c0_4, %c0_5] : memref<1x8x8x64xf32, #tpu.memory_space<vmem>>, vector<1x8x8x64xf32>
    %3 = vector.shape_cast %2 : vector<1x8x8x64xf32> to vector<8x8x64xf32>
    %4 = arith.truncf %3 : vector<8x8x64xf32> to vector<8x8x64xbf16>
    %c2 = arith.constant 2 : index
    %c2_6 = arith.constant 2 : index
    %c0_7 = arith.constant 0 : index
    %5 = vector.load %arg5[%c2, %c2_6, %c0_7] : memref<12x12x64xbf16, #tpu.memory_space<vmem>>, vector<8x8x64xbf16>
    tpu.vector_store %arg5[%c2, %c2_6, %c0_7], %4 {strides = array<i32>} : memref<12x12x64xbf16, #tpu.memory_space<vmem>>, vector<8x8x64xbf16>,
    %c0_8 = arith.constant 0 : index
    %c0_9 = arith.constant 0 : index
    %c0_10 = arith.constant 0 : index
    %6 = vector.load %arg5[%c0_8, %c0_9, %c0_10] : memref<12x12x64xbf16, #tpu.memory_space<vmem>>, vector<8x8x64xbf16>
    %c0_11 = arith.constant 0 : index
    %c1 = arith.constant 1 : index
    %c0_12 = arith.constant 0 : index
    %7 = vector.load %arg5[%c0_11, %c1, %c0_12] : memref<12x12x64xbf16, #tpu.memory_space<vmem>>, vector<8x8x64xbf16>
    %c0_13 = arith.constant 0 : index
    %c2_14 = arith.constant 2 : index
    %c0_15 = arith.constant 0 : index
    %8 = vector.load %arg5[%c0_13, %c2_14, %c0_15] : memref<12x12x64xbf16, #tpu.memory_space<vmem>>, vector<8x8x64xbf16>
    %c0_16 = arith.constant 0 : index
    %c3 = arith.constant 3 : index
    %c0_17 = arith.constant 0 : index
    %9 = vector.load %arg5[%c0_16, %c3, %c0_17] : memref<12x12x64xbf16, #tpu.memory_space<vmem>>, vector<8x8x64xbf16>
    %10 = tpu.concatenate %6, %7 in 2 : vector<8x8x64xbf16>, vector<8x8x64xbf16> -> vector<8x8x128xbf16>
    %11 = tpu.concatenate %8, %9 in 2 : vector<8x8x64xbf16>, vector<8x8x64xbf16> -> vector<8x8x128xbf16>
    %12 = tpu.concatenate %10, %11 in 2 : vector<8x8x128xbf16>, vector<8x8x128xbf16> -> vector<8x8x256xbf16>
    %13 = vector.shape_cast %12 : vector<8x8x256xbf16> to vector<64x256xbf16>
    %c0_18 = arith.constant 0 : index
    %c0_19 = arith.constant 0 : index
    %c0_20 = arith.constant 0 : index
    %14 = vector.load %arg2[%c0_18, %c0_19, %c0_20] : memref<7x256x64xbf16, #tpu.memory_space<vmem>>, vector<1x256x64xbf16>
    %15 = vector.shape_cast %14 : vector<1x256x64xbf16> to vector<256x64xbf16>
    %cst_21 = arith.constant dense<0.000000e+00> : vector<64x64xf32>
    %16 = tpu.matmul %13, %15, %cst_21 {dimension_numbers = #tpu.dot_dimension_numbers<[1], [0], [0], [1], [0, 0, 1, 1], [], []>} : vector<64x256xbf16>, vector<256x64xbf16>, vector<64x64xf32> -> vector<64x64xf32>
    %c0_22 = arith.constant 0 : index
    %c0_23 = arith.constant 0 : index
    %17 = vector.load %arg6[%c0_22, %c0_23] : memref<64x64xf32, #tpu.memory_space<vmem>>, vector<64x64xf32>
    tpu.vector_store %arg6[%c0_22, %c0_23], %16 {strides = array<i32>} : memref<64x64xf32, #tpu.memory_space<vmem>>, vector<64x64xf32>,
    %c0_24 = arith.constant 0 : index
    %c4 = arith.constant 4 : index
    %c0_25 = arith.constant 0 : index
    %18 = vector.load %arg5[%c0_24, %c4, %c0_25] : memref<12x12x64xbf16, #tpu.memory_space<vmem>>, vector<8x8x64xbf16>
    %c1_26 = arith.constant 1 : index
    %c0_27 = arith.constant 0 : index
    %c0_28 = arith.constant 0 : index
    %19 = vector.load %arg5[%c1_26, %c0_27, %c0_28] : memref<12x12x64xbf16, #tpu.memory_space<vmem>>, vector<8x8x64xbf16>
    %c1_29 = arith.constant 1 : index
    %c1_30 = arith.constant 1 : index
    %c0_31 = arith.constant 0 : index
    %20 = vector.load %arg5[%c1_29, %c1_30, %c0_31] : memref<12x12x64xbf16, #tpu.memory_space<vmem>>, vector<8x8x64xbf16>
    %c1_32 = arith.constant 1 : index
    %c2_33 = arith.constant 2 : index
    %c0_34 = arith.constant 0 : index
    %21 = vector.load %arg5[%c1_32, %c2_33, %c0_34] : memref<12x12x64xbf16, #tpu.memory_space<vmem>>, vector<8x8x64xbf16>
    %22 = tpu.concatenate %18, %19 in 2 : vector<8x8x64xbf16>, vector<8x8x64xbf16> -> vector<8x8x128xbf16>
    %23 = tpu.concatenate %20, %21 in 2 : vector<8x8x64xbf16>, vector<8x8x64xbf16> -> vector<8x8x128xbf16>
    %24 = tpu.concatenate %22, %23 in 2 : vector<8x8x128xbf16>, vector<8x8x128xbf16> -> vector<8x8x256xbf16>
    %25 = vector.shape_cast %24 : vector<8x8x256xbf16> to vector<64x256xbf16>
    %c1_35 = arith.constant 1 : index
    %c0_36 = arith.constant 0 : index
    %c0_37 = arith.constant 0 : index
    %26 = vector.load %arg2[%c1_35, %c0_36, %c0_37] : memref<7x256x64xbf16, #tpu.memory_space<vmem>>, vector<1x256x64xbf16>
    %27 = vector.shape_cast %26 : vector<1x256x64xbf16> to vector<256x64xbf16>
    %cst_38 = arith.constant dense<0.000000e+00> : vector<64x64xf32>
    %28 = tpu.matmul %25, %27, %cst_38 {dimension_numbers = #tpu.dot_dimension_numbers<[1], [0], [0], [1], [0, 0, 1, 1], [], []>} : vector<64x256xbf16>, vector<256x64xbf16>, vector<64x64xf32> -> vector<64x64xf32>
    %c0_39 = arith.constant 0 : index
    %c0_40 = arith.constant 0 : index
    %29 = vector.load %arg6[%c0_39, %c0_40] : memref<64x64xf32, #tpu.memory_space<vmem>>, vector<64x64xf32>
    %30 = arith.addf %29, %28 : vector<64x64xf32>
    %c0_41 = arith.constant 0 : index
    %c0_42 = arith.constant 0 : index
    %31 = vector.load %arg6[%c0_41, %c0_42] : memref<64x64xf32, #tpu.memory_space<vmem>>, vector<64x64xf32>
    tpu.vector_store %arg6[%c0_41, %c0_42], %30 {strides = array<i32>} : memref<64x64xf32, #tpu.memory_space<vmem>>, vector<64x64xf32>,
    %c1_43 = arith.constant 1 : index
    %c3_44 = arith.constant 3 : index
    %c0_45 = arith.constant 0 : index
    %32 = vector.load %arg5[%c1_43, %c3_44, %c0_45] : memref<12x12x64xbf16, #tpu.memory_space<vmem>>, vector<8x8x64xbf16>
    %c1_46 = arith.constant 1 : index
    %c4_47 = arith.constant 4 : index
    %c0_48 = arith.constant 0 : index
    %33 = vector.load %arg5[%c1_46, %c4_47, %c0_48] : memref<12x12x64xbf16, #tpu.memory_space<vmem>>, vector<8x8x64xbf16>
    %c2_49 = arith.constant 2 : index
    %c0_50 = arith.constant 0 : index
    %c0_51 = arith.constant 0 : index
    %34 = vector.load %arg5[%c2_49, %c0_50, %c0_51] : memref<12x12x64xbf16, #tpu.memory_space<vmem>>, vector<8x8x64xbf16>
    %c2_52 = arith.constant 2 : index
    %c1_53 = arith.constant 1 : index
    %c0_54 = arith.constant 0 : index
    %35 = vector.load %arg5[%c2_52, %c1_53, %c0_54] : memref<12x12x64xbf16, #tpu.memory_space<vmem>>, vector<8x8x64xbf16>
    %36 = tpu.concatenate %32, %33 in 2 : vector<8x8x64xbf16>, vector<8x8x64xbf16> -> vector<8x8x128xbf16>
    %37 = tpu.concatenate %34, %35 in 2 : vector<8x8x64xbf16>, vector<8x8x64xbf16> -> vector<8x8x128xbf16>
    %38 = tpu.concatenate %36, %37 in 2 : vector<8x8x128xbf16>, vector<8x8x128xbf16> -> vector<8x8x256xbf16>
    %39 = vector.shape_cast %38 : vector<8x8x256xbf16> to vector<64x256xbf16>
    %c2_55 = arith.constant 2 : index
    %c0_56 = arith.constant 0 : index
    %c0_57 = arith.constant 0 : index
    %40 = vector.load %arg2[%c2_55, %c0_56, %c0_57] : memref<7x256x64xbf16, #tpu.memory_space<vmem>>, vector<1x256x64xbf16>
    %41 = vector.shape_cast %40 : vector<1x256x64xbf16> to vector<256x64xbf16>
    %cst_58 = arith.constant dense<0.000000e+00> : vector<64x64xf32>
    %42 = tpu.matmul %39, %41, %cst_58 {dimension_numbers = #tpu.dot_dimension_numbers<[1], [0], [0], [1], [0, 0, 1, 1], [], []>} : vector<64x256xbf16>, vector<256x64xbf16>, vector<64x64xf32> -> vector<64x64xf32>
    %c0_59 = arith.constant 0 : index
    %c0_60 = arith.constant 0 : index
    %43 = vector.load %arg6[%c0_59, %c0_60] : memref<64x64xf32, #tpu.memory_space<vmem>>, vector<64x64xf32>
    %44 = arith.addf %43, %42 : vector<64x64xf32>
    %c0_61 = arith.constant 0 : index
    %c0_62 = arith.constant 0 : index
    %45 = vector.load %arg6[%c0_61, %c0_62] : memref<64x64xf32, #tpu.memory_space<vmem>>, vector<64x64xf32>
    tpu.vector_store %arg6[%c0_61, %c0_62], %44 {strides = array<i32>} : memref<64x64xf32, #tpu.memory_space<vmem>>, vector<64x64xf32>,
    %c2_63 = arith.constant 2 : index
    %c2_64 = arith.constant 2 : index
    %c0_65 = arith.constant 0 : index
    %46 = vector.load %arg5[%c2_63, %c2_64, %c0_65] : memref<12x12x64xbf16, #tpu.memory_space<vmem>>, vector<8x8x64xbf16>
    %c2_66 = arith.constant 2 : index
    %c3_67 = arith.constant 3 : index
    %c0_68 = arith.constant 0 : index
    %47 = vector.load %arg5[%c2_66, %c3_67, %c0_68] : memref<12x12x64xbf16, #tpu.memory_space<vmem>>, vector<8x8x64xbf16>
    %c2_69 = arith.constant 2 : index
    %c4_70 = arith.constant 4 : index
    %c0_71 = arith.constant 0 : index
    %48 = vector.load %arg5[%c2_69, %c4_70, %c0_71] : memref<12x12x64xbf16, #tpu.memory_space<vmem>>, vector<8x8x64xbf16>
    %c3_72 = arith.constant 3 : index
    %c0_73 = arith.constant 0 : index
    %c0_74 = arith.constant 0 : index
    %49 = vector.load %arg5[%c3_72, %c0_73, %c0_74] : memref<12x12x64xbf16, #tpu.memory_space<vmem>>, vector<8x8x64xbf16>
    %50 = tpu.concatenate %46, %47 in 2 : vector<8x8x64xbf16>, vector<8x8x64xbf16> -> vector<8x8x128xbf16>
    %51 = tpu.concatenate %48, %49 in 2 : vector<8x8x64xbf16>, vector<8x8x64xbf16> -> vector<8x8x128xbf16>
    %52 = tpu.concatenate %50, %51 in 2 : vector<8x8x128xbf16>, vector<8x8x128xbf16> -> vector<8x8x256xbf16>
    %53 = vector.shape_cast %52 : vector<8x8x256xbf16> to vector<64x256xbf16>
    %c3_75 = arith.constant 3 : index
    %c0_76 = arith.constant 0 : index
    %c0_77 = arith.constant 0 : index
    %54 = vector.load %arg2[%c3_75, %c0_76, %c0_77] : memref<7x256x64xbf16, #tpu.memory_space<vmem>>, vector<1x256x64xbf16>
    %55 = vector.shape_cast %54 : vector<1x256x64xbf16> to vector<256x64xbf16>
    %cst_78 = arith.constant dense<0.000000e+00> : vector<64x64xf32>
    %56 = tpu.matmul %53, %55, %cst_78 {dimension_numbers = #tpu.dot_dimension_numbers<[1], [0], [0], [1], [0, 0, 1, 1], [], []>} : vector<64x256xbf16>, vector<256x64xbf16>, vector<64x64xf32> -> vector<64x64xf32>
    %c0_79 = arith.constant 0 : index
    %c0_80 = arith.constant 0 : index
    %57 = vector.load %arg6[%c0_79, %c0_80] : memref<64x64xf32, #tpu.memory_space<vmem>>, vector<64x64xf32>
    %58 = arith.addf %57, %56 : vector<64x64xf32>
    %c0_81 = arith.constant 0 : index
    %c0_82 = arith.constant 0 : index
    %59 = vector.load %arg6[%c0_81, %c0_82] : memref<64x64xf32, #tpu.memory_space<vmem>>, vector<64x64xf32>
    tpu.vector_store %arg6[%c0_81, %c0_82], %58 {strides = array<i32>} : memref<64x64xf32, #tpu.memory_space<vmem>>, vector<64x64xf32>,
    %c3_83 = arith.constant 3 : index
    %c1_84 = arith.constant 1 : index
    %c0_85 = arith.constant 0 : index
    %60 = vector.load %arg5[%c3_83, %c1_84, %c0_85] : memref<12x12x64xbf16, #tpu.memory_space<vmem>>, vector<8x8x64xbf16>
    %c3_86 = arith.constant 3 : index
    %c2_87 = arith.constant 2 : index
    %c0_88 = arith.constant 0 : index
    %61 = vector.load %arg5[%c3_86, %c2_87, %c0_88] : memref<12x12x64xbf16, #tpu.memory_space<vmem>>, vector<8x8x64xbf16>
    %c3_89 = arith.constant 3 : index
    %c3_90 = arith.constant 3 : index
    %c0_91 = arith.constant 0 : index
    %62 = vector.load %arg5[%c3_89, %c3_90, %c0_91] : memref<12x12x64xbf16, #tpu.memory_space<vmem>>, vector<8x8x64xbf16>
    %c3_92 = arith.constant 3 : index
    %c4_93 = arith.constant 4 : index
    %c0_94 = arith.constant 0 : index
    %63 = vector.load %arg5[%c3_92, %c4_93, %c0_94] : memref<12x12x64xbf16, #tpu.memory_space<vmem>>, vector<8x8x64xbf16>
    %64 = tpu.concatenate %60, %61 in 2 : vector<8x8x64xbf16>, vector<8x8x64xbf16> -> vector<8x8x128xbf16>
    %65 = tpu.concatenate %62, %63 in 2 : vector<8x8x64xbf16>, vector<8x8x64xbf16> -> vector<8x8x128xbf16>
    %66 = tpu.concatenate %64, %65 in 2 : vector<8x8x128xbf16>, vector<8x8x128xbf16> -> vector<8x8x256xbf16>
    %67 = vector.shape_cast %66 : vector<8x8x256xbf16> to vector<64x256xbf16>
    %c4_95 = arith.constant 4 : index
    %c0_96 = arith.constant 0 : index
    %c0_97 = arith.constant 0 : index
    %68 = vector.load %arg2[%c4_95, %c0_96, %c0_97] : memref<7x256x64xbf16, #tpu.memory_space<vmem>>, vector<1x256x64xbf16>
    %69 = vector.shape_cast %68 : vector<1x256x64xbf16> to vector<256x64xbf16>
    %cst_98 = arith.constant dense<0.000000e+00> : vector<64x64xf32>
    %70 = tpu.matmul %67, %69, %cst_98 {dimension_numbers = #tpu.dot_dimension_numbers<[1], [0], [0], [1], [0, 0, 1, 1], [], []>} : vector<64x256xbf16>, vector<256x64xbf16>, vector<64x64xf32> -> vector<64x64xf32>
    %c0_99 = arith.constant 0 : index
    %c0_100 = arith.constant 0 : index
    %71 = vector.load %arg6[%c0_99, %c0_100] : memref<64x64xf32, #tpu.memory_space<vmem>>, vector<64x64xf32>
    %72 = arith.addf %71, %70 : vector<64x64xf32>
    %c0_101 = arith.constant 0 : index
    %c0_102 = arith.constant 0 : index
    %73 = vector.load %arg6[%c0_101, %c0_102] : memref<64x64xf32, #tpu.memory_space<vmem>>, vector<64x64xf32>
    tpu.vector_store %arg6[%c0_101, %c0_102], %72 {strides = array<i32>} : memref<64x64xf32, #tpu.memory_space<vmem>>, vector<64x64xf32>,
    %c4_103 = arith.constant 4 : index
    %c0_104 = arith.constant 0 : index
    %c0_105 = arith.constant 0 : index
    %74 = vector.load %arg5[%c4_103, %c0_104, %c0_105] : memref<12x12x64xbf16, #tpu.memory_space<vmem>>, vector<8x8x64xbf16>
    %c4_106 = arith.constant 4 : index
    %c1_107 = arith.constant 1 : index
    %c0_108 = arith.constant 0 : index
    %75 = vector.load %arg5[%c4_106, %c1_107, %c0_108] : memref<12x12x64xbf16, #tpu.memory_space<vmem>>, vector<8x8x64xbf16>
    %c4_109 = arith.constant 4 : index
    %c2_110 = arith.constant 2 : index
    %c0_111 = arith.constant 0 : index
    %76 = vector.load %arg5[%c4_109, %c2_110, %c0_111] : memref<12x12x64xbf16, #tpu.memory_space<vmem>>, vector<8x8x64xbf16>
    %c4_112 = arith.constant 4 : index
    %c3_113 = arith.constant 3 : index
    %c0_114 = arith.constant 0 : index
    %77 = vector.load %arg5[%c4_112, %c3_113, %c0_114] : memref<12x12x64xbf16, #tpu.memory_space<vmem>>, vector<8x8x64xbf16>
    %78 = tpu.concatenate %74, %75 in 2 : vector<8x8x64xbf16>, vector<8x8x64xbf16> -> vector<8x8x128xbf16>
    %79 = tpu.concatenate %76, %77 in 2 : vector<8x8x64xbf16>, vector<8x8x64xbf16> -> vector<8x8x128xbf16>
    %80 = tpu.concatenate %78, %79 in 2 : vector<8x8x128xbf16>, vector<8x8x128xbf16> -> vector<8x8x256xbf16>
    %81 = vector.shape_cast %80 : vector<8x8x256xbf16> to vector<64x256xbf16>
    %c5 = arith.constant 5 : index
    %c0_115 = arith.constant 0 : index
    %c0_116 = arith.constant 0 : index
    %82 = vector.load %arg2[%c5, %c0_115, %c0_116] : memref<7x256x64xbf16, #tpu.memory_space<vmem>>, vector<1x256x64xbf16>
    %83 = vector.shape_cast %82 : vector<1x256x64xbf16> to vector<256x64xbf16>
    %cst_117 = arith.constant dense<0.000000e+00> : vector<64x64xf32>
    %84 = tpu.matmul %81, %83, %cst_117 {dimension_numbers = #tpu.dot_dimension_numbers<[1], [0], [0], [1], [0, 0, 1, 1], [], []>} : vector<64x256xbf16>, vector<256x64xbf16>, vector<64x64xf32> -> vector<64x64xf32>
    %c0_118 = arith.constant 0 : index
    %c0_119 = arith.constant 0 : index
    %85 = vector.load %arg6[%c0_118, %c0_119] : memref<64x64xf32, #tpu.memory_space<vmem>>, vector<64x64xf32>
    %86 = arith.addf %85, %84 : vector<64x64xf32>
    %c0_120 = arith.constant 0 : index
    %c0_121 = arith.constant 0 : index
    %87 = vector.load %arg6[%c0_120, %c0_121] : memref<64x64xf32, #tpu.memory_space<vmem>>, vector<64x64xf32>
    tpu.vector_store %arg6[%c0_120, %c0_121], %86 {strides = array<i32>} : memref<64x64xf32, #tpu.memory_space<vmem>>, vector<64x64xf32>,
    %c4_122 = arith.constant 4 : index
    %c4_123 = arith.constant 4 : index
    %c0_124 = arith.constant 0 : index
    %88 = vector.load %arg5[%c4_122, %c4_123, %c0_124] : memref<12x12x64xbf16, #tpu.memory_space<vmem>>, vector<8x8x64xbf16>
    %89 = tpu.concatenate %88, %88 in 2 : vector<8x8x64xbf16>, vector<8x8x64xbf16> -> vector<8x8x128xbf16>
    %90 = tpu.concatenate %88, %88 in 2 : vector<8x8x64xbf16>, vector<8x8x64xbf16> -> vector<8x8x128xbf16>
    %91 = tpu.concatenate %89, %90 in 2 : vector<8x8x128xbf16>, vector<8x8x128xbf16> -> vector<8x8x256xbf16>
    %92 = vector.shape_cast %91 : vector<8x8x256xbf16> to vector<64x256xbf16>
    %c6 = arith.constant 6 : index
    %c0_125 = arith.constant 0 : index
    %c0_126 = arith.constant 0 : index
    %93 = vector.load %arg2[%c6, %c0_125, %c0_126] : memref<7x256x64xbf16, #tpu.memory_space<vmem>>, vector<1x256x64xbf16>
    %94 = vector.shape_cast %93 : vector<1x256x64xbf16> to vector<256x64xbf16>
    %cst_127 = arith.constant dense<0.000000e+00> : vector<64x64xf32>
    %95 = tpu.matmul %92, %94, %cst_127 {dimension_numbers = #tpu.dot_dimension_numbers<[1], [0], [0], [1], [0, 0, 1, 1], [], []>} : vector<64x256xbf16>, vector<256x64xbf16>, vector<64x64xf32> -> vector<64x64xf32>
    %c0_128 = arith.constant 0 : index
    %c0_129 = arith.constant 0 : index
    %96 = vector.load %arg6[%c0_128, %c0_129] : memref<64x64xf32, #tpu.memory_space<vmem>>, vector<64x64xf32>
    %97 = arith.addf %96, %95 : vector<64x64xf32>
    %c0_130 = arith.constant 0 : index
    %c0_131 = arith.constant 0 : index
    %98 = vector.load %arg6[%c0_130, %c0_131] : memref<64x64xf32, #tpu.memory_space<vmem>>, vector<64x64xf32>
    tpu.vector_store %arg6[%c0_130, %c0_131], %97 {strides = array<i32>} : memref<64x64xf32, #tpu.memory_space<vmem>>, vector<64x64xf32>,
    %c0_132 = arith.constant 0 : index
    %c0_133 = arith.constant 0 : index
    %99 = vector.load %arg6[%c0_132, %c0_133] : memref<64x64xf32, #tpu.memory_space<vmem>>, vector<64x64xf32>
    %c0_134 = arith.constant 0 : index
    %c0_135 = arith.constant 0 : index
    %100 = vector.load %arg3[%c0_134, %c0_135] : memref<1x64xf32, #tpu.memory_space<vmem>>, vector<1x64xf32>
    %101 = vector.broadcast %100 : vector<1x64xf32> to vector<64x64xf32>
    %102 = arith.addf %99, %101 : vector<64x64xf32>
    %cst_136 = arith.constant 0.000000e+00 : f32
    %103 = vector.broadcast %cst_136 : f32 to vector<64x64xf32>
    %104 = arith.maximumf %102, %103 : vector<64x64xf32>
    %c0_137 = arith.constant 0 : index
    %c0_138 = arith.constant 0 : index
    %c0_139 = arith.constant 0 : index
    %c0_140 = arith.constant 0 : index
    %105 = vector.load %arg1[%c0_137, %c0_138, %c0_139, %c0_140] : memref<1x8x8x64xf32, #tpu.memory_space<vmem>>, vector<1x8x8x64xf32>
    %106 = vector.shape_cast %105 : vector<1x8x8x64xf32> to vector<8x8x64xf32>
    %107 = vector.shape_cast %106 : vector<8x8x64xf32> to vector<64x64xf32>
    %108 = arith.addf %104, %107 : vector<64x64xf32>
    %109 = vector.shape_cast %108 : vector<64x64xf32> to vector<4x2x8x64xf32>
    %110 = vector.extract_strided_slice %109 {offsets = [0, 0, 0, 0], sizes = [4, 1, 8, 64], strides = [1, 1, 1, 1]} : vector<4x2x8x64xf32> to vector<4x1x8x64xf32>
    %111 = vector.shape_cast %110 : vector<4x1x8x64xf32> to vector<4x8x64xf32>
    %112 = vector.extract_strided_slice %109 {offsets = [0, 1, 0, 0], sizes = [4, 1, 8, 64], strides = [1, 1, 1, 1]} : vector<4x2x8x64xf32> to vector<4x1x8x64xf32>
    %113 = vector.shape_cast %112 : vector<4x1x8x64xf32> to vector<4x8x64xf32>
    %114 = arith.maximumf %111, %113 : vector<4x8x64xf32>
    %c0_141 = arith.constant 0 : index
    %c0_142 = arith.constant 0 : index
    %c0_143 = arith.constant 0 : index
    %115 = vector.load %arg7[%c0_141, %c0_142, %c0_143] : memref<4x8x64xf32, #tpu.memory_space<vmem>>, vector<4x8x64xf32>
    tpu.vector_store %arg7[%c0_141, %c0_142, %c0_143], %114 {strides = array<i32>} : memref<4x8x64xf32, #tpu.memory_space<vmem>>, vector<4x8x64xf32>,
    %c0_144 = arith.constant 0 : index
    %c0_145 = arith.constant 0 : index
    %c0_146 = arith.constant 0 : index
    %116 = vector.load %arg7[%c0_144, %c0_145, %c0_146] : memref<4x8x64xf32, #tpu.memory_space<vmem>>, vector<4x1x64xf32>
    %117 = vector.shape_cast %116 : vector<4x1x64xf32> to vector<4x64xf32>
    %c0_147 = arith.constant 0 : index
    %c1_148 = arith.constant 1 : index
    %c0_149 = arith.constant 0 : index
    %118 = vector.load %arg7[%c0_147, %c1_148, %c0_149] : memref<4x8x64xf32, #tpu.memory_space<vmem>>, vector<4x1x64xf32>
    %119 = vector.shape_cast %118 : vector<4x1x64xf32> to vector<4x64xf32>
    %120 = arith.maximumf %117, %119 : vector<4x64xf32>
    %c0_150 = arith.constant 0 : index
    %c2_151 = arith.constant 2 : index
    %c0_152 = arith.constant 0 : index
    %121 = vector.load %arg7[%c0_150, %c2_151, %c0_152] : memref<4x8x64xf32, #tpu.memory_space<vmem>>, vector<4x1x64xf32>
    %122 = vector.shape_cast %121 : vector<4x1x64xf32> to vector<4x64xf32>
    %c0_153 = arith.constant 0 : index
    %c3_154 = arith.constant 3 : index
    %c0_155 = arith.constant 0 : index
    %123 = vector.load %arg7[%c0_153, %c3_154, %c0_155] : memref<4x8x64xf32, #tpu.memory_space<vmem>>, vector<4x1x64xf32>
    %124 = vector.shape_cast %123 : vector<4x1x64xf32> to vector<4x64xf32>
    %125 = arith.maximumf %122, %124 : vector<4x64xf32>
    %c0_156 = arith.constant 0 : index
    %c4_157 = arith.constant 4 : index
    %c0_158 = arith.constant 0 : index
    %126 = vector.load %arg7[%c0_156, %c4_157, %c0_158] : memref<4x8x64xf32, #tpu.memory_space<vmem>>, vector<4x1x64xf32>
    %127 = vector.shape_cast %126 : vector<4x1x64xf32> to vector<4x64xf32>
    %c0_159 = arith.constant 0 : index
    %c5_160 = arith.constant 5 : index
    %c0_161 = arith.constant 0 : index
    %128 = vector.load %arg7[%c0_159, %c5_160, %c0_161] : memref<4x8x64xf32, #tpu.memory_space<vmem>>, vector<4x1x64xf32>
    %129 = vector.shape_cast %128 : vector<4x1x64xf32> to vector<4x64xf32>
    %130 = arith.maximumf %127, %129 : vector<4x64xf32>
    %c0_162 = arith.constant 0 : index
    %c6_163 = arith.constant 6 : index
    %c0_164 = arith.constant 0 : index
    %131 = vector.load %arg7[%c0_162, %c6_163, %c0_164] : memref<4x8x64xf32, #tpu.memory_space<vmem>>, vector<4x1x64xf32>
    %132 = vector.shape_cast %131 : vector<4x1x64xf32> to vector<4x64xf32>
    %c0_165 = arith.constant 0 : index
    %c7 = arith.constant 7 : index
    %c0_166 = arith.constant 0 : index
    %133 = vector.load %arg7[%c0_165, %c7, %c0_166] : memref<4x8x64xf32, #tpu.memory_space<vmem>>, vector<4x1x64xf32>
    %134 = vector.shape_cast %133 : vector<4x1x64xf32> to vector<4x64xf32>
    %135 = arith.maximumf %132, %134 : vector<4x64xf32>
    %136 = tpu.concatenate %120, %125 in 1 : vector<4x64xf32>, vector<4x64xf32> -> vector<4x128xf32>
    %137 = tpu.concatenate %130, %135 in 1 : vector<4x64xf32>, vector<4x64xf32> -> vector<4x128xf32>
    %138 = tpu.concatenate %136, %137 in 1 : vector<4x128xf32>, vector<4x128xf32> -> vector<4x256xf32>
    %c0_167 = arith.constant 0 : index
    %c0_168 = arith.constant 0 : index
    %c0_169 = arith.constant 0 : index
    %139 = vector.load %arg4[%c0_167, %c0_168, %c0_169] : memref<1x4x256xf32, #tpu.memory_space<vmem>>, vector<1x4x256xf32>
    %140 = vector.shape_cast %139 : vector<1x4x256xf32> to vector<4x256xf32>
    %141 = vector.shape_cast %138 : vector<4x256xf32> to vector<1x4x256xf32>
    tpu.vector_store %arg4[%c0_167, %c0_168, %c0_169], %141 {strides = array<i32>} : memref<1x4x256xf32, #tpu.memory_space<vmem>>, vector<1x4x256xf32>,
    return
  }
  func.func @transform_0(%arg0: i32) -> (i32, i32, i32, i32) {
    %c0_i32 = arith.constant 0 : i32
    %c0_i32_0 = arith.constant 0 : i32
    %c0_i32_1 = arith.constant 0 : i32
    %c0_i32_2 = arith.constant 0 : i32
    return %arg0, %c0_i32, %c0_i32_0, %c0_i32_1 : i32, i32, i32, i32
  }
  func.func @transform_1(%arg0: i32) -> (i32, i32, i32) {
    %c0_i32 = arith.constant 0 : i32
    %c0_i32_0 = arith.constant 0 : i32
    %c0_i32_1 = arith.constant 0 : i32
    %c0_i32_2 = arith.constant 0 : i32
    return %c0_i32, %c0_i32_0, %c0_i32_1 : i32, i32, i32
  }
  func.func @transform_2(%arg0: i32) -> (i32, i32) {
    %c0_i32 = arith.constant 0 : i32
    %c0_i32_0 = arith.constant 0 : i32
    %c0_i32_1 = arith.constant 0 : i32
    return %c0_i32, %c0_i32_0 : i32, i32
  }
  func.func @transform_3(%arg0: i32) -> (i32, i32, i32) {
    %c0_i32 = arith.constant 0 : i32
    %c0_i32_0 = arith.constant 0 : i32
    %c0_i32_1 = arith.constant 0 : i32
    return %arg0, %c0_i32, %c0_i32_0 : i32, i32, i32
  }
}

module attributes {stable_mosaic.version = 11 : i64} {
  func.func @_fc_head_kernel(%arg0: i32, %arg1: memref<2x1024xf32, #tpu.memory_space<vmem>>, %arg2: memref<1024x128xbf16, #tpu.memory_space<vmem>>, %arg3: memref<1x128xf32, #tpu.memory_space<vmem>>, %arg4: memref<128x10xbf16, #tpu.memory_space<vmem>>, %arg5: memref<1x10xf32, #tpu.memory_space<vmem>>, %arg6: memref<2x10xf32, #tpu.memory_space<vmem>>) attributes {dimension_semantics = [#tpu.dimension_semantics<arbitrary>], iteration_bounds = array<i64: 1>, scalar_prefetch = 0 : i64, scratch_operands = 0 : i64, tpu.core_type = #tpu.core_type<tc>, window_params = [{pipeline_mode = #tpu.pipeline_mode<synchronous>, transform_indices = @transform_0, window_bounds = array<i64: 2, 1024>}, {pipeline_mode = #tpu.pipeline_mode<synchronous>, transform_indices = @transform_1, window_bounds = array<i64: 1024, 128>}, {pipeline_mode = #tpu.pipeline_mode<synchronous>, transform_indices = @transform_2, window_bounds = array<i64: 1, 128>}, {pipeline_mode = #tpu.pipeline_mode<synchronous>, transform_indices = @transform_3, window_bounds = array<i64: 128, 10>}, {pipeline_mode = #tpu.pipeline_mode<synchronous>, transform_indices = @transform_4, window_bounds = array<i64: 1, 10>}, {pipeline_mode = #tpu.pipeline_mode<synchronous>, transform_indices = @transform_5, window_bounds = array<i64: 2, 10>}]} {
    %c0 = arith.constant 0 : index
    %c0_0 = arith.constant 0 : index
    %0 = vector.load %arg1[%c0, %c0_0] : memref<2x1024xf32, #tpu.memory_space<vmem>>, vector<2x1024xf32>
    %1 = arith.truncf %0 : vector<2x1024xf32> to vector<2x1024xbf16>
    %c0_1 = arith.constant 0 : index
    %c0_2 = arith.constant 0 : index
    %2 = vector.load %arg2[%c0_1, %c0_2] : memref<1024x128xbf16, #tpu.memory_space<vmem>>, vector<1024x128xbf16>
    %cst = arith.constant dense<0.000000e+00> : vector<2x128xf32>
    %3 = tpu.matmul %1, %2, %cst {dimension_numbers = #tpu.dot_dimension_numbers<[1], [0], [0], [1], [0, 0, 1, 1], [], []>} : vector<2x1024xbf16>, vector<1024x128xbf16>, vector<2x128xf32> -> vector<2x128xf32>
    %c0_3 = arith.constant 0 : index
    %c0_4 = arith.constant 0 : index
    %4 = vector.load %arg3[%c0_3, %c0_4] : memref<1x128xf32, #tpu.memory_space<vmem>>, vector<1x128xf32>
    %5 = vector.broadcast %4 : vector<1x128xf32> to vector<2x128xf32>
    %6 = arith.addf %3, %5 : vector<2x128xf32>
    %cst_5 = arith.constant 0.000000e+00 : f32
    %7 = vector.broadcast %cst_5 : f32 to vector<2x128xf32>
    %8 = arith.maximumf %6, %7 : vector<2x128xf32>
    %9 = arith.truncf %8 : vector<2x128xf32> to vector<2x128xbf16>
    %c0_6 = arith.constant 0 : index
    %c0_7 = arith.constant 0 : index
    %10 = vector.load %arg4[%c0_6, %c0_7] : memref<128x10xbf16, #tpu.memory_space<vmem>>, vector<128x10xbf16>
    %cst_8 = arith.constant dense<0.000000e+00> : vector<2x10xf32>
    %11 = tpu.matmul %9, %10, %cst_8 {dimension_numbers = #tpu.dot_dimension_numbers<[1], [0], [0], [1], [0, 0, 1, 1], [], []>} : vector<2x128xbf16>, vector<128x10xbf16>, vector<2x10xf32> -> vector<2x10xf32>
    %c0_9 = arith.constant 0 : index
    %c0_10 = arith.constant 0 : index
    %12 = vector.load %arg5[%c0_9, %c0_10] : memref<1x10xf32, #tpu.memory_space<vmem>>, vector<1x10xf32>
    %13 = vector.broadcast %12 : vector<1x10xf32> to vector<2x10xf32>
    %14 = arith.addf %11, %13 : vector<2x10xf32>
    %cst_11 = arith.constant dense<0xFF800000> : vector<2xf32>
    %15 = vector.multi_reduction <maximumf>, %14, %cst_11 [1] : vector<2x10xf32> to vector<2xf32>
    %16 = vector.shape_cast %15 : vector<2xf32> to vector<2x1xf32>
    %17 = vector.broadcast %16 : vector<2x1xf32> to vector<2x10xf32>
    %18 = arith.subf %14, %17 : vector<2x10xf32>
    %19 = math.exp %18 : vector<2x10xf32>
    %cst_12 = arith.constant dense<0.000000e+00> : vector<2xf32>
    %20 = vector.multi_reduction <add>, %19, %cst_12 [1] : vector<2x10xf32> to vector<2xf32>
    %21 = vector.shape_cast %20 : vector<2xf32> to vector<2x1xf32>
    %22 = tpu.reciprocal %21 {approx = true} : vector<2x1xf32> -> vector<2x1xf32>
    %23 = vector.broadcast %22 : vector<2x1xf32> to vector<2x10xf32>
    %24 = arith.mulf %19, %23 : vector<2x10xf32>
    %c0_13 = arith.constant 0 : index
    %c0_14 = arith.constant 0 : index
    %25 = vector.load %arg6[%c0_13, %c0_14] : memref<2x10xf32, #tpu.memory_space<vmem>>, vector<2x10xf32>
    tpu.vector_store %arg6[%c0_13, %c0_14], %24 {strides = array<i32>} : memref<2x10xf32, #tpu.memory_space<vmem>>, vector<2x10xf32>,
    return
  }
  func.func @transform_0(%arg0: i32) -> (i32, i32) {
    %c0_i32 = arith.constant 0 : i32
    %c0_i32_0 = arith.constant 0 : i32
    %c0_i32_1 = arith.constant 0 : i32
    return %c0_i32, %c0_i32_0 : i32, i32
  }
  func.func @transform_1(%arg0: i32) -> (i32, i32) {
    %c0_i32 = arith.constant 0 : i32
    %c0_i32_0 = arith.constant 0 : i32
    %c0_i32_1 = arith.constant 0 : i32
    return %c0_i32, %c0_i32_0 : i32, i32
  }
  func.func @transform_2(%arg0: i32) -> (i32, i32) {
    %c0_i32 = arith.constant 0 : i32
    %c0_i32_0 = arith.constant 0 : i32
    %c0_i32_1 = arith.constant 0 : i32
    return %c0_i32, %c0_i32_0 : i32, i32
  }
  func.func @transform_3(%arg0: i32) -> (i32, i32) {
    %c0_i32 = arith.constant 0 : i32
    %c0_i32_0 = arith.constant 0 : i32
    %c0_i32_1 = arith.constant 0 : i32
    return %c0_i32, %c0_i32_0 : i32, i32
  }
  func.func @transform_4(%arg0: i32) -> (i32, i32) {
    %c0_i32 = arith.constant 0 : i32
    %c0_i32_0 = arith.constant 0 : i32
    %c0_i32_1 = arith.constant 0 : i32
    return %c0_i32, %c0_i32_0 : i32, i32
  }
  func.func @transform_5(%arg0: i32) -> (i32, i32) {
    %c0_i32 = arith.constant 0 : i32
    %c0_i32_0 = arith.constant 0 : i32
    %c0_i32_1 = arith.constant 0 : i32
    return %c0_i32, %c0_i32_0 : i32, i32
  }
}

</mosaic_0001>

<bundles_post_ra>
// kernel: resnet_forward.3
= control target key start
LH: loop header
LB: loop body
LE: loop exit
PB: predicated region body
PF: predicated region fallthrough
CT: control target
= control target key end

     0   :  { %s1251_s12 = smov 0   ;;  %s1516_s0 = inlined_call_operand.vmem [shape: bf16[2,256,75], index: 0, kind: input, shape index: {}]   ;;  %s1517_s1 = inlined_call_operand.vmem [shape: bf16[75,64], index: 1, kind: input, shape index: {}]   ;;  %s1518_s2 = inlined_call_operand.vmem [shape: f32[1,64], index: 2, kind: input, shape index: {}]   ;;  %s1519_s3 = inlined_call_operand.vmem [shape: f32[2,8,512], index: 3, kind: output, shape index: {}]  }
   0x1 LB: > { %s1066_s13 = sadd.s32 4294967295, %s1227_s12   ;;  %p1070_p0 = scmp.ge.s32.totalorder %s1227_s12, 1  ;;  %s1227_s12 = sphi %s1251_s12, %s13_s12  }
   0x2   : > { %p137_p1 = scmp.lt.s32.totalorder %s1227_s12, 3 }
   0x4   : > { %p138_p2 = pnand %p1070_p0, %p137_p1 }
   0x5   : > { %v1200_v0 = vld [vmem:[%s1517_s1] sm:$0xff] (!%p138_p2)   ;;  %v1201_v1 = vld [vmem:[%s1517_s1 + $0x8] sm:$0xff] (!%p138_p2)   ;;  %vm379_vm0 = vcmask (!%p138_p2), 1044480   ;;  %v1202_v2 = vld [vmem:[%s1517_s1 + $0x10] sm:$0xff] (!%p138_p2)   ;;  %p161_p3 = scmp.lt.s32.totalorder (!%p138_p2), %s1066_s13, 1  ;;  %vm380_vm1 = vcmask (!%p138_p2), 1045504  }
   0x6   : > { %141 = sbr.rel (%p138_p2) target bundleno = 413 (0x19d), region = 32  ;;  %1138 = vmatprep.subr.bf16.mxu0 (!%p138_p2), %v1200_v0  ;;  %1180 = vmatprep.subr.bf16.mxu1 (!%p138_p2), %v1200_v0  ;;  %v1229_v3 = vmov (!%p138_p2), 65535   ;;  %v1203_v5 = vld [vmem:[%s1517_s1 + $0x18] sm:$0xff] (!%p138_p2)   ;;  %v1204_v6 = vld [vmem:[%s1517_s1 + $0x20] sm:$0x3f] (!%p138_p2)   ;;  %vm330_vm2 = vcmask (!%p138_p2), 613376  }
   0x7   : > { %1139 = vmatpush3.bf16.msra.mxu0 (!%p138_p2), %v1200_v0  ;;  %1185 = vmatpush3.bf16.msra.mxu1 (!%p138_p2), %v1200_v0  ;;  %v381_v4 = vsel (!%p138_p2), %vm379_vm0, 4294967295, %v1229_v3  ;;  %v1317_v25 = vld [vmem:[%s1518_s2] ss:$0 sm:$0xff] (!%p138_p2)  ;;  %vm595_vm3 = vcmask (!%p138_p2), 523264   ;;  %vm813_vm4 = vcmask (!%p138_p2), 1041409   ;;  %vm816_vm5 = vcmask (!%p138_p2), 1042434  }
   0x8   : > { %1140 = vmatprep.subr.bf16.mxu0 (!%p138_p2), %v1201_v1  ;;  %1181 = vmatprep.subr.bf16.mxu1 (!%p138_p2), %v1201_v1  ;;  %v382_v7 = vsel (!%p138_p2), %vm380_vm1, %v381_v4, 0  ;;  %vm819_vm6 = vcmask (!%p138_p2), 1043459   ;;  %vm822_vm7 = vcmask (!%p138_p2), 1044484   ;;  %vm825_vm8 = vcmask (!%p138_p2), 1045509   ;;  %s1230_s30 = smov (!%p138_p2), 64  }
   0x9   : > { %v384_v9 = vand.u32 (!%p138_p2), %v1204_v6, %v382_v7  ;;  %vm828_vm9 = vcmask (!%p138_p2), 1046534   ;;  %vm831_vm10 = vcmask (!%p138_p2), 1047559  }
   0xb   : > { %1141 = vmatpush3.bf16.msra.mxu0 (!%p138_p2), %v1201_v1  ;;  %1186 = vmatpush3.bf16.msra.mxu1 (!%p138_p2), %v1201_v1 }
   0xc   : > { %1142 = vmatprep.subr.bf16.mxu0 (!%p138_p2), %v1202_v2  ;;  %1182 = vmatprep.subr.bf16.mxu1 (!%p138_p2), %v1202_v2 }
   0xd   : > { %s1521_s13 = smov (!%p161_p3, %s1066_s13), 1 }
   0xe   : > { %s1115_s24 = sshll.u32 %s1521_s13, 7  ;;  %s1116_s4 = sshll.u32 %s1521_s13, 5 }
   0xf   : > { %s1280_s27 = scalar_lea.vmem %s1516_s0, %s1115_s24  ;;  %1143 = vmatpush3.bf16.msra.mxu0 %v1202_v2  ;;  %1187 = vmatpush3.bf16.msra.mxu1 %v1202_v2  ;;  %s170_s7 = scalar_lea.vmem %s1519_s3, %s1116_s4 }
  0x10   : > { %v1205_v8 = vld [vmem:[%s1280_s27] sm:$0xff]   ;;  %1144 = vmatprep.subr.bf16.mxu0 %v1203_v5  ;;  %1183 = vmatprep.subr.bf16.mxu1 %v1203_v5  ;;  %v1206_v11 = vld [vmem:[%s1280_s27 + $0x8] sm:$0xff]   ;;  %v1209_v13 = vld [vmem:[%s1280_s27 + $0x10] sm:$0xff]  }
  0x11   : > { %1148 = vmatprep.mubr.msk.bf16.mxu0 %vm330_vm2, %v1205_v8  ;;  %v1207_v10 = vld [vmem:[%s1280_s27 + $0x40] sm:$0xff]   ;;  %v1208_v12 = vld [vmem:[%s1280_s27 + $0x48] sm:$0xff]   ;;  %v1211_v14 = vld [vmem:[%s1280_s27 + $0x50] sm:$0xff]  }
  0x12   : > { %1164 = vmatprep.mubr.msk.bf16.mxu1 %vm330_vm2, %v1207_v10  ;;  %v1210_v15 = vld [vmem:[%s1280_s27 + $0x18] sm:$0xff]   ;;  %v1213_v17 = vld [vmem:[%s1280_s27 + $0x20] sm:$0xff]   ;;  %v1214_v19 = vld [vmem:[%s1280_s27 + $0x28] sm:$0xff]  }
  0x13   : > { %1145 = vmatpush3.bf16.msra.mxu0 %v1203_v5  ;;  %1188 = vmatpush3.bf16.msra.mxu1 %v1203_v5  ;;  %v1212_v16 = vld [vmem:[%s1280_s27 + $0x58] sm:$0xff]   ;;  %v1215_v18 = vld [vmem:[%s1280_s27 + $0x60] sm:$0xff]   ;;  %v1216_v20 = vld [vmem:[%s1280_s27 + $0x68] sm:$0xff]  }
  0x14   : > { %1146 = vmatprep.subr.bf16.mxu0 %v384_v9  ;;  %1184 = vmatprep.subr.bf16.mxu1 %v384_v9  ;;  %v1217_v21 = vld [vmem:[%s1280_s27 + $0x30] sm:$0xff]   ;;  %v1218_v23 = vld [vmem:[%s1280_s27 + $0x38] sm:$0xff]  }
  0x15   : > { %v1219_v22 = vld [vmem:[%s1280_s27 + $0x70] sm:$0xff]   ;;  %v1220_v24 = vld [vmem:[%s1280_s27 + $0x78] sm:$0xff]  }
  0x17   : > { %1147 = vmatpush3.bf16.msra.mxu0 %v384_v9  ;;  %1189 = vmatpush3.bf16.msra.mxu1 %v384_v9 }
  0x1a   : > { %1149 = vmatmul.mubr.msk.bf16.vlgmr.msra.gmra.mrb[0].mxu0 %vm330_vm2, %v1206_v11  ;;  %1165 = vmatmul.mubr.msk.bf16.vlgmr.msra.gmra.mrb[0].mxu1 %vm330_vm2, %v1208_v12 }
  0x1b   : > { %1152 = vmatprep.mubr.msk.bf16.mxu0 %vm330_vm2, %v1209_v13  ;;  %1168 = vmatprep.mubr.msk.bf16.mxu1 %vm330_vm2, %v1211_v14 }
  0x22   : > { %1153 = vmatmul.mubr.msk.bf16.gmra.mrb[4].mxu0 %vm330_vm2, %v1210_v15  ;;  %1169 = vmatmul.mubr.msk.bf16.gmra.mrb[4].mxu1 %vm330_vm2, %v1212_v16 }
  0x23   : > { %1156 = vmatprep.mubr.msk.bf16.mxu0 %vm330_vm2, %v1213_v17  ;;  %1172 = vmatprep.mubr.msk.bf16.mxu1 %vm330_vm2, %v1215_v18 }
  0x2a   : > { %1157 = vmatmul.mubr.msk.bf16.gmra.mrb[8].mxu0 %vm330_vm2, %v1214_v19  ;;  %1173 = vmatmul.mubr.msk.bf16.gmra.mrb[8].mxu1 %vm330_vm2, %v1216_v20 }
  0x2b   : > { %1160 = vmatprep.mubr.msk.bf16.mxu0 %vm330_vm2, %v1217_v21  ;;  %1176 = vmatprep.mubr.msk.bf16.mxu1 %vm330_vm2, %v1219_v22 }
  0x32   : > { %1161 = vmatmul.mubr.msk.bf16.gmra.mrb[12].mxu0 %vm330_vm2, %v1218_v23  ;;  %1177 = vmatmul.mubr.msk.bf16.gmra.mrb[12].mxu1 %vm330_vm2, %v1220_v24 }
  0xed   : > { %v1150_v26 = vpop.f32.mrb[0].mxu0  ;;  %v1166_v27 = vpop.f32.mrb[0].mxu1 }
  0xee   : > { %v429_v28 = vadd.f32 %v1150_v26, %v1317_v25  ;;  %v420_v29 = vpop.f32.mrb[1].mxu0  ;;  %v493_v30 = vadd.f32 %v1166_v27, %v1317_v25  ;;  %v484_v31 = vpop.f32.mrb[1].mxu1 }
  0xef   : > { %v421_v32 = vadd.f32 %v1317_v25, %v420_v29  ;;  %v1151_v33 = vpop.f32.mrb[2].mxu0  ;;  %v485_v34 = vadd.f32 %v1317_v25, %v484_v31  ;;  %v1167_v35 = vpop.f32.mrb[2].mxu1 }
  0xf0   : > { %v549_v36 = vmax.f32 %v429_v28, 0.0  ;;  %v565_v37 = vmax.f32 %v493_v30, 0.0  ;;  %v432_v38 = vadd.f32 %v1151_v33, %v1317_v25  ;;  %v423_v39 = vpop.f32.mrb[3].mxu0  ;;  %v496_v40 = vadd.f32 %v1167_v35, %v1317_v25  ;;  %v487_v41 = vpop.f32.mrb[3].mxu1 }
  0xf1   : > { %v547_v42 = vmax.f32 %v421_v32, 0.0  ;;  %v563_v43 = vmax.f32 %v485_v34, 0.0  ;;  %v424_v44 = vadd.f32 %v1317_v25, %v423_v39  ;;  %v488_v45 = vadd.f32 %v1317_v25, %v487_v41 }
  0xf2   : > { %v550_v46 = vmax.f32 %v432_v38, 0.0  ;;  %v566_v47 = vmax.f32 %v496_v40, 0.0 }
  0xf3   : > { %v579_v48 = vmax.f32 %v547_v42, %v549_v36  ;;  %v587_v49 = vmax.f32 %v563_v43, %v565_v37  ;;  %v548_v50 = vmax.f32 %v424_v44, 0.0  ;;  %v564_v51 = vmax.f32 %v488_v45, 0.0 }
  0xf5   : > { %596 = vst.msk [vmem:[#allocation2] sm:$0xff] %vm595_vm3, %v579_v48  ;;  %604 = vst.msk [vmem:[#allocation2 + $0x40] sm:$0xff] %vm595_vm3, %v587_v49  ;;  %v580_v52 = vmax.f32 %v548_v50, %v550_v46  ;;  %v588_v53 = vmax.f32 %v564_v51, %v566_v47  ;;  %v1154_v54 = vpop.f32.mrb[4].mxu0  ;;  %v1170_v55 = vpop.f32.mrb[4].mxu1 }
  0xf6   : > { %v445_v56 = vadd.f32 %v1154_v54, %v1317_v25  ;;  %v436_v57 = vpop.f32.mrb[5].mxu0  ;;  %v509_v58 = vadd.f32 %v1170_v55, %v1317_v25  ;;  %v500_v59 = vpop.f32.mrb[5].mxu1 }
  0xf7   : > { %597 = vst.msk [vmem:[#allocation2 + $0x8] sm:$0xff] %vm595_vm3, %v580_v52  ;;  %605 = vst.msk [vmem:[#allocation2 + $0x48] sm:$0xff] %vm595_vm3, %v588_v53  ;;  %v437_v60 = vadd.f32 %v1317_v25, %v436_v57  ;;  %v1155_v61 = vpop.f32.mrb[6].mxu0  ;;  %v501_v62 = vadd.f32 %v1317_v25, %v500_v59  ;;  %v1171_v63 = vpop.f32.mrb[6].mxu1 }
  0xf8   : > { %v553_v0 = vmax.f32 %v445_v56, 0.0  ;;  %v569_v1 = vmax.f32 %v509_v58, 0.0  ;;  %v448_v2 = vadd.f32 %v1155_v61, %v1317_v25  ;;  %v439_v3 = vpop.f32.mrb[7].mxu0  ;;  %v512_v4 = vadd.f32 %v1171_v63, %v1317_v25  ;;  %v503_v5 = vpop.f32.mrb[7].mxu1 }
  0xf9   : > { %v551_v6 = vmax.f32 %v437_v60, 0.0  ;;  %v567_v7 = vmax.f32 %v501_v62, 0.0  ;;  %v440_v8 = vadd.f32 %v1317_v25, %v439_v3  ;;  %v504_v9 = vadd.f32 %v1317_v25, %v503_v5 }
  0xfa   : > { %v554_v10 = vmax.f32 %v448_v2, 0.0  ;;  %v570_v11 = vmax.f32 %v512_v4, 0.0 }
  0xfb   : > { %v581_v12 = vmax.f32 %v551_v6, %v553_v0  ;;  %v589_v13 = vmax.f32 %v567_v7, %v569_v1  ;;  %v552_v14 = vmax.f32 %v440_v8, 0.0  ;;  %v568_v15 = vmax.f32 %v504_v9, 0.0 }
  0xfc   : > { %v640_v29 = vld [vmem:[#allocation2 + $0x42] sm:$0x1]  ;;  %v648_v30 = vld [vmem:[#allocation2 + $0x43] sm:$0x1] }
  0xfd   : > { %598 = vst.msk [vmem:[#allocation2 + $0x10] sm:$0xff] %vm595_vm3, %v581_v12  ;;  %606 = vst.msk [vmem:[#allocation2 + $0x50] sm:$0xff] %vm595_vm3, %v589_v13  ;;  %v582_v16 = vmax.f32 %v552_v14, %v554_v10  ;;  %v590_v17 = vmax.f32 %v568_v15, %v570_v11  ;;  %v1158_v18 = vpop.f32.mrb[8].mxu0  ;;  %v1174_v19 = vpop.f32.mrb[8].mxu1  ;;  %v656_v43 = vmax.f32 %v640_v29, %v648_v30 }
  0xfe   : > { %v461_v20 = vadd.f32 %v1158_v18, %v1317_v25  ;;  %v452_v21 = vpop.f32.mrb[9].mxu0  ;;  %v525_v22 = vadd.f32 %v1174_v19, %v1317_v25  ;;  %v516_v23 = vpop.f32.mrb[9].mxu1  ;;  %v736_v48 = vld [vmem:[#allocation2 + $0x4a] sm:$0x1]  ;;  %v744_v49 = vld [vmem:[#allocation2 + $0x4b] sm:$0x1] }
  0xff   : > { %599 = vst.msk [vmem:[#allocation2 + $0x18] sm:$0xff] %vm595_vm3, %v582_v16  ;;  %607 = vst.msk [vmem:[#allocation2 + $0x58] sm:$0xff] %vm595_vm3, %v590_v17  ;;  %v453_v24 = vadd.f32 %v1317_v25, %v452_v21  ;;  %v1159_v26 = vpop.f32.mrb[10].mxu0  ;;  %v517_v27 = vadd.f32 %v1317_v25, %v516_v23  ;;  %v1175_v28 = vpop.f32.mrb[10].mxu1  ;;  %v752_v63 = vmax.f32 %v736_v48, %v744_v49  ;;  %v1365_v5 = vrot.slane %v656_v43, 4 }
 0x100   : > { %v557_v31 = vmax.f32 %v461_v20, 0.0  ;;  %v573_v32 = vmax.f32 %v525_v22, 0.0  ;;  %v464_v33 = vadd.f32 %v1159_v26, %v1317_v25  ;;  %v455_v34 = vpop.f32.mrb[11].mxu0  ;;  %v528_v35 = vadd.f32 %v1175_v28, %v1317_v25  ;;  %v519_v36 = vpop.f32.mrb[11].mxu1  ;;  %v1377_v21 = vld [vmem:[#allocation2 + $0x46] sm:$0x1] }
 0x101   : > { %v555_v37 = vmax.f32 %v453_v24, 0.0  ;;  %v571_v38 = vmax.f32 %v517_v27, 0.0  ;;  %v456_v39 = vadd.f32 %v1317_v25, %v455_v34  ;;  %v520_v40 = vadd.f32 %v1317_v25, %v519_v36  ;;  %v1379_v22 = vld [vmem:[#allocation2 + $0x47] sm:$0x1] }
 0x102   : > { %v558_v41 = vmax.f32 %v464_v33, 0.0  ;;  %v574_v42 = vmax.f32 %v528_v35, 0.0  ;;  %v1383_v27 = vrot.slane %v752_v63, 4  ;;  %v1385_v33 = vld [vmem:[#allocation2 + $0x2] sm:$0x1] }
 0x103   : > { %v583_v44 = vmax.f32 %v555_v37, %v557_v31  ;;  %v591_v45 = vmax.f32 %v571_v38, %v573_v32  ;;  %v556_v46 = vmax.f32 %v456_v39, 0.0  ;;  %v572_v47 = vmax.f32 %v520_v40, 0.0  ;;  %v692_v49 = vld [vmem:[#allocation2 + $0x7] sm:$0x1] }
 0x104   : > { %v637_v50 = vld [vmem:[#allocation2 + $0x12] sm:$0x1]  ;;  %v645_v52 = vld [vmem:[#allocation2 + $0x13] sm:$0x1]  ;;  %v1373_v14 = vld [vmem:[#allocation2 + $0x16] sm:$0x1] }
 0x105   : > { %v1351_v51 = vld [vmem:[#allocation2 + $0x52] sm:$0x1]  ;;  %600 = vst.msk [vmem:[#allocation2 + $0x20] sm:$0xff] %vm595_vm3, %v583_v44  ;;  %608 = vst.msk [vmem:[#allocation2 + $0x60] sm:$0xff] %vm595_vm3, %v591_v45  ;;  %v584_v53 = vmax.f32 %v556_v46, %v558_v41  ;;  %v592_v54 = vmax.f32 %v572_v47, %v574_v42  ;;  %v1162_v55 = vpop.f32.mrb[12].mxu0  ;;  %v1178_v56 = vpop.f32.mrb[12].mxu1  ;;  %v653_v62 = vmax.f32 %v637_v50, %v645_v52 }
 0x106   : > { %v1355_v57 = vld [vmem:[#allocation2 + $0x53] sm:$0x1]  ;;  %v477_v58 = vadd.f32 %v1162_v55, %v1317_v25  ;;  %v468_v59 = vpop.f32.mrb[13].mxu0  ;;  %v541_v60 = vadd.f32 %v1178_v56, %v1317_v25  ;;  %v532_v61 = vpop.f32.mrb[13].mxu1  ;;  %v1367_v6 = vld [vmem:[#allocation2 + $0x1a] sm:$0x1]  ;;  %v704_v55 = vmax.f32 %v1377_v21, %v1379_v22 }
 0x107   : > { %601 = vst.msk [vmem:[#allocation2 + $0x28] sm:$0xff] %vm595_vm3, %v584_v53  ;;  %609 = vst.msk [vmem:[#allocation2 + $0x68] sm:$0xff] %vm595_vm3, %v592_v54  ;;  %v469_v0 = vadd.f32 %v1317_v25, %v468_v59  ;;  %v1163_v1 = vpop.f32.mrb[14].mxu0  ;;  %v533_v2 = vadd.f32 %v1317_v25, %v532_v61  ;;  %v1179_v3 = vpop.f32.mrb[14].mxu1  ;;  %v657_v4 = vmax.f32 %v1351_v51, %v1355_v57  ;;  %v1371_v13 = vld [vmem:[#allocation2 + $0x5a] sm:$0x1] }
 0x108   : > { %v561_v7 = vmax.f32 %v477_v58, 0.0  ;;  %v577_v8 = vmax.f32 %v541_v60, 0.0  ;;  %v480_v9 = vadd.f32 %v1163_v1, %v1317_v25  ;;  %v471_v10 = vpop.f32.mrb[15].mxu0  ;;  %v544_v11 = vadd.f32 %v1179_v3, %v1317_v25  ;;  %v535_v12 = vpop.f32.mrb[15].mxu1  ;;  %v741_v19 = vld [vmem:[#allocation2 + $0x1b] sm:$0x1] }
 0x109   : > { %v559_v15 = vmax.f32 %v469_v0, 0.0  ;;  %v575_v16 = vmax.f32 %v533_v2, 0.0  ;;  %v472_v17 = vadd.f32 %v1317_v25, %v471_v10  ;;  %v536_v18 = vadd.f32 %v1317_v25, %v535_v12  ;;  %v745_v20 = vld [vmem:[#allocation2 + $0x5b] sm:$0x1]  ;;  %v693_v28 = vld [vmem:[#allocation2 + $0x17] sm:$0x1] }
 0x10a   : > { %v562_v23 = vmax.f32 %v480_v9, 0.0  ;;  %v578_v24 = vmax.f32 %v544_v11, 0.0  ;;  %v1381_v26 = vrot.slane %v653_v62, 7  ;;  %v644_v25 = vld [vmem:[#allocation2 + $0x3] sm:$0x1]  ;;  %v749_v39 = vmax.f32 %v1367_v6, %v741_v19 }
 0x10b   : > { %v585_v29 = vmax.f32 %v559_v15, %v561_v7  ;;  %v593_v30 = vmax.f32 %v575_v16, %v577_v8  ;;  %v560_v31 = vmax.f32 %v472_v17, 0.0  ;;  %v576_v32 = vmax.f32 %v536_v18, 0.0  ;;  %v689_v34 = vld [vmem:[#allocation2 + $0x56] sm:$0x1]  ;;  %v697_v35 = vld [vmem:[#allocation2 + $0x57] sm:$0x1] }
 0x10c   : > { %v638_v36 = vld [vmem:[#allocation2 + $0x22] sm:$0x1]  ;;  %v646_v38 = vld [vmem:[#allocation2 + $0x23] sm:$0x1]  ;;  %v753_v40 = vmax.f32 %v1371_v13, %v745_v20  ;;  %v732_v45 = vld [vmem:[#allocation2 + $0xa] sm:$0x1]  ;;  %v701_v50 = vmax.f32 %v1373_v14, %v693_v28  ;;  %v705_v61 = vmax.f32 %v689_v34, %v697_v35  ;;  %v652_v1 = vmax.f32 %v1385_v33, %v644_v25 }
 0x10d   : > { %v642_v37 = vld [vmem:[#allocation2 + $0x62] sm:$0x1]  ;;  %602 = vst.msk [vmem:[#allocation2 + $0x30] sm:$0xff] %vm595_vm3, %v585_v29  ;;  %610 = vst.msk [vmem:[#allocation2 + $0x70] sm:$0xff] %vm595_vm3, %v593_v30  ;;  %v586_v41 = vmax.f32 %v560_v31, %v562_v23  ;;  %v594_v42 = vmax.f32 %v576_v32, %v578_v24  ;;  %v650_v43 = vld [vmem:[#allocation2 + $0x63] sm:$0x1]  ;;  %v654_v44 = vmax.f32 %v638_v36, %v646_v38 }
 0x10e   : > { %v740_v46 = vld [vmem:[#allocation2 + $0xb] sm:$0x1]  ;;  %v1391_v47 = vld [vmem:[#allocation2 + $0x6] sm:$0x1]  ;;  %v658_v51 = vmax.f32 %v642_v37, %v650_v43  ;;  %v734_v52 = vld [vmem:[#allocation2 + $0x2a] sm:$0x1]  ;;  %v843_v21 = vsel %vm813_vm4, %v1381_v26, %v652_v1 }
 0x10f   : > { %v686_v48 = vld [vmem:[#allocation2 + $0x26] sm:$0x1]  ;;  %v738_v53 = vld [vmem:[#allocation2 + $0x6a] sm:$0x1]  ;;  %v742_v54 = vld [vmem:[#allocation2 + $0x2b] sm:$0x1]  ;;  %v748_v15 = vmax.f32 %v732_v45, %v740_v46  ;;  %v700_v17 = vmax.f32 %v1391_v47, %v692_v49 }
 0x110   : > { %603 = vst.msk [vmem:[#allocation2 + $0x38] sm:$0xff] %vm595_vm3, %v586_v41  ;;  %611 = vst.msk [vmem:[#allocation2 + $0x78] sm:$0xff] %vm595_vm3, %v594_v42  ;;  %v844_v56 = vrot.slane %v654_v44, 6  ;;  %v1398_v57 = vrot.slane %v657_v4, 3  ;;  %v746_v58 = vld [vmem:[#allocation2 + $0x6b] sm:$0x1]  ;;  %v750_v59 = vmax.f32 %v734_v52, %v742_v54 }
 0x111   : > { %v690_v60 = vld [vmem:[#allocation2 + $0x66] sm:$0x1]  ;;  %v1400_v62 = vld [vmem:[#allocation2 + $0xe] sm:$0x1]  ;;  %v781_v63 = vld [vmem:[#allocation2 + $0x1e] sm:$0x1]  ;;  %v754_v2 = vmax.f32 %v738_v53, %v746_v58 }
 0x112   : > { %v1402_v0 = vld [vmem:[#allocation2 + $0xf] sm:$0x1]  ;;  %v940_v3 = vrot.slane %v749_v39, 7  ;;  %v1405_v6 = vrot.slane %v753_v40, 3  ;;  %v694_v7 = vld [vmem:[#allocation2 + $0x27] sm:$0x1]  ;;  %v845_v33 = vsel %vm816_vm5, %v844_v56, %v843_v21 }
 0x113   : > { %v698_v8 = vld [vmem:[#allocation2 + $0x67] sm:$0x1]  ;;  %v1407_v4 = vrot.slane %v658_v51, 2  ;;  %v942_v9 = vrot.slane %v750_v59, 6  ;;  %v702_v10 = vmax.f32 %v686_v48, %v694_v7  ;;  %v891_v11 = vrot.slane %v701_v50, 7 }
 0x114   : > { %v782_v12 = vld [vmem:[#allocation2 + $0x2e] sm:$0x1]  ;;  %v1411_v14 = vld [vmem:[#allocation2 + $0x5e] sm:$0x1]  ;;  %v1413_v16 = vrot.slane %v754_v2, 2  ;;  %v1416_v18 = vrot.slane %v704_v55, 4  ;;  %v706_v22 = vmax.f32 %v690_v60, %v698_v8  ;;  %v796_v25 = vmax.f32 %v1400_v62, %v1402_v0 }
 0x115   : > { %v1409_v13 = vld [vmem:[#allocation2 + $0x4e] sm:$0x1]  ;;  %v789_v19 = vld [vmem:[#allocation2 + $0x1f] sm:$0x1]  ;;  %v790_v20 = vld [vmem:[#allocation2 + $0x2f] sm:$0x1]  ;;  %v941_v26 = vsel %vm813_vm4, %v940_v3, %v748_v15  ;;  %v892_v39 = vsel %vm813_vm4, %v891_v11, %v700_v17 }
 0x116   : > { %v893_v23 = vrot.slane %v702_v10, 6  ;;  %v1420_v24 = vrot.slane %v705_v61, 3  ;;  %v1422_v28 = vld [vmem:[#allocation2 + $0x4f] sm:$0x1]  ;;  %v1424_v29 = vld [vmem:[#allocation2 + $0x5f] sm:$0x1]  ;;  %v797_v34 = vmax.f32 %v781_v63, %v789_v19  ;;  %v798_v40 = vmax.f32 %v782_v12, %v790_v20 }
 0x117   : > { %v639_v30 = vld [vmem:[#allocation2 + $0x32] sm:$0x1]  ;;  %v647_v32 = vld [vmem:[#allocation2 + $0x33] sm:$0x1]  ;;  %v687_v37 = vld [vmem:[#allocation2 + $0x36] sm:$0x1]  ;;  %v943_v45 = vsel %vm816_vm5, %v942_v9, %v941_v26  ;;  %v800_v47 = vmax.f32 %v1409_v13, %v1422_v28  ;;  %v801_v48 = vmax.f32 %v1411_v14, %v1424_v29 }
 0x118   : > { %v643_v31 = vld [vmem:[#allocation2 + $0x72] sm:$0x1]  ;;  %v651_v35 = vld [vmem:[#allocation2 + $0x73] sm:$0x1]  ;;  %v655_v36 = vmax.f32 %v639_v30, %v647_v32  ;;  %v691_v38 = vld [vmem:[#allocation2 + $0x76] sm:$0x1]  ;;  %v894_v53 = vsel %vm816_vm5, %v893_v23, %v892_v39 }
 0x119   : > { %v659_v41 = vmax.f32 %v643_v31, %v651_v35  ;;  %v735_v42 = vld [vmem:[#allocation2 + $0x3a] sm:$0x1]  ;;  %v743_v44 = vld [vmem:[#allocation2 + $0x3b] sm:$0x1]  ;;  %v1432_v46 = vld [vmem:[#allocation2 + $0x6e] sm:$0x1] }
 0x11a   : > { %v739_v43 = vld [vmem:[#allocation2 + $0x7a] sm:$0x1]  ;;  %v846_v49 = vrot.slane %v655_v36, 5  ;;  %v747_v50 = vld [vmem:[#allocation2 + $0x7b] sm:$0x1]  ;;  %v751_v51 = vmax.f32 %v735_v42, %v743_v44  ;;  %v901_v54 = vrot.slane %v706_v22, 2 }
 0x11b   : > { %v695_v52 = vld [vmem:[#allocation2 + $0x37] sm:$0x1]  ;;  %v854_v55 = vrot.slane %v659_v41, 1  ;;  %v755_v56 = vmax.f32 %v739_v43, %v747_v50  ;;  %v783_v60 = vld [vmem:[#allocation2 + $0x3e] sm:$0x1]  ;;  %v989_v61 = vrot.slane %v797_v34, 7 }
 0x11c   : > { %v699_v58 = vld [vmem:[#allocation2 + $0x77] sm:$0x1]  ;;  %v703_v59 = vmax.f32 %v687_v37, %v695_v52  ;;  %v847_v62 = vsel %vm819_vm6, %v846_v49, %v845_v33  ;;  %v944_v63 = vrot.slane %v751_v51, 5  ;;  %v787_v1 = vld [vmem:[#allocation2 + $0x7e] sm:$0x1]  ;;  %v991_v3 = vrot.slane %v798_v40, 6 }
 0x11d   : > { %v707_v0 = vmax.f32 %v691_v38, %v699_v58  ;;  %v791_v2 = vld [vmem:[#allocation2 + $0x3f] sm:$0x1]  ;;  %v849_v7 = vsel %vm822_vm7, %v1365_v5, %v847_v62  ;;  %v952_v8 = vrot.slane %v755_v56, 1  ;;  %v794_v10 = vld [vmem:[#allocation2 + $0x6f] sm:$0x1]  ;;  %v990_v31 = vsel %vm813_vm4, %v989_v61, %v796_v25 }
 0x11e   : > { %v895_v9 = vrot.slane %v703_v59, 5  ;;  %v795_v11 = vld [vmem:[#allocation2 + $0x7f] sm:$0x1]  ;;  %v799_v12 = vmax.f32 %v783_v60, %v791_v2  ;;  %v851_v13 = vsel %vm825_vm8, %v1398_v57, %v849_v7  ;;  %v945_v14 = vsel %vm819_vm6, %v944_v63, %v943_v45  ;;  %v613_v22 = vld [vmem:[#allocation2 + $0x10] sm:$0x1] }
 0x11f   : > { %v903_v15 = vrot.slane %v707_v0, 1  ;;  %v802_v17 = vmax.f32 %v1432_v46, %v794_v10  ;;  %v853_v19 = vsel %vm828_vm9, %v1407_v4, %v851_v13  ;;  %v947_v20 = vsel %vm822_vm7, %v1383_v27, %v945_v14  ;;  %v614_v23 = vld [vmem:[#allocation2 + $0x20] sm:$0x1]  ;;  %v615_v28 = vld [vmem:[#allocation2 + $0x30] sm:$0x1] }
 0x120   : > { %v896_v5 = vsel %vm819_vm6, %v895_v9, %v894_v53  ;;  %v803_v21 = vmax.f32 %v787_v1, %v795_v11  ;;  %v855_v29 = vsel %vm831_vm10, %v854_v55, %v853_v19  ;;  %v949_v57 = vsel %vm825_vm8, %v1405_v6, %v947_v20  ;;  %v616_v4 = vld [vmem:[#allocation2 + $0x40] sm:$0x1]  ;;  %v617_v32 = vld [vmem:[#allocation2 + $0x50] sm:$0x1]  ;;  %v621_v27 = vld [vmem:[#allocation2 + $0x11] sm:$0x1] }
 0x121   : > { %v898_v30 = vsel %vm822_vm7, %v1416_v18, %v896_v5  ;;  %v618_v33 = vld [vmem:[#allocation2 + $0x60] sm:$0x1]  ;;  %856 = vrot.lane.b32.xlu0 %v855_v29, %s1230_s30  ;;  %v951_v34 = vsel %vm828_vm9, %v1413_v16, %v949_v57  ;;  %v992_v6 = vsel %vm816_vm5, %v991_v3, %v990_v31  ;;  %v993_v36 = vrot.slane %v799_v12, 5  ;;  %v619_v26 = vld [vmem:[#allocation2 + $0x70] sm:$0x1] }
 0x122   : > { %v900_v35 = vsel %vm825_vm8, %v1420_v24, %v898_v30  ;;  %v622_v18 = vld [vmem:[#allocation2 + $0x21] sm:$0x1]  ;;  %v623_v37 = vld [vmem:[#allocation2 + $0x31] sm:$0x1]  ;;  %v953_v25 = vsel %vm831_vm10, %v952_v8, %v951_v34  ;;  %v995_v39 = vrot.slane %v800_v47, 4  ;;  %v997_v40 = vrot.slane %v801_v48, 3 }
 0x123   : > { %v902_v38 = vsel %vm828_vm9, %v901_v54, %v900_v35  ;;  %v624_v41 = vld [vmem:[#allocation2 + $0x41] sm:$0x1]  ;;  %v625_v42 = vld [vmem:[#allocation2 + $0x51] sm:$0x1]  ;;  %954 = vrot.lane.b32.xlu1 %v953_v25, %s1230_s30  ;;  %v994_v24 = vsel %vm819_vm6, %v993_v36, %v992_v6  ;;  %v999_v43 = vrot.slane %v802_v17, 2  ;;  %v1001_v44 = vrot.slane %v803_v21, 1 }
 0x124   : > { %v904_v16 = vsel %vm831_vm10, %v903_v15, %v902_v38  ;;  %v626_v45 = vld [vmem:[#allocation2 + $0x61] sm:$0x1]  ;;  %v627_v46 = vld [vmem:[#allocation2 + $0x71] sm:$0x1]  ;;  %v996_v49 = vsel %vm822_vm7, %v995_v39, %v994_v24  ;;  %v629_v50 = vmax.f32 %v613_v22, %v621_v27  ;;  %v630_v51 = vmax.f32 %v614_v23, %v622_v18  ;;  %v612_v53 = vld [vmem:[#allocation2] sm:$0x1] }
 0x125   : > { %v631_v52 = vmax.f32 %v615_v28, %v623_v37  ;;  %v620_v47 = vld [vmem:[#allocation2 + $0x1] sm:$0x1]  ;;  %v709_v48 = vld [vmem:[#allocation2 + $0x18] sm:$0x1]  ;;  %905 = vrot.lane.b32.xlu0 %v904_v16, %s1230_s30  ;;  %v998_v54 = vsel %vm825_vm8, %v997_v40, %v996_v49  ;;  %v632_v55 = vmax.f32 %v616_v4, %v624_v41  ;;  %v633_v56 = vmax.f32 %v617_v32, %v625_v42  ;;  %v710_v59 = vld [vmem:[#allocation2 + $0x28] sm:$0x1] }
 0x126   : > { %v634_v58 = vmax.f32 %v618_v33, %v626_v45  ;;  %v711_v60 = vld [vmem:[#allocation2 + $0x38] sm:$0x1]  ;;  %v712_v61 = vld [vmem:[#allocation2 + $0x48] sm:$0x1]  ;;  %v1000_v62 = vsel %vm828_vm9, %v999_v43, %v998_v54  ;;  %v635_v63 = vmax.f32 %v619_v26, %v627_v46  ;;  %v812_v0 = vrot.slane %v629_v50, 7 }
 0x127   : > { %v815_v1 = vrot.slane %v630_v51, 6  ;;  %v713_v2 = vld [vmem:[#allocation2 + $0x58] sm:$0x1]  ;;  %v714_v3 = vld [vmem:[#allocation2 + $0x68] sm:$0x1]  ;;  %v1002_v7 = vsel %vm831_vm10, %v1001_v44, %v1000_v62  ;;  %v818_v8 = vrot.slane %v631_v52, 5  ;;  %v628_v14 = vmax.f32 %v612_v53, %v620_v47 }
 0x128   : > { %v821_v9 = vrot.slane %v632_v55, 4  ;;  %v824_v10 = vrot.slane %v633_v56, 3  ;;  %v715_v11 = vld [vmem:[#allocation2 + $0x78] sm:$0x1]  ;;  %1003 = vrot.lane.b32.xlu1 %v1002_v7, %s1230_s30  ;;  %v827_v12 = vrot.slane %v634_v58, 2  ;;  %v830_v13 = vrot.slane %v635_v63, 1 }
 0x129   : > { %v717_v15 = vld [vmem:[#allocation2 + $0x19] sm:$0x1]  ;;  %v718_v17 = vld [vmem:[#allocation2 + $0x29] sm:$0x1]  ;;  %v814_v23 = vsel %vm813_vm4, %v812_v0, %v628_v14  ;;  %v708_v4 = vld [vmem:[#allocation2 + $0x8] sm:$0x1] }
 0x12a   : > { %v719_v19 = vld [vmem:[#allocation2 + $0x39] sm:$0x1]  ;;  %v720_v20 = vld [vmem:[#allocation2 + $0x49] sm:$0x1]  ;;  %v725_v21 = vmax.f32 %v709_v48, %v717_v15  ;;  %v726_v22 = vmax.f32 %v710_v59, %v718_v17  ;;  %v817_v32 = vsel %vm816_vm5, %v815_v1, %v814_v23  ;;  %v660_v6 = vld [vmem:[#allocation2 + $0x4] sm:$0x1] }
 0x12b   : > { %v721_v5 = vld [vmem:[#allocation2 + $0x59] sm:$0x1]  ;;  %v722_v28 = vld [vmem:[#allocation2 + $0x69] sm:$0x1]  ;;  %v727_v57 = vmax.f32 %v711_v60, %v719_v19  ;;  %v728_v30 = vmax.f32 %v712_v61, %v720_v20  ;;  %v820_v36 = vsel %vm819_vm6, %v818_v8, %v817_v32  ;;  %v661_v25 = vld [vmem:[#allocation2 + $0x14] sm:$0x1] }
 0x12c   : > { %v723_v29 = vld [vmem:[#allocation2 + $0x79] sm:$0x1]  ;;  %v729_v31 = vmax.f32 %v713_v2, %v721_v5  ;;  %v730_v33 = vmax.f32 %v714_v3, %v722_v28  ;;  %v917_v34 = vrot.slane %v725_v21, 7  ;;  %v716_v35 = vld [vmem:[#allocation2 + $0x9] sm:$0x1]  ;;  %v919_v26 = vrot.slane %v726_v22, 6 }
 0x12d   : > { %v731_v27 = vmax.f32 %v715_v11, %v723_v29  ;;  %v921_v18 = vrot.slane %v727_v57, 5  ;;  %v923_v37 = vrot.slane %v728_v30, 4  ;;  %v823_v38 = vsel %vm822_vm7, %v821_v9, %v820_v36  ;;  %v662_v42 = vld [vmem:[#allocation2 + $0x24] sm:$0x1]  ;;  %v663_v43 = vld [vmem:[#allocation2 + $0x34] sm:$0x1] }
 0x12e   : > { %v925_v39 = vrot.slane %v729_v31, 3  ;;  %v927_v40 = vrot.slane %v730_v33, 2  ;;  %v826_v16 = vsel %vm825_vm8, %v824_v10, %v823_v38  ;;  %v724_v24 = vmax.f32 %v708_v4, %v716_v35  ;;  %v664_v44 = vld [vmem:[#allocation2 + $0x44] sm:$0x1]  ;;  %v665_v45 = vld [vmem:[#allocation2 + $0x54] sm:$0x1] }
 0x12f   : > { %v929_v41 = vrot.slane %v731_v27, 1  ;;  %v829_v46 = vsel %vm828_vm9, %v827_v12, %v826_v16  ;;  %v666_v49 = vld [vmem:[#allocation2 + $0x64] sm:$0x1]  ;;  %v667_v50 = vld [vmem:[#allocation2 + $0x74] sm:$0x1] }
 0x130   : > { %v668_v51 = vld [vmem:[#allocation2 + $0x5] sm:$0x1]  ;;  %v1481_v52 = vsel %vm831_vm10, %v830_v13, %v829_v46  ;;  %v918_v53 = vsel %vm813_vm4, %v917_v34, %v724_v24  ;;  %v669_v47 = vld [vmem:[#allocation2 + $0x15] sm:$0x1]  ;;  %v757_v12 = vld [vmem:[#allocation2 + $0x1c] sm:$0x1] }
 0x131   : > { %v670_v48 = vld [vmem:[#allocation2 + $0x25] sm:$0x1]  ;;  %v671_v54 = vld [vmem:[#allocation2 + $0x35] sm:$0x1]  ;;  %v676_v55 = vmax.f32 %v660_v6, %v668_v51  ;;  %v920_v56 = vsel %vm816_vm5, %v919_v26, %v918_v53  ;;  %v677_v61 = vmax.f32 %v661_v25, %v669_v47  ;;  %v756_v19 = vld [vmem:[#allocation2 + $0xc] sm:$0x1] }
 0x132   : > { %v672_v58 = vld [vmem:[#allocation2 + $0x45] sm:$0x1]  ;;  %v673_v59 = vld [vmem:[#allocation2 + $0x55] sm:$0x1]  ;;  %v678_v62 = vmax.f32 %v662_v42, %v670_v48  ;;  %v679_v63 = vmax.f32 %v663_v43, %v671_v54  ;;  %v922_v0 = vsel %vm819_vm6, %v921_v18, %v920_v56  ;;  %v758_v20 = vld [vmem:[#allocation2 + $0x2c] sm:$0x1] }
 0x133   : > { %v674_v60 = vld [vmem:[#allocation2 + $0x65] sm:$0x1]  ;;  %v675_v1 = vld [vmem:[#allocation2 + $0x75] sm:$0x1]  ;;  %v680_v2 = vmax.f32 %v664_v44, %v672_v58  ;;  %v681_v3 = vmax.f32 %v665_v45, %v673_v59  ;;  %v924_v8 = vsel %vm822_vm7, %v923_v37, %v922_v0  ;;  %v868_v10 = vrot.slane %v677_v61, 7 }
 0x134   : > { %v682_v7 = vmax.f32 %v666_v49, %v674_v60  ;;  %v683_v9 = vmax.f32 %v667_v50, %v675_v1  ;;  %v870_v11 = vrot.slane %v678_v62, 6  ;;  %v926_v13 = vsel %vm825_vm8, %v925_v39, %v924_v8  ;;  %v759_v28 = vld [vmem:[#allocation2 + $0x3c] sm:$0x1]  ;;  %v760_v29 = vld [vmem:[#allocation2 + $0x4c] sm:$0x1] }
 0x135   : > { %v872_v14 = vrot.slane %v679_v63, 5  ;;  %v874_v15 = vrot.slane %v680_v2, 4  ;;  %v876_v17 = vrot.slane %v681_v3, 3  ;;  %v928_v5 = vsel %vm828_vm9, %v927_v40, %v926_v13  ;;  %v761_v31 = vld [vmem:[#allocation2 + $0x5c] sm:$0x1] }
 0x136   : > { %v869_v21 = vsel %vm813_vm4, %v868_v10, %v676_v55  ;;  %v878_v22 = vrot.slane %v682_v7, 2  ;;  %v880_v23 = vrot.slane %v683_v9, 1  ;;  %v930_v57 = vsel %vm831_vm10, %v929_v41, %v928_v5  ;;  %v764_v4 = vld [vmem:[#allocation2 + $0xd] sm:$0x1]  ;;  %v765_v32 = vld [vmem:[#allocation2 + $0x1d] sm:$0x1] }
 0x137   : > { %v871_v30 = vsel %vm816_vm5, %v870_v11, %v869_v21  ;;  %v766_v27 = vld [vmem:[#allocation2 + $0x2d] sm:$0x1]  ;;  %v767_v34 = vld [vmem:[#allocation2 + $0x3d] sm:$0x1]  ;;  %v773_v6 = vmax.f32 %v757_v12, %v765_v32  ;;  %v762_v26 = vld [vmem:[#allocation2 + $0x6c] sm:$0x1]  ;;  %v772_v42 = vmax.f32 %v756_v19, %v764_v4 }
 0x138   : > { %v873_v33 = vsel %vm819_vm6, %v872_v14, %v871_v30  ;;  %v768_v35 = vld [vmem:[#allocation2 + $0x4d] sm:$0x1]  ;;  %v769_v18 = vld [vmem:[#allocation2 + $0x5d] sm:$0x1]  ;;  %v774_v25 = vmax.f32 %v758_v20, %v766_v27  ;;  %v775_v38 = vmax.f32 %v759_v28, %v767_v34  ;;  %v763_v40 = vld [vmem:[#allocation2 + $0x7c] sm:$0x1] }
 0x139   : > { %v875_v36 = vsel %vm822_vm7, %v874_v15, %v873_v33  ;;  %v770_v37 = vld [vmem:[#allocation2 + $0x6d] sm:$0x1]  ;;  %v771_v41 = vld [vmem:[#allocation2 + $0x7d] sm:$0x1]  ;;  %v776_v16 = vmax.f32 %v760_v29, %v768_v35  ;;  %v777_v24 = vmax.f32 %v761_v31, %v769_v18  ;;  %v966_v44 = vrot.slane %v773_v6, 7 }
 0x13a   : > { %v877_v39 = vsel %vm825_vm8, %v876_v17, %v875_v36  ;;  %v968_v45 = vrot.slane %v774_v25, 6  ;;  %v970_v46 = vrot.slane %v775_v38, 5  ;;  %v778_v50 = vmax.f32 %v762_v26, %v770_v37 }
 0x13b   : > { %v879_v43 = vsel %vm828_vm9, %v878_v22, %v877_v39  ;;  %v779_v51 = vmax.f32 %v763_v40, %v771_v41  ;;  %v967_v53 = vsel %vm813_vm4, %v966_v44, %v772_v42  ;;  %v972_v48 = vrot.slane %v776_v16, 4 }
 0x13c   : > { %v881_v49 = vsel %vm831_vm10, %v880_v23, %v879_v43  ;;  %v969_v47 = vsel %vm816_vm5, %v968_v45, %v967_v53  ;;  %v974_v55 = vrot.slane %v777_v24, 3  ;;  %v976_v58 = vrot.slane %v778_v50, 2 }
 0x13d   : > { %v971_v54 = vsel %vm819_vm6, %v970_v46, %v969_v47  ;;  %v978_v60 = vrot.slane %v779_v51, 1 }
 0x13e   : > { %v973_v56 = vsel %vm822_vm7, %v972_v48, %v971_v54 }
 0x13f   : > { %v975_v59 = vsel %vm825_vm8, %v974_v55, %v973_v56 }
 0x140   : > { %v977_v61 = vsel %vm828_vm9, %v976_v58, %v975_v59 }
 0x141   : > { %v979_v62 = vsel %vm831_vm10, %v978_v60, %v977_v61 }
 0x193   : > { %v857_v63 = vpop.permute.xlu0 %856 }
 0x194   : > { %v859_v0 = vsel %vm595_vm3, %v1481_v52, %v857_v63 }
 0x195   : > { %1007 = vst [vmem:[%s170_s7] sm:$0xff] %v859_v0  ;;  %v955_v1 = vpop.permute.xlu1 %954 }
 0x196   : > { %v957_v2 = vsel %vm595_vm3, %v930_v57, %v955_v1 }
 0x197   : > { %1009 = vst [vmem:[%s170_s7 + $0x10] sm:$0xff] %v957_v2  ;;  %v906_v3 = vpop.permute.xlu0 %905 }
 0x198   : > { %v908_v7 = vsel %vm595_vm3, %v881_v49, %v906_v3 }
 0x199   : > { %1008 = vst [vmem:[%s170_s7 + $0x8] sm:$0xff] %v908_v7 }
 0x19a   : > { %v1004_v8 = vpop.permute.xlu1 %1003 }
 0x19b   : > { %v1006_v9 = vsel %vm595_vm3, %v979_v62, %v1004_v8 }
 0x19c   : > { %1010 = vst [vmem:[%s170_s7 + $0x18] sm:$0xff] %v1006_v9 }
 0x19d PF: > { %s13_s12 = sadd.s32 1, %s1227_s12  }
 0x19e   : > { %p10_p4 = scmp.ge.s32.totalorder %s13_s12, 4  }
 0x1a0   :  { %12 = sbr.rel (!%p10_p4) target bundleno = 1 (0x1), region = 62 }

// kernel: resnet_forward.5
= control target key start
LH: loop header
LB: loop body
LE: loop exit
PB: predicated region body
PF: predicated region fallthrough
CT: control target
= control target key end

     0   :  { %v30_v28 = vlaneseq  ;;  %v1192_v36 = vmov 1983009808   ;;  %s1475_s0 = inlined_call_operand.vmem [shape: f32[2,1024], index: 0, kind: input, shape index: {}]   ;;  %s1476_s1 = inlined_call_operand.vmem [shape: bf16[1024,128], index: 1, kind: input, shape index: {}]   ;;  %s1477_s2 = inlined_call_operand.vmem [shape: f32[1,128], index: 2, kind: input, shape index: {}]   ;;  %s1478_s3 = inlined_call_operand.vmem [shape: bf16[128,10], index: 3, kind: input, shape index: {}]   ;;  %s1479_s4 = inlined_call_operand.vmem [shape: f32[1,10], index: 4, kind: input, shape index: {}]   ;;  %s1480_s5 = inlined_call_operand.hbm [shape: f32[2,10], index: 5, kind: output, shape index: {}]  }
   0x1   :  { %v1090_v0 = vld [vmem:[%s1476_s1 + $0x40] sm:$0xff]   ;;  %v1094_v4 = vld [vmem:[%s1476_s1 + $0x48] sm:$0xff]   ;;  %v1098_v8 = vld [vmem:[%s1476_s1 + $0x50] sm:$0xff]   ;;  %v28_v37 = vunpack.c.l.s4 %v1192_v36 }
   0x2   :  { %v1091_v1 = vld [vmem:[%s1476_s1 + $0xc0] sm:$0xff]   ;;  %969 = vmatprep.subr.bf16.mxu0 %v1090_v0  ;;  %v1095_v5 = vld [vmem:[%s1476_s1 + $0xc8] sm:$0xff]   ;;  %v1099_v9 = vld [vmem:[%s1476_s1 + $0xd0] sm:$0xff]   ;;  %v31_v33 = vshrl.u32 %v30_v28, 7 }
   0x3   :  { %v1092_v2 = vld [vmem:[%s1476_s1] sm:$0xff]   ;;  %991 = vmatprep.subr.bf16.mxu1 %v1091_v1  ;;  %v1096_v6 = vld [vmem:[%s1476_s1 + $0x8] sm:$0xff]   ;;  %v1100_v10 = vld [vmem:[%s1476_s1 + $0x10] sm:$0xff]   ;;  %v29_v39 = vunpack.c.0.s8 %v28_v37 }
   0x4   :  { %v1093_v3 = vld [vmem:[%s1476_s1 + $0x80] sm:$0xff]   ;;  %970 = vmatpush3.bf16.msra.mxu0 %v1092_v2  ;;  %v1097_v7 = vld [vmem:[%s1476_s1 + $0x88] sm:$0xff]   ;;  %v1101_v11 = vld [vmem:[%s1476_s1 + $0x90] sm:$0xff]  }
   0x5   :  { %992 = vmatpush3.bf16.msra.mxu1 %v1093_v3  ;;  %971 = vmatprep.subr.bf16.mxu0 %v1094_v4  ;;  %v1102_v12 = vld [vmem:[%s1476_s1 + $0x58] sm:$0xff]   ;;  %v1106_v16 = vld [vmem:[%s1476_s1 + $0x60] sm:$0xff]   ;;  %v1110_v20 = vld [vmem:[%s1476_s1 + $0x68] sm:$0xff]   ;;  %v1331_v41 = vsub.s32 %v29_v39, %v31_v33 }
   0x6   :  { %993 = vmatprep.subr.bf16.mxu1 %v1095_v5  ;;  %v1103_v13 = vld [vmem:[%s1476_s1 + $0xd8] sm:$0xff]   ;;  %v1107_v17 = vld [vmem:[%s1476_s1 + $0xe0] sm:$0xff]   ;;  %v1111_v21 = vld [vmem:[%s1476_s1 + $0xe8] sm:$0xff]  }
   0x7   :  { %v1104_v14 = vld [vmem:[%s1476_s1 + $0x18] sm:$0xff]   ;;  %v1108_v18 = vld [vmem:[%s1476_s1 + $0x20] sm:$0xff]   ;;  %v1112_v22 = vld [vmem:[%s1476_s1 + $0x28] sm:$0xff]  }
   0x8   :  { %972 = vmatpush3.bf16.msra.mxu0 %v1096_v6  ;;  %v1105_v15 = vld [vmem:[%s1476_s1 + $0x98] sm:$0xff]   ;;  %v1109_v19 = vld [vmem:[%s1476_s1 + $0xa0] sm:$0xff]   ;;  %v1113_v23 = vld [vmem:[%s1476_s1 + $0xa8] sm:$0xff]  }
   0x9   :  { %994 = vmatpush3.bf16.msra.mxu1 %v1097_v7  ;;  %973 = vmatprep.subr.bf16.mxu0 %v1098_v8  ;;  %v1114_v24 = vld [vmem:[%s1476_s1 + $0x70] sm:$0xff]   ;;  %v1118_v29 = vld [vmem:[%s1476_s1 + $0x78] sm:$0xff]   ;;  %v22_v34 = vld [vmem:[%s1475_s0] sm:$0xff] }
   0xa   :  { %995 = vmatprep.subr.bf16.mxu1 %v1099_v9  ;;  %v1115_v25 = vld [vmem:[%s1476_s1 + $0xf0] sm:$0xff]   ;;  %v1119_v30 = vld [vmem:[%s1476_s1 + $0xf8] sm:$0xff]   ;;  %v1123_v35 = vld [vmem:[%s1476_s1 + $0x140] sm:$0xff]   ;;  %v26_v40 = vcombine.high %v22_v34, %v22_v34  ;;  %v33_v42 = vrot.slane %v22_v34, %v1331_v41 }
   0xb   :  { %v1116_v26 = vld [vmem:[%s1476_s1 + $0x30] sm:$0xff]   ;;  %v1120_v31 = vld [vmem:[%s1476_s1 + $0x38] sm:$0xff]   ;;  %v1124_v38 = vld [vmem:[%s1476_s1 + $0x1c0] sm:$0xff]  }
   0xc   :  { %974 = vmatpush3.bf16.msra.mxu0 %v1100_v10  ;;  %v1117_v27 = vld [vmem:[%s1476_s1 + $0xb0] sm:$0xff]   ;;  %v1121_v32 = vld [vmem:[%s1476_s1 + $0xb8] sm:$0xff]   ;;  %v40_v43 = vrot.slane %v26_v40, %v1331_v41  ;;  %v41_v44 = vcombine.high %v33_v42, %v33_v42  ;;  %v1125_v46 = vld [vmem:[%s1476_s1 + $0x100] sm:$0xff]   ;;  %v68_v47 = vpack.c.bf16 %v33_v42, %v33_v42 }
   0xd   :  { %996 = vmatpush3.bf16.msra.mxu1 %v1101_v11  ;;  %975 = vmatprep.subr.bf16.mxu0 %v1102_v12  ;;  %v1126_v49 = vld [vmem:[%s1476_s1 + $0x180] sm:$0xff]   ;;  %v1127_v52 = vld [vmem:[%s1476_s1 + $0x148] sm:$0xff]   ;;  %v1131_v56 = vld [vmem:[%s1476_s1 + $0x150] sm:$0xff]  }
   0xe   :  { %997 = vmatprep.subr.bf16.mxu1 %v1103_v13  ;;  %v42_v45 = vcombine.high %v40_v43, %v40_v43  ;;  %v70_v48 = vpack.c.bf16 %v40_v43, %v40_v43  ;;  %v69_v50 = vpack.c.bf16 %v41_v44, %v41_v44  ;;  %v1128_v53 = vld [vmem:[%s1476_s1 + $0x1c8] sm:$0xff]   ;;  %v1132_v57 = vld [vmem:[%s1476_s1 + $0x1d0] sm:$0xff]   ;;  %v1135_v60 = vld [vmem:[%s1476_s1 + $0x158] sm:$0xff]  }
   0xf   :  { %v1129_v54 = vld [vmem:[%s1476_s1 + $0x108] sm:$0xff]   ;;  %v1133_v58 = vld [vmem:[%s1476_s1 + $0x110] sm:$0xff]   ;;  %v1136_v61 = vld [vmem:[%s1476_s1 + $0x1d8] sm:$0xff]  }
  0x10   :  { %976 = vmatpush3.bf16.msra.mxu0 %v1104_v14  ;;  %v71_v51 = vpack.c.bf16 %v42_v45, %v42_v45  ;;  %627 = vmatprep.mubr.bf16.mxu0 %v69_v50  ;;  %v1130_v55 = vld [vmem:[%s1476_s1 + $0x188] sm:$0xff]   ;;  %v1134_v59 = vld [vmem:[%s1476_s1 + $0x190] sm:$0xff]   ;;  %v1137_v62 = vld [vmem:[%s1476_s1 + $0x118] sm:$0xff]  }
  0x11   :  { %998 = vmatpush3.bf16.msra.mxu1 %v1105_v15  ;;  %977 = vmatprep.subr.bf16.mxu0 %v1106_v16  ;;  %v1138_v63 = vld [vmem:[%s1476_s1 + $0x198] sm:$0xff]   ;;  %v1139_v0 = vld [vmem:[%s1476_s1 + $0x160] sm:$0xff]   ;;  %v1143_v4 = vld [vmem:[%s1476_s1 + $0x168] sm:$0xff]  }
  0x12   :  { %999 = vmatprep.subr.bf16.mxu1 %v1107_v17  ;;  %667 = vmatprep.mubr.bf16.mxu1 %v71_v51  ;;  %v1140_v1 = vld [vmem:[%s1476_s1 + $0x1e0] sm:$0xff]   ;;  %v1144_v5 = vld [vmem:[%s1476_s1 + $0x1e8] sm:$0xff]   ;;  %v1147_v8 = vld [vmem:[%s1476_s1 + $0x170] sm:$0xff]  }
  0x13   :  { %v1141_v2 = vld [vmem:[%s1476_s1 + $0x120] sm:$0xff]   ;;  %v1145_v6 = vld [vmem:[%s1476_s1 + $0x128] sm:$0xff]   ;;  %v1148_v9 = vld [vmem:[%s1476_s1 + $0x1f0] sm:$0xff]  }
  0x14   :  { %978 = vmatpush3.bf16.msra.mxu0 %v1108_v18  ;;  %v1142_v3 = vld [vmem:[%s1476_s1 + $0x1a0] sm:$0xff]   ;;  %v1146_v7 = vld [vmem:[%s1476_s1 + $0x1a8] sm:$0xff]   ;;  %v1149_v11 = vld [vmem:[%s1476_s1 + $0x130] sm:$0xff]  }
  0x15   :  { %1000 = vmatpush3.bf16.msra.mxu1 %v1109_v19  ;;  %979 = vmatprep.subr.bf16.mxu0 %v1110_v20  ;;  %v23_v10 = vld [vmem:[%s1475_s0 + $0x8] sm:$0xff]  ;;  %v1150_v12 = vld [vmem:[%s1476_s1 + $0x1b0] sm:$0xff]   ;;  %v1151_v15 = vld [vmem:[%s1476_s1 + $0x178] sm:$0xff]  }
  0x16   :  { %1001 = vmatprep.subr.bf16.mxu1 %v1111_v21  ;;  %v50_v13 = vrot.slane %v23_v10, %v1331_v41  ;;  %v43_v14 = vcombine.high %v23_v10, %v23_v10  ;;  %v1152_v16 = vld [vmem:[%s1476_s1 + $0x1f8] sm:$0xff]  }
  0x18   :  { %980 = vmatpush3.bf16.msra.mxu0 %v1112_v22  ;;  %v58_v17 = vcombine.high %v50_v13, %v50_v13  ;;  %v57_v18 = vrot.slane %v43_v14, %v1331_v41 }
  0x19   :  { %1002 = vmatpush3.bf16.msra.mxu1 %v1113_v23  ;;  %981 = vmatprep.subr.bf16.mxu0 %v1114_v24 }
  0x1a   :  { %1003 = vmatprep.subr.bf16.mxu1 %v1115_v25  ;;  %v73_v19 = vpack.c.bf16 %v58_v17, %v58_v17  ;;  %v59_v20 = vcombine.high %v57_v18, %v57_v18 }
  0x1c   :  { %982 = vmatpush3.bf16.msra.mxu0 %v1116_v26 }
  0x1d   :  { %1004 = vmatpush3.bf16.msra.mxu1 %v1117_v27  ;;  %983 = vmatprep.subr.bf16.mxu0 %v1118_v29 }
  0x1e   :  { %1005 = vmatprep.subr.bf16.mxu1 %v1119_v30 }
  0x20   :  { %984 = vmatpush3.bf16.msra.mxu0 %v1120_v31 }
  0x21   :  { %1006 = vmatpush3.bf16.msra.mxu1 %v1121_v32  ;;  %1013 = vmatprep.subr.bf16.mxu0 %v1123_v35 }
  0x22   :  { %1035 = vmatprep.subr.bf16.mxu1 %v1124_v38 }
  0x23   :  { %628 = vmatmul.mubr.bf16.vlgmr.msra.gmra.mrb[0].mxu0 %v68_v47 }
  0x24   :  { %668 = vmatmul.mubr.bf16.vlgmr.msra.gmra.mrb[0].mxu1 %v70_v48  ;;  %1014 = vmatpush3.bf16.msra.mxu0 %v1125_v46 }
  0x25   :  { %1036 = vmatpush3.bf16.msra.mxu1 %v1126_v49  ;;  %1015 = vmatprep.subr.bf16.mxu0 %v1127_v52 }
  0x26   :  { %1037 = vmatprep.subr.bf16.mxu1 %v1128_v53 }
  0x28   :  { %1016 = vmatpush3.bf16.msra.mxu0 %v1129_v54 }
  0x29   :  { %1038 = vmatpush3.bf16.msra.mxu1 %v1130_v55  ;;  %1017 = vmatprep.subr.bf16.mxu0 %v1131_v56 }
  0x2a   :  { %1039 = vmatprep.subr.bf16.mxu1 %v1132_v57 }
  0x2c   :  { %1018 = vmatpush3.bf16.msra.mxu0 %v1133_v58 }
  0x2d   :  { %1040 = vmatpush3.bf16.msra.mxu1 %v1134_v59  ;;  %1019 = vmatprep.subr.bf16.mxu0 %v1135_v60 }
  0x2e   :  { %1041 = vmatprep.subr.bf16.mxu1 %v1136_v61 }
  0x30   :  { %1020 = vmatpush3.bf16.msra.mxu0 %v1137_v62 }
  0x31   :  { %1042 = vmatpush3.bf16.msra.mxu1 %v1138_v63  ;;  %1021 = vmatprep.subr.bf16.mxu0 %v1139_v0 }
  0x32   :  { %1043 = vmatprep.subr.bf16.mxu1 %v1140_v1 }
  0x34   :  { %1022 = vmatpush3.bf16.msra.mxu0 %v1141_v2 }
  0x35   :  { %1044 = vmatpush3.bf16.msra.mxu1 %v1142_v3  ;;  %1023 = vmatprep.subr.bf16.mxu0 %v1143_v4 }
  0x36   :  { %1045 = vmatprep.subr.bf16.mxu1 %v1144_v5 }
  0x38   :  { %1024 = vmatpush3.bf16.msra.mxu0 %v1145_v6 }
  0x39   :  { %1046 = vmatpush3.bf16.msra.mxu1 %v1146_v7  ;;  %1025 = vmatprep.subr.bf16.mxu0 %v1147_v8 }
  0x3a   :  { %1047 = vmatprep.subr.bf16.mxu1 %v1148_v9 }
  0x3b   :  { %10 = vsyncpa [#allocation3], 0  ;;  %v1153_v21 = vld [vmem:[%s1476_s1 + $0x138] sm:$0xff]   ;;  %v75_v23 = vpack.c.bf16 %v59_v20, %v59_v20  ;;  %707 = vmatprep.mubr.bf16.mxu0 %v73_v19  ;;  %v72_v24 = vpack.c.bf16 %v50_v13, %v50_v13  ;;  %v74_v25 = vpack.c.bf16 %v57_v18, %v57_v18  ;;  %v1156_v26 = vld [vmem:[%s1478_s3] sm:$0xff]   ;;  %v1193_v27 = vmov 0.0  }
  0x3c   :  { %1026 = vmatpush3.bf16.msra.mxu0 %v1149_v11  ;;  %v1154_v22 = vld [vmem:[%s1476_s1 + $0x1b8] sm:$0xff]   ;;  %v1157_v28 = vld [vmem:[%s1478_s3 + $0x8] sm:$0xff]   ;;  %v1158_v29 = vld [vmem:[%s1478_s3 + $0x10] sm:$0xff]   ;;  %vm1194_vm0 = vmmov 0   ;;  %vm868_vm1 = vcmask 74752  }
  0x3d   :  { %1048 = vmatpush3.bf16.msra.mxu1 %v1150_v12  ;;  %1027 = vmatprep.subr.bf16.mxu0 %v1151_v15  ;;  %v1159_v30 = vld [vmem:[%s1478_s3 + $0x18] sm:$0xff]   ;;  %v1160_v31 = vld [vmem:[%s1478_s3 + $0x20] sm:$0xff]   ;;  %v1161_v32 = vld [vmem:[%s1478_s3 + $0x28] sm:$0xff]  }
  0x3e   :  { %1049 = vmatprep.subr.bf16.mxu1 %v1152_v16  ;;  %747 = vmatprep.mubr.bf16.mxu1 %v75_v23  ;;  %v1162_v33 = vld [vmem:[%s1478_s3 + $0x30] sm:$0xff]   ;;  %v1163_v34 = vld [vmem:[%s1478_s3 + $0x38] sm:$0xff]   ;;  %v895_v37 = vld [vmem:[%s1477_s2] ss:$0 sm:$0xff] }
  0x3f   :  { %v960_v62 = vld [vmem:[%s1479_s4] ss:$0 sm:$0xff]  ;;  %s1195_s4 = smov [#allocation2]  }
  0x40   :  { %1028 = vmatpush3.bf16.msra.mxu0 %v1153_v21  ;;  %s887_s16 = sshll.u32 %s1195_s4, 4  ;;  %s888_s16 = int_to_ptr.vmem [resolvable:$true] %s887_s16 }
  0x41   :  { %1050 = vmatpush3.bf16.msra.mxu1 %v1154_v22  ;;  %1066 = vmatprep.subr.bf16.mxu0 %v1193_v27  ;;  %s1168_s17 = scalar_lea.vmem %s888_s16, 32  ;;  %p1173_p1 = scmp.lt.s32.totalorder %s888_s16, %s888_s16 }
  0x42   :  { %p1169_p0 = scmp.ne.s32.totalorder %s888_s16, %s1168_s17  ;;  %p1174_p2 = scmp.lt.s32.totalorder %s1168_s17, %s1168_s17 }
  0x43   :  { %708 = vmatmul.mubr.bf16.vlgmr.msra.gmra.mrb[4].mxu0 %v72_v24 }
  0x44   :  { %748 = vmatmul.mubr.bf16.vlgmr.msra.gmra.mrb[4].mxu1 %v74_v25  ;;  %1067 = vmatpush3.bf16.msra.mxu0 %v1156_v26  ;;  %p1175_p3 = por %p1174_p2, %p1173_p1 }
  0x45   :  { %1068 = vmatprep.subr.bf16.mxu0 %v1193_v27  ;;  %1082 = vmatprep.mubr.msk.bf16.mxu0 %vm1194_vm0, %v1193_v27 }
  0x46   :  { %p1176_p4 = pnand %p1175_p3, %p1169_p0 }
  0x48   :  { %1069 = vmatpush3.bf16.msra.mxu0 %v1157_v28 }
  0x49   :  { %1070 = vmatprep.subr.bf16.mxu0 %v1193_v27 }
  0x4c   :  { %1071 = vmatpush3.bf16.msra.mxu0 %v1158_v29 }
  0x4d   :  { %1072 = vmatprep.subr.bf16.mxu0 %v1193_v27 }
  0x50   :  { %1073 = vmatpush3.bf16.msra.mxu0 %v1159_v30 }
  0x51   :  { %1074 = vmatprep.subr.bf16.mxu0 %v1193_v27 }
  0x54   :  { %1075 = vmatpush3.bf16.msra.mxu0 %v1160_v31 }
  0x55   :  { %1076 = vmatprep.subr.bf16.mxu0 %v1193_v27 }
  0x58   :  { %1077 = vmatpush3.bf16.msra.mxu0 %v1161_v32 }
  0x59   :  { %1078 = vmatprep.subr.bf16.mxu0 %v1193_v27 }
  0x5c   :  { %1079 = vmatpush3.bf16.msra.mxu0 %v1162_v33 }
  0x5d   :  { %1080 = vmatprep.subr.bf16.mxu0 %v1193_v27 }
  0x60   :  { %1081 = vmatpush3.bf16.msra.mxu0 %v1163_v34 }
  0xf6   :  { %v985_v35 = vpop.f32.mrb[0].mxu0 }
  0xf7   :  { %v1007_v36 = vpop.f32.mrb[0].mxu1  ;;  %v986_v38 = vpop.f32.mrb[1].mxu0 }
  0xf8   :  { %v1008_v39 = vpop.f32.mrb[1].mxu1  ;;  %v987_v40 = vadd.f32 %v986_v38, %v985_v35  ;;  %v988_v42 = vpop.f32.mrb[2].mxu0 }
  0xf9   :  { %v1009_v41 = vadd.f32 %v1008_v39, %v1007_v36  ;;  %v1010_v43 = vpop.f32.mrb[2].mxu1  ;;  %v989_v44 = vpop.f32.mrb[3].mxu0 }
  0xfa   :  { %v1011_v45 = vpop.f32.mrb[3].mxu1  ;;  %v630_v46 = vadd.f32 %v987_v40, %v895_v37 }
  0xfc   :  { %v670_v47 = vadd.f32 %v1009_v41, %v630_v46 }
 0x116   :  { %v1029_v48 = vpop.f32.mrb[4].mxu0 }
 0x117   :  { %v1051_v49 = vpop.f32.mrb[4].mxu1  ;;  %v1030_v50 = vpop.f32.mrb[5].mxu0 }
 0x118   :  { %v1052_v51 = vpop.f32.mrb[5].mxu1  ;;  %v1031_v52 = vadd.f32 %v1030_v50, %v1029_v48  ;;  %v1032_v54 = vpop.f32.mrb[6].mxu0 }
 0x119   :  { %v1053_v53 = vadd.f32 %v1052_v51, %v1051_v49  ;;  %v1054_v55 = vpop.f32.mrb[6].mxu1  ;;  %v1033_v56 = vpop.f32.mrb[7].mxu0 }
 0x11a   :  { %v1055_v57 = vpop.f32.mrb[7].mxu1  ;;  %v710_v58 = vadd.f32 %v1031_v52, %v670_v47 }
 0x11c   :  { %v750_v59 = vadd.f32 %v1053_v53, %v710_v58 }
 0x11e   :  { %v755_v60 = vmax.f32 %v750_v59, 0.0 }
 0x120   :  { %v756_v61 = vpack.c.bf16 %v755_v60, %v755_v60 }
 0x122   :  { %1083 = vmatmul.mubr.bf16.vlgmr.msra.gmra.mrb[8].mxu0 %v756_v61 }
 0x1f5   :  { %v862_v63 = vpop.f32.mrb[8].mxu0 }
 0x1f6   :  { %v863_v0 = vadd.f32 %v960_v62, %v862_v63  ;;  %v1084_v1 = vpop.f32.mrb[9].mxu0 }
 0x1f7   :  { %v865_v2 = vpop.f32.mrb[10].mxu0 }
 0x1f8   :  { %v1085_v3 = vpop.f32.mrb[11].mxu0  ;;  %v869_v4 = vsel %vm868_vm1, %v863_v0, -inf }
 0x1f9   :  { %870 = vmax.xlane.f32.xlu0 %v869_v4 }
 0x286   :  { %v871_v5 = vpop.xlane.xlu0 %870 }
 0x287   :  { %v872_v6 = vsub.f32 %v863_v0, %v871_v5 }
 0x289   :  { %v873_v7 = vmul.f32 1.442695, %v872_v6 }
 0x28b   :  { %1164 = vpow2.f32 %v873_v7 }
 0x295   :  { %v1165_v8 = vpop.eup %1164 }
 0x296   :  { %v875_v9 = vsel %vm868_vm1, %v1165_v8, 0.0 }
 0x297   :  { %876 = vadd.xlane.f32.xlu0 %v875_v9 }
 0x324   :  { %v877_v10 = vpop.xlane.xlu0 %876 }
 0x325   :  { %1166 = vrcp.f32 %v877_v10 }
 0x32f   :  { %v1167_v11 = vpop.eup %1166 }
 0x330   :  { %v879_v12 = vmul.f32 %v1167_v11, %v1165_v8 }
 0x332   :  { %880 = vst.msk [vmem:[#allocation2] sm:$0x3] %vm868_vm1, %v879_v12 }
 0x333   :  { %1179 = shalt.err (!%p1176_p4)
}
 0x334   :  { %s1180_s20 = scalar_lea.hbm %s1480_s5, 32 }
 0x335   :  { %p1181_p5 = scmp.ne.s32.totalorder %s1480_s5, %s1180_s20  ;;  %p1184_p6 = scmp.lt.u32.totalorder %s1180_s20, %s1480_s5 }
 0x337   :  { %p1186_p7 = pnand %p1184_p6, %p1181_p5 }
 0x339   :  { %1189 = shalt.err (!%p1186_p7)
}
 0x33a   :  { %890 = dma.vmem_to_hbm [thread:$0]  %s888_s16, 32, %s1480_s5, [#allocation3]  }
 0x33b   :  { %1190 = dma.done.wait [#allocation3], 32  }
 0x33c   :  { %1191 = vsyncadd [#allocation3], 4294967264 }
 0x33d   :  { %894 = vsyncpa [#allocation3], 1 }

// kernel: resnet_forward.4
= control target key start
LH: loop header
LB: loop body
LE: loop exit
PB: predicated region body
PF: predicated region fallthrough
CT: control target
= control target key end

     0   :  { %s6399_s12 = smov 0   ;;  %s8471_s0 = inlined_call_operand.vmem [shape: f32[2,8,8,64], index: 0, kind: input, shape index: {}]   ;;  %s8472_s1 = inlined_call_operand.vmem [shape: bf16[7,256,64], index: 1, kind: input, shape index: {}]   ;;  %s8473_s2 = inlined_call_operand.vmem [shape: f32[1,64], index: 2, kind: input, shape index: {}]   ;;  %s8474_s3 = inlined_call_operand.vmem [shape: f32[2,4,256], index: 3, kind: output, shape index: {}]  }
   0x1 LB: > { %s5054_s13 = sadd.s32 4294967295, %s6375_s12   ;;  %p5058_p0 = scmp.ge.s32.totalorder %s6375_s12, 1  ;;  %s6375_s12 = sphi %s6399_s12, %s13_s12  }
   0x2   : > { %p137_p1 = scmp.lt.s32.totalorder %s6375_s12, 3 }
   0x4   : > { %p138_p2 = pnand %p5058_p0, %p137_p1 }
   0x6   : > { %141 = sbr.rel (%p138_p2) target bundleno = 738 (0x2e2), region = 32 }
   0xd   : > { %vm172_vm0 = vcmask 519168   ;;  %vm174_vm1 = vcmask 517120   ;;  %p6409_p3 = scmp.lt.s32.totalorder %s5054_s13, 1  ;;  %v6377_v0 = vmov 0   ;;  %v6080_v1 = vld [vmem:[%s8472_s1 + $0x40] sm:$0xff]   ;;  %v6084_v3 = vld [vmem:[%s8472_s1 + $0x48] sm:$0xff]  }
   0xe   : > { %176 = vst.msk [vmem:[#allocation2 + $0x8] sm:$0xf] %vm172_vm0, %v6377_v0  ;;  %173 = vst.msk [vmem:[#allocation2] sm:$0xf] %vm172_vm0, %v6377_v0  ;;  %v6081_v2 = vld [vmem:[%s8472_s1] sm:$0xff]   ;;  %5724 = vmatprep.subr.bf16.mxu0 %v6080_v1  ;;  %v6085_v4 = vld [vmem:[%s8472_s1 + $0x8] sm:$0xff]  }
   0xf   : > { %177 = vst.msk [vmem:[#allocation2 + $0xc] sm:$0x3] %vm174_vm1, %v6377_v0  ;;  %175 = vst.msk [vmem:[#allocation2 + $0x4] sm:$0x3] %vm174_vm1, %v6377_v0  ;;  %s8713_s13 = smov (!%p6409_p3, %s5054_s13), 1  ;;  %5725 = vmatpush3.bf16.msra.mxu0 %v6081_v2  ;;  %v6088_v5 = vld [vmem:[%s8472_s1 + $0x50] sm:$0xff]  }
  0x10   : > { %178 = vst.msk [vmem:[#allocation2 + $0x10] sm:$0xf] %vm172_vm0, %v6377_v0  ;;  %180 = vst.msk [vmem:[#allocation2 + $0x18] sm:$0xf] %vm172_vm0, %v6377_v0  ;;  %s5714_s21 = sshll.u32 %s8713_s13, 6  ;;  %5726 = vmatprep.subr.bf16.mxu0 %v6084_v3  ;;  %vm271_vm2 = vcmask 519169  }
  0x11   : > { %179 = vst.msk [vmem:[#allocation2 + $0x14] sm:$0x3] %vm174_vm1, %v6377_v0  ;;  %181 = vst.msk [vmem:[#allocation2 + $0x1c] sm:$0x3] %vm174_vm1, %v6377_v0  ;;  %s6459_s26 = scalar_lea.vmem %s8471_s0, %s5714_s21  ;;  %vm273_vm3 = vcmask 516096   ;;  %s6378_s29 = smov 64  }
  0x12   : > { %182 = vst.msk [vmem:[#allocation2 + $0x20] sm:$0xf] %vm172_vm0, %v6377_v0  ;;  %184 = vst.msk [vmem:[#allocation2 + $0x28] sm:$0xf] %vm172_vm0, %v6377_v0  ;;  %v199_v6 = vld [vmem:[%s6459_s26 + $0x8] sm:$0xff]  ;;  %v198_v7 = vld [vmem:[%s6459_s26] sm:$0xff] }
  0x13   : > { %183 = vst.msk [vmem:[#allocation2 + $0x24] sm:$0x3] %vm174_vm1, %v6377_v0  ;;  %185 = vst.msk [vmem:[#allocation2 + $0x2c] sm:$0x3] %vm174_vm1, %v6377_v0  ;;  %v200_v8 = vld [vmem:[%s6459_s26 + $0x10] sm:$0xff]  ;;  %v201_v9 = vld [vmem:[%s6459_s26 + $0x18] sm:$0xff]  ;;  %v5717_v15 = vpack.c.bf16 %v199_v6, %v199_v6  ;;  %v5716_v16 = vpack.c.bf16 %v198_v7, %v198_v7  ;;  %5727 = vmatpush3.bf16.msra.mxu0 %v6085_v4 }
  0x14   : > { %186 = vst.msk [vmem:[#allocation2 + $0x30] sm:$0xf] %vm172_vm0, %v6377_v0  ;;  %188 = vst.msk [vmem:[#allocation2 + $0x38] sm:$0xf] %vm172_vm0, %v6377_v0  ;;  %v202_v10 = vld [vmem:[%s6459_s26 + $0x20] sm:$0xff]  ;;  %v6470_v11 = vld [vmem:[%s6459_s26 + $0x28] sm:$0xff]  ;;  %v5718_v23 = vpack.c.bf16 %v200_v8, %v200_v8  ;;  %5728 = vmatprep.subr.bf16.mxu0 %v6088_v5  ;;  %v5719_v28 = vpack.c.bf16 %v201_v9, %v201_v9 }
  0x15   : > { %187 = vst.msk [vmem:[#allocation2 + $0x34] sm:$0x3] %vm174_vm1, %v6377_v0  ;;  %189 = vst.msk [vmem:[#allocation2 + $0x3c] sm:$0x3] %vm174_vm1, %v6377_v0  ;;  %v6472_v12 = vld [vmem:[#allocation2 + $0x8] sm:$0xf]  ;;  %v5720_v29 = vpack.c.bf16 %v202_v10, %v202_v10  ;;  %v5721_v30 = vpack.c.bf16 %v6470_v11, %v6470_v11 }
  0x16   : > { %190 = vst.msk [vmem:[#allocation2 + $0x40] sm:$0xf] %vm172_vm0, %v6377_v0  ;;  %192 = vst.msk [vmem:[#allocation2 + $0x48] sm:$0xf] %vm172_vm0, %v6377_v0  ;;  %v6474_v13 = vld [vmem:[#allocation2 + $0xc] sm:$0x1]  ;;  %v5127_v17 = vcombine.low %v6472_v12, %v6472_v12 }
  0x17   : > { %191 = vst.msk [vmem:[#allocation2 + $0x44] sm:$0x3] %vm174_vm1, %v6377_v0  ;;  %193 = vst.msk [vmem:[#allocation2 + $0x4c] sm:$0x3] %vm174_vm1, %v6377_v0  ;;  %v892_v14 = vld [vmem:[#allocation2 + $0x8] sm:$0xe] }
  0x18   : > { %194 = vst.msk [vmem:[#allocation2 + $0x50] sm:$0xf] %vm172_vm0, %v6377_v0  ;;  %196 = vst.msk [vmem:[#allocation2 + $0x58] sm:$0xf] %vm172_vm0, %v6377_v0  ;;  %v5143_v19 = vcombine.low %v892_v14, %v6474_v13  ;;  %v6481_v20 = vld [vmem:[#allocation2] sm:$0xe] }
  0x19   : > { %195 = vst.msk [vmem:[#allocation2 + $0x54] sm:$0x3] %vm174_vm1, %v6377_v0  ;;  %197 = vst.msk [vmem:[#allocation2 + $0x5c] sm:$0x3] %vm174_vm1, %v6377_v0  ;;  %v313_v21 = vld [vmem:[#allocation2 + $0x4] sm:$0x3] }
  0x1a   : > { %8524 = vst [vmem:[#allocation5_spill] sm:$0xff] %v6472_v12  ;;  %8525 = vst [vmem:[#allocation6_spill] sm:$0xff] %v6474_v13  ;;  %v6483_v22 = vld [vmem:[#allocation2 + $0x8] sm:$0xe]  ;;  %v5087_v24 = vcombine.low %v6481_v20, %v313_v21  ;;  %v314_v25 = vld [vmem:[#allocation2 + $0xc] sm:$0x3] }
  0x1b   : > { %8526 = vst [vmem:[#allocation7_spill] sm:$0xff] %v6481_v20  ;;  %8527 = vst [vmem:[#allocation8_spill] sm:$0xff] %v6483_v22  ;;  %v289_v26 = vld [vmem:[#allocation2] sm:$0xf]  ;;  %v6486_v27 = vld [vmem:[#allocation2 + $0x4] sm:$0x1]  ;;  %v5088_v34 = vcombine.low %v6483_v22, %v314_v25 }
  0x1c   : > { %8528 = vst [vmem:[#allocation9_spill] sm:$0xff] %v6486_v27  ;;  %v964_v31 = vrot.slane %v5127_v17, 6  ;;  %v1061_v32 = vshrl.u32 %v5143_v19, 16  ;;  %v1063_v33 = vshll.u32 %v5143_v19, 16  ;;  %v290_v35 = vld [vmem:[#allocation2 + $0x8] sm:$0xf]  ;;  %v5071_v38 = vcombine.low %v289_v26, %v6486_v27 }
  0x1d   : > { %v507_v36 = vshrl.u32 %v5087_v24, 16  ;;  %v509_v37 = vshll.u32 %v5087_v24, 16  ;;  %v6492_v39 = vld [vmem:[#allocation2 + $0xc] sm:$0x1]  ;;  %v240_v40 = vrot.slane %v5717_v15, 7  ;;  %v514_v42 = vshrl.u32 %v5088_v34, 16 }
  0x1e   : > { %8529 = vst [vmem:[#allocation10_spill] sm:$0xff] %v6492_v39  ;;  %972 = vrot.lane.b32.xlu0 %v964_v31, %s6378_s29  ;;  %v1065_v41 = vrot.slane %v1063_v33, 1  ;;  %v516_v43 = vshll.u32 %v5088_v34, 16  ;;  %v5072_v44 = vcombine.low %v290_v35, %v6492_v39  ;;  %v6089_v45 = vld [vmem:[%s8472_s1 + $0x10] sm:$0xff]   ;;  %v362_v47 = vshrl.u32 %v5071_v38, 16  ;;  %v6092_v55 = vld [vmem:[%s8472_s1 + $0x58] sm:$0xff]  }
  0x1f   : > { %v511_v46 = vrot.slane %v509_v37, 1  ;;  %v364_v48 = vshll.u32 %v5071_v38, 16  ;;  %275 = vst.msk [vmem:[#allocation2 + $0x18] sm:$0xe] %vm271_vm2, %v240_v40  ;;  %v241_v49 = vrot.slane %v240_v40, 4  ;;  %v204_v50 = vld [vmem:[%s6459_s26 + $0x30] sm:$0xff]  ;;  %5729 = vmatpush3.bf16.msra.mxu0 %v6089_v45 }
  0x20   : > { %v1066_v51 = vor.u32 %v1065_v41, %v1061_v32  ;;  %v518_v52 = vrot.slane %v516_v43, 1  ;;  %v369_v53 = vshrl.u32 %v5072_v44, 16  ;;  %v371_v54 = vshll.u32 %v5072_v44, 16  ;;  %v6093_v60 = vld [vmem:[%s8472_s1 + $0x18] sm:$0xff]   ;;  %5730 = vmatprep.subr.bf16.mxu0 %v6092_v55  ;;  %v6096_v1 = vld [vmem:[%s8472_s1 + $0x60] sm:$0xff]  }
  0x21   : > { %v512_v56 = vor.u32 %v511_v46, %v507_v36  ;;  %v366_v57 = vrot.slane %v364_v48, 1  ;;  %v238_v58 = vrot.slane %v5716_v16, 7  ;;  %276 = vst.msk [vmem:[#allocation2 + $0x1c] sm:$0x1] %vm273_vm3, %v241_v49  ;;  %v242_v59 = vrot.slane %v5718_v23, 7  ;;  %v6097_v6 = vld [vmem:[%s8472_s1 + $0xc0] sm:$0xff]  }
  0x22   : > { %1116 = vrot.lane.b32.xlu0 %v1066_v51, %s6378_s29  ;;  %v519_v61 = vor.u32 %v518_v52, %v514_v42  ;;  %v373_v62 = vrot.slane %v371_v54, 1  ;;  %v244_v63 = vrot.slane %v5719_v28, 7  ;;  %v246_v0 = vrot.slane %v5720_v29, 7  ;;  %5764 = vmatprep.subr.bf16.mxu1 %v6097_v6  ;;  %v6099_v11 = vld [vmem:[%s8472_s1 + $0x20] sm:$0xff]   ;;  %v6103_v52 = vld [vmem:[%s8472_s1 + $0x68] sm:$0xff]   ;;  %v6734_v18 = vld [vmem:[%s6459_s26 + $0x38] sm:$0xff] }
  0x23   : > { %562 = vrot.lane.b32.xlu1 %v512_v56, %s6378_s29  ;;  %v367_v2 = vor.u32 %v366_v57, %v362_v47  ;;  %272 = vst.msk [vmem:[#allocation2 + $0x10] sm:$0xe] %vm271_vm2, %v238_v58  ;;  %v239_v3 = vrot.slane %v238_v58, 4  ;;  %v243_v4 = vrot.slane %v242_v59, 4  ;;  %277 = vst.msk [vmem:[#allocation2 + $0x20] sm:$0xe] %vm271_vm2, %v242_v59  ;;  %v5722_v9 = vpack.c.bf16 %v204_v50, %v204_v50 }
  0x24   : > { %v248_v5 = vrot.slane %v5721_v30, 7  ;;  %v245_v7 = vrot.slane %v244_v63, 4  ;;  %279 = vst.msk [vmem:[#allocation2 + $0x28] sm:$0xe] %vm271_vm2, %v244_v63  ;;  %v247_v8 = vrot.slane %v246_v0, 4  ;;  %5731 = vmatpush3.bf16.msra.mxu0 %v6093_v60  ;;  %v374_v19 = vor.u32 %v373_v62, %v369_v53  ;;  %v6100_v32 = vld [vmem:[%s8472_s1 + $0x80] sm:$0xff]  }
  0x25   : > { %281 = vst.msk [vmem:[#allocation2 + $0x30] sm:$0xe] %vm271_vm2, %v246_v0  ;;  %5732 = vmatprep.subr.bf16.mxu0 %v6096_v1  ;;  %v6539_v23 = vrot.slane %v5722_v9, 7  ;;  %5765 = vmatpush3.bf16.msra.mxu1 %v6100_v32  ;;  %vm433_vm4 = vcmask 523264   ;;  %vm1268_vm5 = vcmask 1041408   ;;  %vm1269_vm6 = vcmask 1045508  }
  0x26   : > { %274 = vst.msk [vmem:[#allocation2 + $0x14] sm:$0x1] %vm273_vm3, %v239_v3  ;;  %278 = vst.msk [vmem:[#allocation2 + $0x24] sm:$0x1] %vm273_vm3, %v243_v4  ;;  %v249_v10 = vrot.slane %v248_v5, 4  ;;  %417 = vrot.lane.b32.xlu0 %v367_v2, %s6378_s29  ;;  %vm2767_vm11 = vcmask 1042432  }
  0x27   : > { %283 = vst.msk [vmem:[#allocation2 + $0x38] sm:$0xe] %vm271_vm2, %v248_v5  ;;  %v6529_v15 = vld [vmem:[#allocation2 + $0x18] sm:$0xf]  ;;  %564 = vrot.lane.b32.xlu1 %v519_v61, %s6378_s29  ;;  %285 = vst.msk [vmem:[#allocation2 + $0x40] sm:$0xe] %vm271_vm2, %v6539_v23 }
  0x28   : > { %8530 = vst [vmem:[#allocation11_spill] sm:$0xff] %v6529_v15  ;;  %v894_v16 = vld [vmem:[#allocation2 + $0x18] sm:$0xe]  ;;  %280 = vst.msk [vmem:[#allocation2 + $0x2c] sm:$0x1] %vm273_vm3, %v245_v7  ;;  %v5129_v21 = vcombine.low %v6529_v15, %v6529_v15  ;;  %5733 = vmatpush3.bf16.msra.mxu0 %v6099_v11  ;;  %vm2768_vm12 = vcmask 1046532  }
  0x29   : > { %282 = vst.msk [vmem:[#allocation2 + $0x34] sm:$0x1] %vm273_vm3, %v247_v8  ;;  %284 = vst.msk [vmem:[#allocation2 + $0x3c] sm:$0x1] %vm273_vm3, %v249_v10  ;;  %v6541_v24 = vld [vmem:[#allocation2 + $0x1c] sm:$0x1]  ;;  %5734 = vmatprep.subr.bf16.mxu0 %v6103_v52 }
  0x2a   : > { %8531 = vst [vmem:[#allocation12_spill] sm:$0xff] %v6541_v24  ;;  %v6543_v25 = vld [vmem:[#allocation2 + $0x18] sm:$0xe]  ;;  %v316_v26 = vld [vmem:[#allocation2 + $0x1c] sm:$0x3]  ;;  %v966_v28 = vrot.slane %v5129_v21, 6  ;;  %v5145_v29 = vcombine.low %v894_v16, %v6541_v24  ;;  %vm7405_vm7 = vmor %vm1268_vm5, %vm1269_vm6 }
  0x2b   : > { %v292_v30 = vld [vmem:[#allocation2 + $0x18] sm:$0xf]  ;;  %v6546_v31 = vld [vmem:[#allocation2 + $0x1c] sm:$0x1]  ;;  %v6553_v33 = vld [vmem:[#allocation2 + $0x10] sm:$0xf]  ;;  %419 = vrot.lane.b32.xlu1 %v374_v19, %s6378_s29  ;;  %v6568_v43 = vcombine.low %v6543_v25, %v316_v26 }
  0x2c   : > { %8532 = vst [vmem:[#allocation13_spill] sm:$0xff] %v6546_v31  ;;  %v893_v34 = vld [vmem:[#allocation2 + $0x10] sm:$0xe]  ;;  %v6555_v35 = vld [vmem:[#allocation2 + $0x20] sm:$0xf]  ;;  %976 = vrot.lane.b32.xlu0 %v966_v28, %s6378_s29  ;;  %v5128_v37 = vcombine.low %v6553_v33, %v6553_v33  ;;  %v1077_v40 = vshll.u32 %v5145_v29, 16  ;;  %v6576_v51 = vcombine.low %v292_v30, %v6546_v31  ;;  %vm8005_vm13 = vmor %vm2767_vm11, %vm2768_vm12 }
  0x2d   : > { %v5130_v38 = vcombine.low %v6555_v35, %v6555_v35  ;;  %v895_v41 = vld [vmem:[#allocation2 + $0x20] sm:$0xe]  ;;  %v6565_v42 = vld [vmem:[#allocation2 + $0x10] sm:$0xe]  ;;  %v6570_v44 = vld [vmem:[#allocation2 + $0x14] sm:$0x1] }
  0x2e   : > { %8533 = vst [vmem:[#allocation14_spill] sm:$0xff] %v6565_v42  ;;  %v6572_v45 = vld [vmem:[#allocation2 + $0x24] sm:$0x1]  ;;  %v315_v46 = vld [vmem:[#allocation2 + $0x14] sm:$0x3]  ;;  %v965_v47 = vrot.slane %v5128_v37, 6  ;;  %v5144_v48 = vcombine.low %v893_v34, %v6570_v44 }
  0x2f   : > { %8534 = vst [vmem:[#allocation15_spill] sm:$0xff] %v6572_v45  ;;  %v1075_v49 = vshrl.u32 %v5145_v29, 16  ;;  %v291_v50 = vld [vmem:[#allocation2 + $0x10] sm:$0xf]  ;;  %v967_v53 = vrot.slane %v5130_v38, 6  ;;  %v1079_v54 = vrot.slane %v1077_v40, 1  ;;  %v5146_v55 = vcombine.low %v895_v41, %v6572_v45 }
  0x30   : > { %v5089_v56 = vcombine.low %v6565_v42, %v315_v46  ;;  %v6583_v57 = vld [vmem:[#allocation2 + $0x14] sm:$0x1]  ;;  %974 = vrot.lane.b32.xlu1 %v965_v47, %s6378_s29  ;;  %v1068_v58 = vshrl.u32 %v5144_v48, 16  ;;  %v1070_v59 = vshll.u32 %v5144_v48, 16  ;;  %v528_v60 = vshrl.u32 %v6568_v43, 16  ;;  %v6104_v30 = vld [vmem:[%s8472_s1 + $0xc8] sm:$0xff]  }
  0x31   : > { %8535 = vst [vmem:[#allocation16_spill] sm:$0xff] %v6583_v57  ;;  %v530_v61 = vshll.u32 %v6568_v43, 16  ;;  %v1082_v62 = vshrl.u32 %v5146_v55, 16  ;;  %v1084_v63 = vshll.u32 %v5146_v55, 16  ;;  %v6589_v0 = vcombine.low %v291_v50, %v6583_v57  ;;  %v6591_v1 = vld [vmem:[#allocation2 + $0x2c] sm:$0x1]  ;;  %5766 = vmatprep.subr.bf16.mxu1 %v6104_v30 }
  0x32   : > { %8536 = vst [vmem:[#allocation17_spill] sm:$0xff] %v6591_v1  ;;  %v896_v2 = vld [vmem:[#allocation2 + $0x28] sm:$0xe]  ;;  %v1072_v3 = vrot.slane %v1070_v59, 1  ;;  %v523_v4 = vshll.u32 %v5089_v56, 16  ;;  %v385_v10 = vshll.u32 %v6576_v51, 16  ;;  %v1080_v32 = vor.u32 %v1079_v54, %v1075_v49 }
  0x33   : > { %v6593_v5 = vld [vmem:[#allocation2 + $0x34] sm:$0x1]  ;;  %v897_v6 = vld [vmem:[#allocation2 + $0x30] sm:$0xe]  ;;  %v1554_v7 = vld [vmem:[#allocation2 + $0xc] sm:$0x3]  ;;  %v6600_v26 = vcombine.low %v896_v2, %v6591_v1 }
  0x34   : > { %8537 = vst [vmem:[#allocation18_spill] sm:$0xff] %v6593_v5  ;;  %v1569_v8 = vld [vmem:[#allocation2 + $0x8] sm:$0xc]  ;;  %v1086_v9 = vrot.slane %v1084_v63, 1  ;;  %v6596_v11 = vld [vmem:[#allocation2 + $0x20] sm:$0xe]  ;;  %v1073_v19 = vor.u32 %v1072_v3, %v1068_v58  ;;  %978 = vrot.lane.b32.xlu1 %v967_v53, %s6378_s29  ;;  %v6609_v38 = vcombine.low %v897_v6, %v6593_v5 }
  0x35   : > { %8538 = vst [vmem:[#allocation19_spill] sm:$0xff] %v6596_v11  ;;  %v317_v16 = vld [vmem:[#allocation2 + $0x24] sm:$0x3]  ;;  %v532_v21 = vrot.slane %v530_v61, 1  ;;  %v6602_v28 = vld [vmem:[#allocation2 + $0x28] sm:$0xe]  ;;  %v6627_v54 = vcombine.low %v1569_v8, %v1554_v7 }
  0x36   : > { %8539 = vst [vmem:[#allocation20_spill] sm:$0xff] %v6602_v28  ;;  %v318_v29 = vld [vmem:[#allocation2 + $0x2c] sm:$0x3]  ;;  %v1087_v34 = vor.u32 %v1086_v9, %v1082_v62  ;;  %v378_v37 = vshll.u32 %v6589_v0, 16  ;;  %1118 = vrot.lane.b32.xlu0 %v1073_v19, %s6378_s29  ;;  %v521_v41 = vshrl.u32 %v5089_v56, 16  ;;  %v525_v43 = vrot.slane %v523_v4, 1 }
  0x37   : > { %v6105_v40 = vld [vmem:[%s8472_s1 + $0x28] sm:$0xff]   ;;  %v383_v46 = vshrl.u32 %v6576_v51, 16  ;;  %v6617_v47 = vcombine.low %v6596_v11, %v317_v16  ;;  %v387_v48 = vrot.slane %v385_v10, 1  ;;  %v1091_v49 = vshll.u32 %v6600_v26, 16  ;;  %v6625_v53 = vld [vmem:[#allocation2 + $0x30] sm:$0xf] }
  0x38   : > { %v6621_v50 = vcombine.low %v6602_v28, %v318_v29  ;;  %v6623_v52 = vld [vmem:[#allocation2 + $0x28] sm:$0xf]  ;;  %8541 = vst [vmem:[#allocation22_spill] sm:$0xff] %v6625_v53  ;;  %5735 = vmatpush3.bf16.msra.mxu0 %v6105_v40  ;;  %1122 = vrot.lane.b32.xlu1 %v1087_v34, %s6378_s29  ;;  %v533_v51 = vor.u32 %v532_v21, %v528_v60  ;;  %v1098_v55 = vshll.u32 %v6609_v38, 16  ;;  %v1577_v56 = vld [vmem:[#allocation2 + $0x10] sm:$0xf] }
  0x39   : > { %8540 = vst [vmem:[#allocation21_spill] sm:$0xff] %v6623_v52  ;;  %v1585_v58 = vld [vmem:[#allocation2 + $0x14] sm:$0x1]  ;;  %v1578_v59 = vld [vmem:[#allocation2 + $0x18] sm:$0xf]  ;;  %v6106_v61 = vld [vmem:[%s8472_s1 + $0x88] sm:$0xff]   ;;  %v526_v60 = vor.u32 %v525_v43, %v521_v41  ;;  %v5131_v10 = vcombine.low %v6623_v52, %v6623_v52  ;;  %v5132_v16 = vcombine.low %v6625_v53, %v6625_v53  ;;  %v388_v30 = vor.u32 %v387_v48, %v383_v46 }
  0x3a   : > { %v376_v62 = vshrl.u32 %v6589_v0, 16  ;;  %v380_v63 = vrot.slane %v378_v37, 1  ;;  %v1586_v2 = vld [vmem:[#allocation2 + $0x1c] sm:$0x1]  ;;  %v6109_v4 = vld [vmem:[%s8472_s1 + $0x70] sm:$0xff]   ;;  %1120 = vrot.lane.b32.xlu0 %v1080_v32, %s6378_s29  ;;  %v1089_v6 = vshrl.u32 %v6600_v26, 16  ;;  %5767 = vmatpush3.bf16.msra.mxu1 %v6106_v61  ;;  %v6649_v19 = vcombine.low %v1577_v56, %v1585_v58 }
  0x3b   : > { %v537_v7 = vshll.u32 %v6617_v47, 16  ;;  %v293_v8 = vld [vmem:[#allocation2 + $0x20] sm:$0xf]  ;;  %v6642_v9 = vld [vmem:[#allocation2 + $0x24] sm:$0x1]  ;;  %v544_v0 = vshll.u32 %v6621_v50, 16  ;;  %5736 = vmatprep.subr.bf16.mxu0 %v6109_v4  ;;  %v6663_v58 = vcombine.low %v1578_v59, %v1586_v2 }
  0x3c   : > { %8542 = vst [vmem:[#allocation23_spill] sm:$0xff] %v6642_v9  ;;  %v294_v21 = vld [vmem:[#allocation2 + $0x28] sm:$0xf]  ;;  %v6651_v29 = vld [vmem:[#allocation2 + $0x2c] sm:$0x1]  ;;  %v6110_v26 = vld [vmem:[%s8472_s1 + $0xd0] sm:$0xff]   ;;  %568 = vrot.lane.b32.xlu1 %v533_v51, %s6378_s29  ;;  %v381_v41 = vor.u32 %v380_v63, %v376_v62 }
  0x3d   : > { %8543 = vst [vmem:[#allocation24_spill] sm:$0xff] %v6651_v29  ;;  %v1093_v32 = vrot.slane %v1091_v49, 1  ;;  %v1096_v34 = vshrl.u32 %v6609_v38, 16  ;;  %v1100_v37 = vrot.slane %v1098_v55, 1  ;;  %v6111_v40 = vld [vmem:[%s8472_s1 + $0x30] sm:$0xff]   ;;  %v535_v43 = vshrl.u32 %v6617_v47, 16  ;;  %5768 = vmatprep.subr.bf16.mxu1 %v6110_v26 }
  0x3e   : > { %v542_v56 = vshrl.u32 %v6621_v50, 16  ;;  %v6665_v61 = vld [vmem:[#allocation2 + $0x3c] sm:$0x1]  ;;  %v898_v4 = vld [vmem:[#allocation2 + $0x38] sm:$0xe]  ;;  %566 = vrot.lane.b32.xlu0 %v526_v60, %s6378_s29  ;;  %v539_v46 = vrot.slane %v537_v7, 1  ;;  %v6669_v38 = vcombine.low %v293_v8, %v6642_v9  ;;  %v6672_v48 = vcombine.low %v294_v21, %v6651_v29  ;;  %5737 = vmatpush3.bf16.msra.mxu0 %v6111_v40 }
  0x3f   : > { %8544 = vst [vmem:[#allocation25_spill] sm:$0xff] %v6665_v61  ;;  %v251_v49 = vrot.slane %v6539_v23, 4  ;;  %v546_v47 = vrot.slane %v544_v0, 1  ;;  %v6675_v50 = vrot.slane %v5131_v10, 6  ;;  %v6677_v51 = vrot.slane %v5132_v16, 6  ;;  %v6112_v0 = vld [vmem:[%s8472_s1 + $0x90] sm:$0xff]  }
  0x40   : > { %v1796_v55 = vshll.u32 %v6649_v19, 16  ;;  %423 = vrot.lane.b32.xlu1 %v388_v30, %s6378_s29  ;;  %v1101_v59 = vor.u32 %v1100_v37, %v1096_v34  ;;  %v6682_v62 = vcombine.low %v898_v4, %v6665_v61  ;;  %v1556_v63 = vld [vmem:[#allocation2 + $0x14] sm:$0x3]  ;;  %v1570_v2 = vld [vmem:[#allocation2 + $0x10] sm:$0xc]  ;;  %v1803_v23 = vshll.u32 %v6663_v58, 16  ;;  %5769 = vmatpush3.bf16.msra.mxu1 %v6112_v0 }
  0x41   : > { %286 = vst.msk [vmem:[#allocation2 + $0x44] sm:$0x1] %vm273_vm3, %v251_v49  ;;  %v6685_v60 = vld [vmem:[#allocation2 + $0x30] sm:$0xe]  ;;  %v319_v7 = vld [vmem:[#allocation2 + $0x34] sm:$0x3]  ;;  %v1094_v10 = vor.u32 %v1093_v32, %v1089_v6  ;;  %v540_v37 = vor.u32 %v539_v46, %v535_v43  ;;  %v547_v40 = vor.u32 %v546_v47, %v542_v56  ;;  %v6707_v17 = vcombine.low %v1570_v2, %v1556_v63 }
  0x42   : > { %8545 = vst [vmem:[#allocation26_spill] sm:$0xff] %v6685_v60  ;;  %v6688_v8 = vld [vmem:[#allocation2 + $0x38] sm:$0xe]  ;;  %421 = vrot.lane.b32.xlu0 %v381_v41, %s6378_s29  ;;  %v392_v16 = vshll.u32 %v6669_v38, 16  ;;  %v399_v21 = vshll.u32 %v6672_v48, 16  ;;  %v1660_v26 = vshll.u32 %v6627_v54, 16  ;;  %v6710_v43 = vcombine.low %v6685_v60, %v319_v7 }
  0x43   : > { %8546 = vst [vmem:[#allocation27_spill] sm:$0xff] %v6688_v8  ;;  %v320_v30 = vld [vmem:[#allocation2 + $0x3c] sm:$0x3]  ;;  %v1801_v49 = vshrl.u32 %v6663_v58, 16  ;;  %v899_v36 = vld [vmem:[#allocation2 + $0x40] sm:$0xe] }
  0x44   : > { %v6115_v34 = vld [vmem:[%s8472_s1 + $0x78] sm:$0xff]   ;;  %1126 = vrot.lane.b32.xlu1 %v1101_v59, %s6378_s29  ;;  %v1798_v32 = vrot.slane %v1796_v55, 1  ;;  %v1105_v41 = vshll.u32 %v6682_v62, 16  ;;  %v1805_v46 = vrot.slane %v1803_v23, 1  ;;  %v6720_v59 = vcombine.low %v6688_v8, %v320_v30  ;;  %v6722_v63 = vld [vmem:[#allocation2 + $0x40] sm:$0xf] }
  0x45   : > { %v6116_v6 = vld [vmem:[%s8472_s1 + $0xd8] sm:$0xff]   ;;  %5738 = vmatprep.subr.bf16.mxu0 %v6115_v34  ;;  %8548 = vst [vmem:[#allocation29_spill] sm:$0xff] %v6722_v63  ;;  %v6728_v7 = vrot.slane %v392_v16, 1  ;;  %v401_v0 = vrot.slane %v399_v21, 1  ;;  %v6731_v34 = vrot.slane %v1660_v26, 1  ;;  %v1667_v21 = vshll.u32 %v6707_v17, 16 }
  0x46   : > { %v6712_v56 = vld [vmem:[#allocation2 + $0x38] sm:$0xf]  ;;  %5770 = vmatprep.subr.bf16.mxu1 %v6116_v6  ;;  %1124 = vrot.lane.b32.xlu0 %v1094_v10, %s6378_s29  ;;  %v1579_v14 = vld [vmem:[#allocation2 + $0x20] sm:$0xf]  ;;  %v1587_v3 = vld [vmem:[#allocation2 + $0x24] sm:$0x1]  ;;  %v1806_v39 = vor.u32 %v1805_v46, %v1801_v49 }
  0x47   : > { %8547 = vst [vmem:[#allocation28_spill] sm:$0xff] %v6712_v56  ;;  %v6118_v58 = vld [vmem:[%s8472_s1 + $0x38] sm:$0xff]   ;;  %v5133_v6 = vcombine.low %v6712_v56, %v6712_v56  ;;  %v1580_v47 = vld [vmem:[#allocation2 + $0x28] sm:$0xf]  ;;  %v6741_v10 = vrot.slane %v1105_v41, 1  ;;  %v551_v26 = vshll.u32 %v6710_v43, 16  ;;  %v6760_v24 = vcombine.low %v1579_v14, %v1587_v3 }
  0x48   : > { %v6119_v2 = vld [vmem:[%s8472_s1 + $0x98] sm:$0xff]   ;;  %5739 = vmatpush3.bf16.msra.mxu0 %v6118_v58  ;;  %v6736_v30 = vld [vmem:[#allocation2 + $0x44] sm:$0x1]  ;;  %572 = vrot.lane.b32.xlu1 %v547_v40, %s6378_s29  ;;  %v558_v23 = vshll.u32 %v6720_v59, 16  ;;  %v1588_v55 = vld [vmem:[#allocation2 + $0x2c] sm:$0x1] }
  0x49   : > { %8549 = vst [vmem:[#allocation30_spill] sm:$0xff] %v6736_v30  ;;  %5771 = vmatpush3.bf16.msra.mxu1 %v6119_v2  ;;  %v6744_v16 = vcombine.low %v899_v36, %v6736_v30  ;;  %v6122_v58 = vld [vmem:[%s8472_s1 + $0xe0] sm:$0xff]   ;;  %v5134_v2 = vcombine.low %v6722_v63, %v6722_v63  ;;  %v295_v40 = vld [vmem:[#allocation2 + $0x30] sm:$0xf]  ;;  %8550 = vst [vmem:[#allocation31_spill] sm:$0xff] %v6760_v24  ;;  %v6765_v27 = vrot.slane %v5133_v6, 6 }
  0x4a   : > { %v6124_v36 = vld [vmem:[%s8472_s1 + $0xa0] sm:$0xff]   ;;  %570 = vrot.lane.b32.xlu0 %v540_v37, %s6378_s29  ;;  %v6762_v15 = vld [vmem:[#allocation2 + $0x34] sm:$0x1]  ;;  %5772 = vmatprep.subr.bf16.mxu1 %v6122_v58  ;;  %v296_v20 = vld [vmem:[#allocation2 + $0x38] sm:$0xf]  ;;  %v5723_v37 = vpack.c.bf16 %v6734_v18, %v6734_v18  ;;  %v6774_v3 = vrot.slane %v1667_v21, 1  ;;  %v6778_v49 = vcombine.low %v1580_v47, %v1588_v55 }
  0x4b   : > { %8551 = vst [vmem:[#allocation32_spill] sm:$0xff] %v6762_v15  ;;  %8552 = vst [vmem:[#allocation33_spill] sm:$0xff] %v6765_v27  ;;  %v6767_v13 = vld [vmem:[#allocation2 + $0x3c] sm:$0x1]  ;;  %v1112_v14 = vshll.u32 %v6744_v16, 16  ;;  %v6776_v58 = vrot.slane %v551_v26, 1  ;;  %v6787_v18 = vcombine.low %v295_v40, %v6762_v15 }
  0x4c   : > { %8553 = vst [vmem:[#allocation34_spill] sm:$0xff] %v6767_v13  ;;  %982 = vrot.lane.b32.xlu1 %v6677_v51, %s6378_s29  ;;  %v1558_v46 = vld [vmem:[#allocation2 + $0x1c] sm:$0x3]  ;;  %v8554_v6 = vshrl.u32 %v6649_v19, 16  ;;  %v6782_v22 = vrot.slane %v558_v23, 1  ;;  %v6784_v41 = vrot.slane %v5134_v2, 6  ;;  %v6795_v19 = vcombine.low %v296_v20, %v6767_v13 }
  0x4d   : > { %5773 = vmatpush3.bf16.msra.mxu1 %v6124_v36  ;;  %v1571_v51 = vld [vmem:[#allocation2 + $0x18] sm:$0xc]  ;;  %v1560_v36 = vld [vmem:[#allocation2 + $0x24] sm:$0x3]  ;;  %v1810_v47 = vshll.u32 %v6760_v24, 16  ;;  %v1110_v23 = vshrl.u32 %v6744_v16, 16 }
  0x4e   : > { %v1799_v4 = vor.u32 %v1798_v32, %v8554_v6  ;;  %8555 = vst [vmem:[#allocation35_spill] sm:$0xff] %v6784_v41  ;;  %980 = vrot.lane.b32.xlu0 %v6675_v50, %s6378_s29  ;;  %v1572_v32 = vld [vmem:[#allocation2 + $0x20] sm:$0xc]  ;;  %v1581_v26 = vld [vmem:[#allocation2 + $0x30] sm:$0xf]  ;;  %v6127_v40 = vld [vmem:[%s8472_s1 + $0xe8] sm:$0xff]   ;;  %v6804_v12 = vcombine.low %v1571_v51, %v1558_v46 }
  0x4f   : > { %v1589_v2 = vld [vmem:[#allocation2 + $0x34] sm:$0x1]  ;;  %v8556_v50 = vshrl.u32 %v6672_v48, 16  ;;  %v1114_v21 = vrot.slane %v1112_v14, 1  ;;  %v1582_v55 = vld [vmem:[#allocation2 + $0x38] sm:$0xf]  ;;  %v6810_v27 = vcombine.low %v1572_v32, %v1560_v36  ;;  %5774 = vmatprep.subr.bf16.mxu1 %v6127_v40 }
  0x50   : > { %1851 = vrot.lane.b32.xlu1 %v1806_v39, %s6378_s29  ;;  %v1590_v20 = vld [vmem:[#allocation2 + $0x3c] sm:$0x1]  ;;  %v6129_v16 = vld [vmem:[%s8472_s1 + $0xa8] sm:$0xff]   ;;  %v1817_v24 = vshll.u32 %v6778_v49, 16  ;;  %v2398_v41 = vld [vmem:[#allocation2 + $0x10] sm:$0xe]  ;;  %v6835_v40 = vcombine.low %v1581_v26, %v1589_v2 }
  0x51   : > { %v402_v6 = vor.u32 %v401_v0, %v8556_v50  ;;  %v2414_v8 = vld [vmem:[#allocation2 + $0x14] sm:$0x3]  ;;  %v6812_v13 = vrot.slane %v5723_v37, 7  ;;  %v8557_v48 = vshrl.u32 %v6669_v38, 16  ;;  %v406_v46 = vshll.u32 %v6787_v18, 16  ;;  %5775 = vmatpush3.bf16.msra.mxu1 %v6129_v16  ;;  %v6136_v26 = vld [vmem:[%s8472_s1 + $0xf8] sm:$0xff]  }
  0x52   : > { %1849 = vrot.lane.b32.xlu0 %v1799_v4, %s6378_s29  ;;  %v413_v51 = vshll.u32 %v6795_v19, 16  ;;  %v6823_v36 = vld [vmem:[#allocation2 + $0x18] ss:$0 sps:$4 sm:$0xff]   ;;  %v6132_v37 = vld [vmem:[%s8472_s1 + $0xf0] sm:$0xff]   ;;  %v8558_v32 = vshrl.u32 %v6682_v62, 16  ;;  %v6831_v38 = vrot.slane %v1810_v47, 1  ;;  %v1115_v16 = vor.u32 %v1114_v21, %v1110_v23 }
  0x53   : > { %v395_v0 = vor.u32 %v6728_v7, %v8557_v48  ;;  %v6833_v7 = vld [vmem:[#allocation2 + $0x20] ss:$0 sps:$4 sm:$0xff]   ;;  %287 = vst.msk [vmem:[#allocation2 + $0x48] sm:$0xe] %vm271_vm2, %v6812_v13  ;;  %v6133_v50 = vld [vmem:[%s8472_s1 + $0xb0] sm:$0xff]   ;;  %v1674_v62 = vshll.u32 %v6804_v12, 16  ;;  %v6844_v48 = vcombine.low %v1582_v55, %v1590_v20  ;;  %5776 = vmatprep.subr.bf16.mxu1 %v6132_v37 }
  0x54   : > { %v1108_v4 = vor.u32 %v6741_v10, %v8558_v32  ;;  %427 = vrot.lane.b32.xlu1 %v402_v6, %s6378_s29  ;;  %v6846_v10 = vcombine.low %v2398_v41, %v2414_v8  ;;  %v2400_v47 = vld [vmem:[#allocation2 + $0x18] sm:$0xe]  ;;  %v2415_v32 = vld [vmem:[#allocation2 + $0x1c] sm:$0x3]  ;;  %v6851_v2 = vrot.slane %v1817_v24, 1  ;;  %v1681_v6 = vshll.u32 %v6810_v27, 16 }
  0x55   : > { %v6858_v8 = vrot.slane %v406_v46, 1  ;;  %v6860_v41 = vrot.slane %v413_v51, 1  ;;  %5777 = vmatpush3.bf16.msra.mxu1 %v6133_v50  ;;  %v1824_v37 = vshll.u32 %v6835_v40, 16  ;;  %v6867_v14 = vcombine.low %v2400_v47, %v2415_v32  ;;  %v1562_v21 = vld [vmem:[#allocation2 + $0x2c] sm:$0x3]  ;;  %v6154_v32 = vld [vmem:[%s8472_s1 + $0x140] sm:$0xff]  }
  0x56   : > { %425 = vrot.lane.b32.xlu0 %v395_v0, %s6378_s29  ;;  %5778 = vmatprep.subr.bf16.mxu1 %v6136_v26  ;;  %v6137_v0 = vld [vmem:[%s8472_s1 + $0xb8] sm:$0xff]   ;;  %v8559_v46 = vshrl.u32 %v6707_v17, 16  ;;  %v6876_v50 = vrot.slane %v1674_v62, 1  ;;  %v1831_v23 = vshll.u32 %v6844_v48, 16  ;;  %v2506_v20 = vshll.u32 %v6846_v10, 16  ;;  %v8567_v39 = vld [vmem:[#allocation33_spill] sm:$0xff] }
  0x57   : > { %v1573_v47 = vld [vmem:[#allocation2 + $0x28] sm:$0xc]  ;;  %v8560_v26 = vshrl.u32 %v6627_v54, 16  ;;  %v1564_v62 = vld [vmem:[#allocation2 + $0x34] sm:$0x3]  ;;  %v253_v24 = vrot.slane %v6812_v13, 4  ;;  %5804 = vmatprep.subr.bf16.mxu0 %v6154_v32 }
  0x58   : > { %1130 = vrot.lane.b32.xlu1 %v1115_v16, %s6378_s29  ;;  %v1670_v51 = vor.u32 %v6774_v3, %v8559_v46  ;;  %v8561_v16 = vshrl.u32 %v6720_v59, 16  ;;  %v6889_v3 = vrot.slane %v1681_v6, 1  ;;  %v1574_v46 = vld [vmem:[#allocation2 + $0x30] sm:$0xc]  ;;  %v2513_v13 = vshll.u32 %v6867_v14, 16 }
  0x59   : > { %v1663_v55 = vor.u32 %v6731_v34, %v8560_v26  ;;  %v6899_v34 = vrot.slane %v1824_v37, 1  ;;  %288 = vst.msk [vmem:[#allocation2 + $0x4c] sm:$0x1] %vm273_vm3, %v253_v24  ;;  %5779 = vmatpush3.bf16.msra.mxu1 %v6137_v0  ;;  %v6908_v26 = vrot.slane %v2506_v20, 1  ;;  %v6912_v37 = vcombine.low %v1574_v46, %v1564_v62  ;;  %v1583_v54 = vld [vmem:[#allocation2 + $0x40] sm:$0xf] }
  0x5a   : > { %v561_v17 = vor.u32 %v6782_v22, %v8561_v16  ;;  %1128 = vrot.lane.b32.xlu0 %v1108_v4, %s6378_s29  ;;  %v6906_v4 = vrot.slane %v1831_v23, 1  ;;  %v6910_v16 = vcombine.low %v1573_v47, %v1562_v21  ;;  %v1591_v59 = vld [vmem:[#allocation2 + $0x44] sm:$0x1]  ;;  %v2402_v22 = vld [vmem:[#allocation2 + $0x20] sm:$0xe]  ;;  %v8562_v24 = vshrl.u32 %v6710_v43, 16 }
  0x5b   : > { %v2416_v6 = vld [vmem:[#allocation2 + $0x24] sm:$0x3]  ;;  %v6920_v0 = vld [vmem:[#allocation2 + $0x28] ss:$0 sps:$4 sm:$0xff]   ;;  %v2404_v20 = vld [vmem:[#allocation2 + $0x28] sm:$0xe]  ;;  %v6930_v46 = vcombine.low %v1583_v54, %v1591_v59 }
  0x5c   : > { %1715 = vrot.lane.b32.xlu1 %v1670_v51, %s6378_s29  ;;  %v554_v23 = vor.u32 %v6776_v58, %v8562_v24  ;;  %v2417_v21 = vld [vmem:[#allocation2 + $0x2c] sm:$0x3]  ;;  %v6922_v51 = vrot.slane %v2513_v13, 1  ;;  %v6925_v32 = vld [vmem:[#allocation2 + $0x30] ss:$0 sps:$4 sm:$0xff]   ;;  %v1688_v62 = vshll.u32 %v6910_v16, 16  ;;  %v6932_v43 = vcombine.low %v2402_v22, %v2416_v6 }
  0x5d   : > { %v6934_v58 = vcombine.low %v2404_v20, %v2417_v21  ;;  %v8563_v6 = vshrl.u32 %v6778_v49, 16  ;;  %v1575_v21 = vld [vmem:[#allocation2 + $0x38] sm:$0xc]  ;;  %v1838_v49 = vshll.u32 %v6930_v46, 16  ;;  %v1568_v59 = vld [vmem:[#allocation2 + $0x44] sm:$0x3] }
  0x5e   : > { %1713 = vrot.lane.b32.xlu0 %v1663_v55, %s6378_s29  ;;  %v1695_v55 = vshll.u32 %v6912_v37, 16  ;;  %v6956_v47 = vrot.slane %v1688_v62, 1  ;;  %v1576_v60 = vld [vmem:[#allocation2 + $0x40] sm:$0xc]  ;;  %v2406_v13 = vld [vmem:[#allocation2 + $0x30] sm:$0xe] }
  0x5f   : > { %v1820_v20 = vor.u32 %v6851_v2, %v8563_v6  ;;  %v2520_v2 = vshll.u32 %v6932_v43, 16  ;;  %v2527_v6 = vshll.u32 %v6934_v58, 16  ;;  %v6979_v61 = vrot.slane %v1838_v49, 1  ;;  %v3086_v56 = vld [vmem:[#allocation2 + $0x28] sm:$0xc] }
  0x60   : > { %576 = vrot.lane.b32.xlu1 %v561_v17, %s6378_s29  ;;  %v1566_v17 = vld [vmem:[#allocation2 + $0x3c] sm:$0x3]  ;;  %v6961_v22 = vrot.slane %v1695_v55, 1  ;;  %v8570_v55 = vshrl.u32 %v6795_v19, 16  ;;  %v8571_v19 = vshrl.u32 %v6787_v18, 16  ;;  %v8573_v18 = vshrl.u32 %v6804_v12, 16 }
  0x61   : > { %v6971_v54 = vcombine.low %v1575_v21, %v1566_v17  ;;  %v6984_v17 = vrot.slane %v2527_v6, 1  ;;  %v6986_v21 = vld [vmem:[#allocation2 + $0x38] ss:$0 sps:$4 sm:$0xff]   ;;  %v8584_v24 = vshrl.u32 %v6912_v37, 16  ;;  %v8585_v37 = vshrl.u32 %v6910_v16, 16 }
  0x62   : > { %574 = vrot.lane.b32.xlu0 %v554_v23, %s6378_s29  ;;  %v8566_v23 = vld [vmem:[#allocation35_spill] sm:$0xff]  ;;  %v416_v45 = vor.u32 %v6860_v41, %v8570_v55  ;;  %v409_v41 = vor.u32 %v6858_v8, %v8571_v19  ;;  %v1592_v55 = vld [vmem:[#allocation2 + $0x4c] sm:$0x1]  ;;  %v1677_v8 = vor.u32 %v6876_v50, %v8573_v18  ;;  %v7017_v50 = vld [vmem:[#allocation2 + $0x1c] sm:$0x3]  ;;  %v8593_v1 = vshrl.u32 %v6932_v43, 16 }
  0x63   : > { %v1702_v49 = vshll.u32 %v6971_v54, 16  ;;  %8574 = vst [vmem:[#allocation35_spill] sm:$0xff] %v7017_v50  ;;  %v3084_v18 = vld [vmem:[#allocation2 + $0x18] sm:$0xc]  ;;  %v3087_v16 = vld [vmem:[#allocation2 + $0x30] sm:$0xc] }
  0x64   : > { %986 = vrot.lane.b32.xlu1 %v8566_v23, %s6378_s29  ;;  %v8568_v23 = vld [vmem:[#allocation31_spill] sm:$0xff]  ;;  %v3057_v63 = vld [vmem:[#allocation2 + $0x2c] sm:$0x1]  ;;  %v7109_v9 = vld [vmem:[#allocation2 + $0x28] sm:$0xe]  ;;  %vm4946_vm1 = vcmask 1041409  }
  0x65   : > { %v8569_v62 = vshrl.u32 %v8568_v23, 16  ;;  %8588 = vst [vmem:[#allocation39_spill] sm:$0xff] %v7109_v9  ;;  %v3080_v28 = vld [vmem:[#allocation2 + $0x3c] sm:$0x3]  ;;  %v3088_v53 = vld [vmem:[#allocation2 + $0x38] sm:$0xc] }
  0x66   : > { %984 = vrot.lane.b32.xlu0 %v8567_v39, %s6378_s29  ;;  %v6981_v39 = vrot.slane %v2520_v2, 1  ;;  %v8572_v2 = vshrl.u32 %v6810_v27, 16  ;;  %v8575_v27 = vshrl.u32 %v6844_v48, 16  ;;  %v7039_v48 = vld [vmem:[#allocation2 + $0x24] sm:$0x3]  ;;  %vm4949_vm2 = vcmask 1042434  }
  0x67   : > { %v1813_v15 = vor.u32 %v6831_v38, %v8569_v62  ;;  %v6994_v62 = vcombine.low %v1576_v60, %v1568_v59  ;;  %v7006_v59 = vld [vmem:[#allocation2 + $0x40] ss:$0 sps:$4 sm:$0xff]   ;;  %8577 = vst [vmem:[#allocation33_spill] sm:$0xff] %v7039_v48  ;;  %v3081_v57 = vld [vmem:[#allocation2 + $0x44] sm:$0x3]  ;;  %vm4952_vm3 = vcmask 1043459  }
  0x68   : > { %1855 = vrot.lane.b32.xlu1 %v1820_v20, %s6378_s29  ;;  %v1584_v20 = vld [vmem:[#allocation2 + $0x48] sm:$0xf]  ;;  %v1684_v6 = vor.u32 %v6889_v3, %v8572_v2  ;;  %v2408_v3 = vld [vmem:[#allocation2 + $0x38] sm:$0xe]  ;;  %v2419_v2 = vld [vmem:[#allocation2 + $0x3c] sm:$0x3]  ;;  %v1834_v19 = vor.u32 %v6906_v4, %v8575_v27  ;;  %v2523_v52 = vor.u32 %v6981_v39, %v8593_v1 }
  0x69   : > { %v1709_v60 = vshll.u32 %v6994_v62, 16  ;;  %v3085_v4 = vld [vmem:[#allocation2 + $0x20] sm:$0xc]  ;;  %v8578_v27 = vrot.slane %v6823_v36, 6  ;;  %v3061_v1 = vld [vmem:[#allocation2 + $0x3c] sm:$0x1] }
  0x6a   : > { %1853 = vrot.lane.b32.xlu0 %v1813_v15, %s6378_s29  ;;  %v2418_v15 = vld [vmem:[#allocation2 + $0x34] sm:$0x3]  ;;  %v3072_v39 = vld [vmem:[#allocation2 + $0x38] sm:$0xe]  ;;  %vm2001_vm8 = vsmask.f32 2304 }
  0x6b   : > { %v7015_v12 = vcombine.low %v2406_v13, %v2418_v15  ;;  %v8576_v13 = vrot.slane %v6833_v7, 6  ;;  %vm2002_vm9 = vsmask.f32 6416  ;;  %vm3468_vm14 = vsmask.f32 3328 }
  0x6c   : > { %431 = vrot.lane.b32.xlu1 %v416_v45, %s6378_s29  ;;  %v7008_v45 = vcombine.low %v1584_v20, %v1592_v55  ;;  %v7020_v20 = vrot.slane %v1702_v49, 1  ;;  %v7022_v55 = vrot.slane %v1709_v60, 1  ;;  %v7034_v49 = vcombine.low %v2408_v3, %v2419_v2  ;;  %v7050_v2 = vld [vmem:[#allocation2 + $0x18] sm:$0xe]  ;;  %vm7833_vm10 = vmor %vm2001_vm8, %vm2002_vm9 }
  0x6d   : > { %v7037_v60 = vcombine.low %v3084_v18, %v7017_v50  ;;  %8581 = vst [vmem:[#allocation31_spill] sm:$0xff] %v7050_v2  ;;  %vm3469_vm15 = vsmask.f32 7440 }
  0x6e   : > { %429 = vrot.lane.b32.xlu0 %v409_v41, %s6378_s29  ;;  %v6169_v41 = vld [vmem:[%s8472_s1 + $0x1c0] sm:$0xff]   ;;  %v1843_v23 = vshrl.u32 %v7008_v45, 16  ;;  %v2541_v38 = vshll.u32 %v7034_v49, 16  ;;  %vm8176_vm0 = vmor %vm3468_vm14, %vm3469_vm15 }
  0x6f   : > { %5844 = vmatprep.subr.bf16.mxu1 %v6169_v41  ;;  %v3053_v41 = vld [vmem:[#allocation2 + $0x1c] sm:$0x1]  ;;  %v3303_v36 = vshll.u32 %v7037_v60, 16 }
  0x70   : > { %1719 = vrot.lane.b32.xlu1 %v1684_v6, %s6378_s29  ;;  %v1845_v6 = vshll.u32 %v7008_v45, 16  ;;  %v8579_v45 = vshrl.u32 %v6835_v40, 16  ;;  %v7056_v40 = vld [vmem:[#allocation2 + $0x20] sm:$0xe] }
  0x71   : > { %8582 = vst [vmem:[#allocation36_spill] sm:$0xff] %v7056_v40 }
  0x72   : > { %1717 = vrot.lane.b32.xlu0 %v1677_v8, %s6378_s29  ;;  %v2534_v8 = vshll.u32 %v7015_v12, 16  ;;  %v1827_v7 = vor.u32 %v6899_v34, %v8579_v45  ;;  %v1847_v18 = vrot.slane %v1845_v6, 1  ;;  %v2410_v34 = vld [vmem:[#allocation2 + $0x40] sm:$0xe]  ;;  %v7063_v45 = vcombine.low %v3085_v4, %v7039_v48  ;;  %v2420_v6 = vld [vmem:[#allocation2 + $0x44] sm:$0x3] }
  0x73   : > { %v7078_v4 = vld [vmem:[#allocation2 + $0x48] ss:$0 sps:$4 sm:$0xff]  }
  0x74   : > { %2657 = vrot.lane.b32.xlu1 %v8576_v13, %s6378_s29  ;;  %v8580_v13 = vshrl.u32 %v6867_v14, 16  ;;  %v8583_v14 = vshrl.u32 %v6846_v10, 16  ;;  %v7075_v10 = vrot.slane %v2541_v38, 1 }
  0x76   : > { %2655 = vrot.lane.b32.xlu0 %v8578_v27, %s6378_s29  ;;  %v2516_v3 = vor.u32 %v6922_v51, %v8580_v13  ;;  %v3055_v27 = vld [vmem:[#allocation2 + $0x24] sm:$0x1]  ;;  %v2509_v51 = vor.u32 %v6908_v26, %v8583_v14  ;;  %v7068_v13 = vrot.slane %v2534_v8, 1  ;;  %v7080_v14 = vrot.slane %v3303_v36, 1  ;;  %v7083_v8 = vld [vmem:[#allocation2 + $0x50] ss:$0 sps:$4 sm:$0xff]  }
  0x77   : > { %v7086_v15 = vcombine.low %v7056_v40, %v3055_v27  ;;  %v2412_v36 = vld [vmem:[#allocation2 + $0x48] sm:$0xe]  ;;  %v2421_v26 = vld [vmem:[#allocation2 + $0x4c] sm:$0x3] }
  0x78   : > { %1859 = vrot.lane.b32.xlu1 %v1834_v19, %s6378_s29  ;;  %v7066_v19 = vcombine.low %v7050_v2, %v3053_v41  ;;  %v7096_v41 = vld [vmem:[#allocation2 + $0x2c] sm:$0x3]  ;;  %v7107_v30 = vcombine.low %v2412_v36, %v2421_v26  ;;  %v3850_v36 = vld [vmem:[#allocation2 + $0x20] sm:$0xe] }
  0x79   : > { %8586 = vst [vmem:[#allocation37_spill] sm:$0xff] %v7096_v41  ;;  %v3166_v27 = vshll.u32 %v7086_v15, 16  ;;  %v7113_v11 = vcombine.low %v3086_v56, %v7096_v41  ;;  %v8615_v2 = vld [vmem:[#allocation9_spill] sm:$0xff] }
  0x7a   : > { %1857 = vrot.lane.b32.xlu0 %v1827_v7, %s6378_s29  ;;  %v1698_v7 = vor.u32 %v6961_v22, %v8584_v24  ;;  %v1691_v24 = vor.u32 %v6956_v47, %v8585_v37  ;;  %v3310_v22 = vshll.u32 %v7063_v45, 16  ;;  %v3159_v38 = vshll.u32 %v7066_v19, 16 }
  0x7b   : > { %v1848_v47 = vor.u32 %v1847_v18, %v1843_v23  ;;  %v8589_v23 = vrot.slane %v6925_v32, 6  ;;  %v7129_v56 = vrot.slane %v3166_v27, 1  ;;  %v8591_v32 = vshrl.u32 %v6930_v46, 16 }
  0x7c   : > { %2561 = vrot.lane.b32.xlu1 %v2516_v3, %s6378_s29  ;;  %v7088_v3 = vcombine.low %v2410_v34, %v2420_v6  ;;  %v7104_v6 = vrot.slane %v3310_v22, 1  ;;  %v7125_v26 = vrot.slane %v3159_v38, 1  ;;  %v7141_v22 = vld [vmem:[#allocation2 + $0x30] sm:$0xe]  ;;  %v3317_v27 = vshll.u32 %v7113_v11, 16 }
  0x7d   : > { %v3859_v38 = vld [vmem:[#allocation2 + $0x2c] sm:$0x3] }
  0x7e   : > { %2559 = vrot.lane.b32.xlu0 %v2509_v51, %s6378_s29  ;;  %v2548_v34 = vshll.u32 %v7088_v3, 16  ;;  %v7101_v51 = vld [vmem:[#allocation2 + $0x34] sm:$0x3] }
  0x7f   : > { %8587 = vst [vmem:[#allocation38_spill] sm:$0xff] %v7101_v51  ;;  %v7116_v29 = vcombine.low %v3087_v16, %v7101_v51  ;;  %v3059_v16 = vld [vmem:[#allocation2 + $0x34] sm:$0x1]  ;;  %v3862_v51 = vld [vmem:[#allocation2 + $0x44] sm:$0x3] }
  0x80   : > { %1723 = vrot.lane.b32.xlu1 %v1698_v7, %s6378_s29  ;;  %v7131_v37 = vrot.slane %v2548_v34, 1  ;;  %v2555_v7 = vshll.u32 %v7107_v30, 16 }
  0x81   : > { %v3324_v34 = vshll.u32 %v7116_v29, 16 }
  0x82   : > { %1721 = vrot.lane.b32.xlu0 %v1691_v24, %s6378_s29  ;;  %v7119_v24 = vcombine.low %v7109_v9, %v3057_v63  ;;  %v8590_v63 = vrot.slane %v6920_v0, 6  ;;  %v7147_v0 = vcombine.low %v7141_v22, %v3059_v16  ;;  %v3089_v16 = vld [vmem:[#allocation2 + $0x40] sm:$0xc]  ;;  %v7445_v9 = vld [vmem:[#allocation2 + $0xc] sm:$0x3] }
  0x84   : > { %2661 = vrot.lane.b32.xlu1 %v8589_v23, %s6378_s29  ;;  %v1841_v23 = vor.u32 %v6979_v61, %v8591_v32  ;;  %v3173_v18 = vshll.u32 %v7119_v24, 16  ;;  %v8592_v61 = vshrl.u32 %v6934_v58, 16  ;;  %v3851_v32 = vld [vmem:[#allocation2 + $0x28] sm:$0xe]  ;;  %v3180_v43 = vshll.u32 %v7147_v0, 16 }
  0x85   : > { %v7170_v31 = vcombine.low %v3851_v32, %v3859_v38  ;;  %v8596_v38 = vshrl.u32 %v7015_v12, 16  ;;  %v3073_v32 = vld [vmem:[#allocation2 + $0x40] sm:$0xe] }
  0x86   : > { %2659 = vrot.lane.b32.xlu0 %v8590_v63, %s6378_s29  ;;  %v3858_v63 = vld [vmem:[#allocation2 + $0x24] sm:$0x3]  ;;  %v2530_v46 = vor.u32 %v6984_v17, %v8592_v61  ;;  %v8595_v17 = vshrl.u32 %v6994_v62, 16 }
  0x87   : > { %v7156_v5 = vcombine.low %v3850_v36, %v3858_v63  ;;  %v2557_v36 = vrot.slane %v2555_v7, 1  ;;  %v7167_v63 = vrot.slane %v3317_v27, 1  ;;  %v4060_v12 = vshll.u32 %v7170_v31, 16  ;;  %v3860_v7 = vld [vmem:[#allocation2 + $0x34] sm:$0x3] }
  0x88   : > { %1863 = vrot.lane.b32.xlu1 %v1848_v47, %s6378_s29  ;;  %v8594_v47 = vshrl.u32 %v6971_v54, 16  ;;  %v1712_v61 = vor.u32 %v7022_v55, %v8595_v17  ;;  %v7173_v54 = vrot.slane %v3324_v34, 1  ;;  %v7178_v55 = vcombine.low %v3089_v16, %v3081_v57 }
  0x89   : > { %v4053_v27 = vshll.u32 %v7156_v5, 16  ;;  %v7184_v17 = vcombine.low %v3072_v39, %v3061_v1  ;;  %v7190_v34 = vor.u32 %v7068_v13, %v8596_v38  ;;  %v8598_v16 = vshrl.u32 %v7037_v60, 16  ;;  %v3842_v39 = vld [vmem:[#allocation2 + $0x24] sm:$0x1] }
  0x8a   : > { %1861 = vrot.lane.b32.xlu0 %v1841_v23, %s6378_s29  ;;  %v1705_v58 = vor.u32 %v7020_v20, %v8594_v47  ;;  %v7176_v20 = vcombine.low %v3088_v53, %v3080_v28  ;;  %v7180_v47 = vrot.slane %v3173_v18, 1  ;;  %v8597_v28 = vshrl.u32 %v7034_v49, 16  ;;  %v3834_v49 = vld [vmem:[#allocation2 + $0x20] sm:$0xf]  ;;  %v7236_v18 = vld [vmem:[#allocation2 + $0x30] sm:$0xe] }
  0x8b   : > { %v7195_v53 = vrot.slane %v3180_v43, 1  ;;  %v7201_v1 = vor.u32 %v7080_v14, %v8598_v16  ;;  %v3338_v14 = vshll.u32 %v7178_v55, 16  ;;  %v7215_v38 = vcombine.low %v3834_v49, %v3842_v39 }
  0x8c   : > { %2565 = vrot.lane.b32.xlu1 %v2530_v46, %s6378_s29  ;;  %v2544_v57 = vor.u32 %v7075_v10, %v8597_v28  ;;  %v3063_v46 = vld [vmem:[#allocation2 + $0x44] sm:$0x1]  ;;  %v8599_v10 = vshrl.u32 %v7063_v45, 16  ;;  %v3331_v60 = vshll.u32 %v7176_v20, 16  ;;  %v4055_v16 = vrot.slane %v4053_v27, 1 }
  0x8d   : > { %v7205_v13 = vcombine.low %v3073_v32, %v3063_v46  ;;  %v3187_v32 = vshll.u32 %v7184_v17, 16  ;;  %v8601_v49 = vshrl.u32 %v7086_v15, 16  ;;  %v3843_v46 = vld [vmem:[#allocation2 + $0x2c] sm:$0x1]  ;;  %v4062_v45 = vrot.slane %v4060_v12, 1 }
  0x8e   : > { %2563 = vrot.lane.b32.xlu0 %v2523_v52, %s6378_s29  ;;  %v7211_v43 = vor.u32 %v7104_v6, %v8599_v10  ;;  %v3835_v52 = vld [vmem:[#allocation2 + $0x28] sm:$0xf]  ;;  %v8600_v6 = vshrl.u32 %v7066_v19, 16  ;;  %v3909_v19 = vshll.u32 %v7215_v38, 16  ;;  %v8602_v15 = vrot.slane %v7006_v59, 6 }
  0x8f   : > { %v7232_v39 = vor.u32 %v7129_v56, %v8601_v49  ;;  %v3194_v10 = vshll.u32 %v7205_v13, 16  ;;  %v3333_v56 = vrot.slane %v3331_v60, 1  ;;  %v7245_v49 = vcombine.low %v3835_v52, %v3843_v46  ;;  %v7262_v60 = vld [vmem:[#allocation2 + $0x38] sm:$0xe]  ;;  %v3861_v52 = vld [vmem:[#allocation2 + $0x3c] sm:$0x3] }
  0x90   : > { %1727 = vrot.lane.b32.xlu1 %v1712_v61, %s6378_s29  ;;  %v7217_v28 = vpop.permute.xlu0 %972  ;;  %v7227_v61 = vor.u32 %v7125_v26, %v8600_v6  ;;  %v3340_v6 = vrot.slane %v3338_v14, 1  ;;  %v7248_v27 = vcombine.low %v7236_v18, %v3860_v7  ;;  %v8604_v23 = vshrl.u32 %v7107_v30, 16  ;;  %8605 = vst [vmem:[#allocation40_spill] sm:$0xff] %v7262_v60  ;;  %v8607_v14 = vld [vmem:[#allocation5_spill] sm:$0xff]  ;;  %v3090_v59 = vld [vmem:[#allocation2 + $0x48] sm:$0xc] }
  0x91   : > { %v7259_v42 = vrot.slane %v3187_v32, 1  ;;  %v8606_v7 = vrot.slane %v6986_v21, 6  ;;  %v8610_v30 = vshrl.u32 %v7113_v11, 16  ;;  %v7281_v50 = vrot.slane %v3909_v19, 1  ;;  %v3091_v19 = vld [vmem:[#allocation2 + $0x50] sm:$0xc] }
  0x92   : > { %1725 = vrot.lane.b32.xlu0 %v1705_v58, %s6378_s29  ;;  %v8603_v58 = vshrl.u32 %v7088_v3, 16  ;;  %v7257_v26 = vor.u32 %v2557_v36, %v8604_v23  ;;  %v8608_v3 = vld [vmem:[#allocation6_spill] sm:$0xff]  ;;  %v7276_v23 = vrot.slane %v3194_v10, 1  ;;  %v8613_v11 = vshrl.u32 %v7116_v29, 16  ;;  %v8614_v32 = vld [vmem:[#allocation7_spill] sm:$0xff] }
  0x93   : > { %v8609_v46 = vcombine.low %v8607_v14, %v8608_v3  ;;  %v7274_v36 = vor.u32 %v7167_v63, %v8610_v30  ;;  %v6098_v3 = vld [vmem:[#allocation2] sm:$0x3c]   ;;  %v3916_v10 = vshll.u32 %v7245_v49, 16  ;;  %v8616_v48 = vcombine.low %v8614_v32, %v8615_v2 }
  0x94   : > { %2665 = vrot.lane.b32.xlu1 %v8602_v15, %s6378_s29  ;;  %v1117_v12 = vpop.permute.xlu0 %1116  ;;  %v7253_v62 = vor.u32 %v7131_v37, %v8603_v58  ;;  %v7279_v15 = vld [vmem:[#allocation2 + $0x4c] sm:$0x3]  ;;  %v7290_v63 = vor.u32 %v7173_v54, %v8613_v11 }
  0x95   : > { %v1134_v37 = vsel %vm433_vm4, %v8609_v46, %v1117_v12  ;;  %v563_v58 = vpop.permute.xlu1 %562  ;;  %8611 = vst [vmem:[#allocation5_spill] sm:$0xff] %v7279_v15  ;;  %v7284_v12 = vld [vmem:[#allocation2 + $0x54] sm:$0x3]  ;;  %v4067_v46 = vshll.u32 %v7248_v27, 16  ;;  %v7302_v29 = vcombine.low %v3090_v59, %v7279_v15  ;;  %v3065_v54 = vld [vmem:[#allocation2 + $0x4c] sm:$0x1] }
  0x96   : > { %2663 = vrot.lane.b32.xlu0 %v8606_v7, %s6378_s29  ;;  %v1156_v21 = vshrl.u32 %v1134_v37, 16  ;;  %v1159_v7 = vshll.u32 %v1134_v37, 16  ;;  %8612 = vst [vmem:[#allocation6_spill] sm:$0xff] %v7284_v12  ;;  %v7295_v37 = vcombine.low %v7262_v60, %v3861_v52  ;;  %v8617_v52 = vshrl.u32 %v7119_v24, 16  ;;  %v8622_v24 = vld [vmem:[#allocation8_spill] sm:$0xff]  ;;  %v8623_v15 = vld [vmem:[#allocation10_spill] sm:$0xff] }
  0x97   : > { %v8620_v59 = vshrl.u32 %v7170_v31, 16 }
  0x98   : > { %2569 = vrot.lane.b32.xlu1 %v2544_v57, %s6378_s29  ;;  %v1158_v30 = vrot.slane %v1156_v21, 6  ;;  %v1161_v14 = vrot.slane %v1159_v7, 7  ;;  %v580_v57 = vsel %vm433_vm4, %v8616_v48, %v563_v58  ;;  %v7309_v21 = vor.u32 %v7180_v47, %v8617_v52 }
  0x99   : > { %v565_v11 = vpop.permute.xlu1 %564  ;;  %v8618_v7 = vshrl.u32 %v7147_v0, 16  ;;  %v8619_v48 = vshrl.u32 %v7156_v5, 16  ;;  %v7322_v32 = vor.u32 %v4062_v45, %v8620_v59  ;;  %v8624_v47 = vcombine.low %v8622_v24, %v8623_v15  ;;  %v418_v5 = vpop.permute.xlu0 %417  ;;  %v7353_v24 = vld [vmem:[#allocation2 + $0x50] sm:$0xe]  ;;  %v3837_v0 = vld [vmem:[#allocation2 + $0x38] sm:$0xf] }
  0x9a   : > { %2567 = vrot.lane.b32.xlu0 %v7190_v34, %s6378_s29  ;;  %v7324_v34 = vld [vmem:[#allocation2 + $0x48] sm:$0xe]  ;;  %v1162_v40 = vor.u32 %v1161_v14, %v1158_v30  ;;  %v610_v31 = vrot.slane %v580_v57, 1  ;;  %v4074_v45 = vshll.u32 %v7295_v37, 16  ;;  %v3345_v14 = vshll.u32 %v7302_v29, 16  ;;  %8627 = vst [vmem:[#allocation9_spill] sm:$0xff] %v7353_v24 }
  0x9b   : > { %v7314_v2 = vor.u32 %v7195_v53, %v8618_v7  ;;  %v7318_v58 = vor.u32 %v4055_v16, %v8619_v48  ;;  %8621 = vst [vmem:[#allocation7_spill] sm:$0xff] %v7324_v34  ;;  %v583_v52 = vsel %vm433_vm4, %v8624_v47, %v565_v11  ;;  %v7332_v53 = vcombine.low %v3091_v19, %v7284_v12  ;;  %v6293_v30 = vld [vmem:[#allocation2] sm:$0xf]  ;;  %v3067_v57 = vld [vmem:[#allocation2 + $0x54] sm:$0x1] }
  0x9c   : > { %3358 = vrot.lane.b32.xlu1 %v7211_v43, %s6378_s29  ;;  %v611_v16 = vrot.slane %v583_v52, 1  ;;  %v436_v15 = vsel %vm433_vm4, %v6293_v30, %v418_v5  ;;  %v8625_v11 = vshrl.u32 %v7176_v20, 16  ;;  %v8626_v19 = vshrl.u32 %v7178_v55, 16  ;;  %v6155_v43 = vld [vmem:[%s8472_s1 + $0x100] sm:$0xff]   ;;  %v6294_v52 = vld [vmem:[#allocation2 + $0x8] sm:$0xf] }
  0x9d   : > { %v7348_v59 = vcombine.low %v7324_v34, %v3065_v54  ;;  %v990_v47 = vsel %vm433_vm4, %v6098_v3, %v7217_v28  ;;  %v420_v20 = vpop.permute.xlu1 %419  ;;  %v7364_v28 = vld [vmem:[#allocation2 + $0x3c] sm:$0x1] }
  0x9e   : > { %v7341_v7 = vor.u32 %v3333_v56, %v8625_v11  ;;  %v7345_v48 = vor.u32 %v3340_v6, %v8626_v19  ;;  %3356 = vrot.lane.b32.xlu0 %v7201_v1, %s6378_s29  ;;  %v5096_v55 = vcombine.low %v610_v31, %v611_v16  ;;  %v3918_v56 = vrot.slane %v3916_v10, 1  ;;  %v6157_v19 = vld [vmem:[%s8472_s1 + $0x148] sm:$0xff]   ;;  %v3836_v31 = vld [vmem:[#allocation2 + $0x30] sm:$0xf]  ;;  %v7373_v16 = vld [vmem:[#allocation2 + $0x34] sm:$0x1] }
  0x9f   : > { %v4069_v6 = vrot.slane %v4067_v46, 1  ;;  %v439_v54 = vsel %vm433_vm4, %v6294_v52, %v420_v20  ;;  %v5151_v5 = vcombine.low %v990_v47, %v1162_v40  ;;  %v5152_v30 = vcombine.high %v990_v47, %v1162_v40  ;;  %v6117_v47 = vld [vmem:[#allocation2 + $0x10] sm:$0x3c]  }
  0xa0   : > { %v3352_v11 = vshll.u32 %v7332_v53, 16  ;;  %v5095_v3 = vcombine.low %v436_v15, %v439_v54  ;;  %818 = vmatprep.mubr.bf16.mxu0 %v5096_v55  ;;  %v8628_v1 = vrot.slane %v7083_v8, 6  ;;  %v4072_v10 = vshrl.u32 %v7295_v37, 16  ;;  %v7378_v54 = vld [vmem:[#allocation2 + $0x8] sm:$0xe]  ;;  %v977_v37 = vpop.permute.xlu0 %976 }
  0xa1   : > { %v4076_v46 = vrot.slane %v4074_v45, 1  ;;  %v7371_v40 = vcombine.low %v7353_v24, %v3067_v57  ;;  %v3343_v20 = vshrl.u32 %v7302_v29, 16  ;;  %v3347_v52 = vrot.slane %v3345_v14, 1  ;;  %v6123_v45 = vld [vmem:[#allocation2 + $0x8] sm:$0x3c]  }
  0xa2   : > { %2669 = vrot.lane.b32.xlu1 %v8628_v1, %s6378_s29  ;;  %v3350_v15 = vshrl.u32 %v7332_v53, 16  ;;  %v3201_v55 = vshll.u32 %v7348_v59, 16  ;;  %v8629_v8 = vrot.slane %v7078_v4, 6  ;;  %819 = vmatmul.mubr.bf16.vlgmr.msra.gmra.mrb[0].mxu0 %v5095_v3  ;;  %v975_v57 = vpop.permute.xlu1 %974  ;;  %v8630_v1 = vshrl.u32 %v7184_v17, 16  ;;  %v7394_v4 = vld [vmem:[#allocation2 + $0x10] sm:$0xe] }
  0xa3   : > { %v7389_v29 = vcombine.low %v3837_v0, %v7364_v28  ;;  %v7392_v53 = vcombine.low %v3836_v31, %v7373_v16  ;;  %v5167_v14 = vrot.slane %v5151_v5, 10  ;;  %v1273_v12 = vrot.slane %v5152_v30, 6  ;;  %5805 = vmatpush3.bf16.msra.mxu0 %v6155_v43  ;;  %v6158_v3 = vld [vmem:[%s8472_s1 + $0x108] sm:$0xff]  }
  0xa4   : > { %2667 = vrot.lane.b32.xlu0 %v8629_v8, %s6378_s29  ;;  %v7386_v24 = vor.u32 %v7259_v42, %v8630_v1  ;;  %v3354_v34 = vrot.slane %v3352_v11, 1  ;;  %v8633_v0 = vshrl.u32 %v7205_v13, 16  ;;  %v3199_v5 = vshrl.u32 %v7348_v59, 16  ;;  %5806 = vmatprep.subr.bf16.mxu0 %v6157_v19  ;;  %v6163_v59 = vld [vmem:[%s8472_s1 + $0x110] sm:$0xff]   ;;  %v3863_v19 = vld [vmem:[#allocation2 + $0x4c] sm:$0x3] }
  0xa5   : > { %v3203_v30 = vrot.slane %v3201_v55, 1  ;;  %v3208_v11 = vshll.u32 %v7371_v40, 16  ;;  %v8634_v31 = vshrl.u32 %v7215_v38, 16  ;;  %v3930_v13 = vshll.u32 %v7389_v29, 16  ;;  %v7429_v55 = vld [vmem:[#allocation2 + $0x48] sm:$0xe] }
  0xa6   : > { %3214 = vrot.lane.b32.xlu1 %v7232_v39, %s6378_s29  ;;  %v7412_v43 = vor.u32 %v7276_v23, %v8633_v0  ;;  %v6161_v39 = vld [vmem:[%s8472_s1 + $0x150] sm:$0xff]   ;;  %v3923_v23 = vshll.u32 %v7392_v53, 16  ;;  %v979_v38 = vpop.permute.xlu1 %978  ;;  %v7443_v41 = vor.u32 %v4076_v46, %v4072_v10  ;;  %v7449_v1 = vld [vmem:[#allocation2 + $0x40] sm:$0xe]  ;;  %v3206_v46 = vshrl.u32 %v7371_v40, 16 }
  0xa7   : > { %v7422_v8 = vor.u32 %v7281_v50, %v8634_v31  ;;  %v8635_v50 = vshrl.u32 %v7245_v49, 16  ;;  %v8636_v31 = vshrl.u32 %v7248_v27, 16  ;;  %v7456_v49 = vsel %vm7405_vm7, %v5167_v14, %v1273_v12  ;;  %5807 = vmatpush3.bf16.msra.mxu0 %v6158_v3  ;;  %v3839_v12 = vld [vmem:[#allocation2 + $0x48] sm:$0xf] }
  0xa8   : > { %3212 = vrot.lane.b32.xlu0 %v7227_v61, %s6378_s29  ;;  %v7452_v61 = vsel %vm433_vm4, %v6117_v47, %v977_v37  ;;  %v7458_v27 = vor.u32 %v3347_v52, %v3343_v20  ;;  %v1119_v10 = vpop.permute.xlu0 %1118  ;;  %v3210_v47 = vrot.slane %v3208_v11, 1  ;;  %v7468_v37 = vld [vmem:[#allocation2 + $0x14] sm:$0x3]  ;;  %5808 = vmatprep.subr.bf16.mxu0 %v6161_v39  ;;  %v8637_v20 = vcombine.low %v6553_v33, %v6570_v44  ;;  %v6128_v44 = vld [vmem:[#allocation2 + $0x18] sm:$0x3c]  }
  0xa9   : > { %v7437_v0 = vor.u32 %v3918_v56, %v8635_v50  ;;  %v7441_v42 = vor.u32 %v4069_v6, %v8636_v31  ;;  %v7460_v56 = vor.u32 %v3354_v34, %v3350_v15  ;;  %v7463_v6 = vsel %vm433_vm4, %v6123_v45, %v975_v57  ;;  %v6166_v34 = vld [vmem:[%s8472_s1 + $0x158] sm:$0xff]   ;;  %v8638_v11 = vld [vmem:[#allocation15_spill] sm:$0xff] }
  0xaa   : > { %2573 = vrot.lane.b32.xlu1 %v7257_v26, %s6378_s29  ;;  %v1137_v52 = vsel %vm433_vm4, %v8637_v20, %v1119_v10  ;;  %v3928_v26 = vshrl.u32 %v7389_v29, 16  ;;  %v7481_v40 = vcombine.low %v7429_v55, %v3863_v19  ;;  %v7484_v15 = vcombine.low %v7449_v1, %v3862_v51  ;;  %v1123_v14 = vpop.permute.xlu1 %1122 }
  0xab   : > { %v1163_v45 = vshrl.u32 %v1137_v52, 16  ;;  %v1166_v57 = vshll.u32 %v1137_v52, 16  ;;  %v7488_v3 = vor.u32 %v3203_v30, %v3199_v5  ;;  %v3921_v33 = vshrl.u32 %v7392_v53, 16  ;;  %5809 = vmatpush3.bf16.msra.mxu0 %v6163_v59  ;;  %v8658_v53 = vld [vmem:[#allocation23_spill] sm:$0xff] }
  0xac   : > { %2571 = vrot.lane.b32.xlu0 %v7253_v62, %s6378_s29  ;;  %v8639_v39 = vcombine.low %v6555_v35, %v8638_v11  ;;  %v7495_v50 = vrot.slane %v3930_v13, 1  ;;  %v7497_v51 = vrot.slane %v3923_v23, 1  ;;  %v6168_v62 = vld [vmem:[%s8472_s1 + $0x118] sm:$0xff]   ;;  %v1121_v10 = vpop.permute.xlu0 %1120  ;;  %5810 = vmatprep.subr.bf16.mxu0 %v6166_v34  ;;  %v6173_v35 = vld [vmem:[%s8472_s1 + $0x160] sm:$0xff]   ;;  %v8640_v13 = vld [vmem:[#allocation11_spill] sm:$0xff]  ;;  %v7512_v11 = vor.u32 %v3210_v47, %v3206_v46 }
  0xad   : > { %v1165_v5 = vrot.slane %v1163_v45, 6  ;;  %v1168_v30 = vrot.slane %v1166_v57, 7  ;;  %v8641_v23 = vld [vmem:[#allocation12_spill] sm:$0xff]  ;;  %v4088_v45 = vshll.u32 %v7481_v40, 16  ;;  %v4081_v57 = vshll.u32 %v7484_v15, 16 }
  0xae   : > { %v1143_v19 = vsel %vm433_vm4, %v8639_v39, %v1123_v14  ;;  %3362 = vrot.lane.b32.xlu1 %v7290_v63, %s6378_s29  ;;  %v8642_v59 = vcombine.low %v8640_v13, %v8641_v23  ;;  %v569_v34 = vpop.permute.xlu1 %568  ;;  %v6174_v13 = vld [vmem:[%s8472_s1 + $0x120] sm:$0xff]   ;;  %v999_v46 = vsel %vm433_vm4, %v6128_v44, %v979_v38 }
  0xaf   : > { %v1177_v20 = vshrl.u32 %v1143_v19, 16  ;;  %v1180_v52 = vshll.u32 %v1143_v19, 16  ;;  %v1169_v39 = vor.u32 %v1168_v30, %v1165_v5  ;;  %5811 = vmatpush3.bf16.msra.mxu0 %v6168_v62 }
  0xb0   : > { %v1140_v14 = vsel %vm433_vm4, %v8642_v59, %v1121_v10  ;;  %3360 = vrot.lane.b32.xlu0 %v7274_v36, %s6378_s29  ;;  %v8643_v10 = vld [vmem:[#allocation13_spill] sm:$0xff]  ;;  %v7527_v59 = vld [vmem:[#allocation2 + $0x4c] sm:$0x1]  ;;  %5812 = vmatprep.subr.bf16.mxu0 %v6173_v35 }
  0xb1   : > { %v1170_v19 = vshrl.u32 %v1140_v14, 16  ;;  %v1173_v60 = vshll.u32 %v1140_v14, 16  ;;  %v1179_v63 = vrot.slane %v1177_v20, 6  ;;  %v1182_v47 = vrot.slane %v1180_v52, 7  ;;  %v567_v14 = vpop.permute.xlu0 %566  ;;  %v8645_v52 = vld [vmem:[#allocation14_spill] sm:$0xff] }
  0xb2   : > { %v8644_v23 = vcombine.low %v6543_v25, %v8643_v10  ;;  %3218 = vrot.lane.b32.xlu1 %v7314_v2, %s6378_s29  ;;  %v5153_v38 = vcombine.low %v7463_v6, %v1169_v39  ;;  %v8646_v25 = vld [vmem:[#allocation16_spill] sm:$0xff]  ;;  %v5154_v62 = vcombine.high %v7463_v6, %v1169_v39  ;;  %v424_v35 = vpop.permute.xlu1 %423  ;;  %v7547_v6 = vcombine.low %v3839_v12, %v7527_v59  ;;  %v6172_v12 = vld [vmem:[%s8472_s1 + $0x180] sm:$0xff]  }
  0xb3   : > { %v1172_v36 = vrot.slane %v1170_v19, 6  ;;  %v1175_v20 = vrot.slane %v1173_v60, 7  ;;  %v1183_v44 = vor.u32 %v1182_v47, %v1179_v63  ;;  %v8647_v10 = vcombine.low %v8645_v52, %v8646_v25  ;;  %v6179_v60 = vld [vmem:[%s8472_s1 + $0x168] sm:$0xff]   ;;  %5813 = vmatpush3.bf16.msra.mxu0 %v6174_v13 }
  0xb4   : > { %v589_v5 = vsel %vm433_vm4, %v8644_v23, %v569_v34  ;;  %v7537_v23 = vrot.slane %v4088_v45, 1  ;;  %3216 = vrot.lane.b32.xlu0 %v7309_v21, %s6378_s29  ;;  %v5168_v2 = vrot.slane %v5153_v38, 10  ;;  %v7544_v63 = vrot.slane %v4081_v57, 1  ;;  %v6180_v45 = vld [vmem:[%s8472_s1 + $0x128] sm:$0xff]   ;;  %5814 = vmatprep.subr.bf16.mxu0 %v6179_v60 }
  0xb5   : > { %v613_v31 = vrot.slane %v589_v5, 1  ;;  %v586_v34 = vsel %vm433_vm4, %v8647_v10, %v567_v14  ;;  %v1176_v19 = vor.u32 %v1175_v20, %v1172_v36  ;;  %v5157_v47 = vcombine.low %v999_v46, %v1183_v44  ;;  %v422_v21 = vpop.permute.xlu0 %421  ;;  %v6297_v20 = vld [vmem:[#allocation2 + $0x18] sm:$0xf]  ;;  %v6176_v10 = vld [vmem:[%s8472_s1 + $0x1c8] sm:$0xff]  }
  0xb6   : > { %v612_v5 = vrot.slane %v586_v34, 1  ;;  %v5158_v52 = vcombine.high %v999_v46, %v1183_v44  ;;  %v1277_v14 = vrot.slane %v5154_v62, 6  ;;  %v445_v57 = vsel %vm433_vm4, %v6297_v20, %v424_v35  ;;  %4108 = vrot.lane.b32.xlu1 %v7322_v32, %s6378_s29  ;;  %v6298_v44 = vld [vmem:[#allocation2 + $0x10] sm:$0xf] }
  0xb7   : > { %v5155_v39 = vcombine.low %v7452_v61, %v1176_v19  ;;  %v5156_v36 = vcombine.high %v7452_v61, %v1176_v19  ;;  %v5170_v13 = vrot.slane %v5157_v47, 10  ;;  %v442_v25 = vsel %vm433_vm4, %v6298_v44, %v422_v21  ;;  %v1127_v19 = vpop.permute.xlu1 %1126  ;;  %v8648_v47 = vld [vmem:[#allocation22_spill] sm:$0xff]  ;;  %5815 = vmatpush3.bf16.msra.mxu0 %v6180_v45  ;;  %v3857_v45 = vld [vmem:[#allocation2 + $0x58] sm:$0xe]  ;;  %v3856_v44 = vld [vmem:[#allocation2 + $0x50] sm:$0xe] }
  0xb8   : > { %v5098_v46 = vcombine.low %v612_v5, %v613_v31  ;;  %v1285_v38 = vrot.slane %v5158_v52, 6  ;;  %v1278_v61 = vsel %vm7405_vm7, %v5168_v2, %v1277_v14  ;;  %4106 = vrot.lane.b32.xlu0 %v7318_v58, %s6378_s29  ;;  %v3838_v5 = vld [vmem:[#allocation2 + $0x40] sm:$0xf]  ;;  %v6185_v2 = vld [vmem:[%s8472_s1 + $0x170] sm:$0xff]   ;;  %v5097_v35 = vcombine.low %v442_v25, %v445_v57  ;;  %v8649_v52 = vld [vmem:[#allocation18_spill] sm:$0xff] }
  0xb9   : > { %v5169_v34 = vrot.slane %v5155_v39, 10  ;;  %v1281_v32 = vrot.slane %v5156_v36, 6  ;;  %v5207_v31 = vcombine.low %v7456_v49, %v1278_v61  ;;  %v5208_v62 = vcombine.high %v7456_v49, %v1278_v61  ;;  %v7582_v49 = vld [vmem:[#allocation2 + $0x44] sm:$0x1]  ;;  %v6186_v36 = vld [vmem:[%s8472_s1 + $0x130] sm:$0xff]   ;;  %v1125_v21 = vpop.permute.xlu0 %1124  ;;  %v6178_v25 = vld [vmem:[%s8472_s1 + $0x188] sm:$0xff]   ;;  %5816 = vmatprep.subr.bf16.mxu0 %v6185_v2 }
  0xba   : > { %826 = vmatprep.mubr.bf16.mxu0 %v5098_v46  ;;  %v8650_v60 = vcombine.low %v8648_v47, %v8649_v52  ;;  %v7579_v58 = vsel %vm7405_vm7, %v5170_v13, %v1285_v38  ;;  %v3944_v39 = vshll.u32 %v7547_v6, 16  ;;  %3366 = vrot.lane.b32.xlu1 %v7345_v48, %s6378_s29  ;;  %v7596_v13 = vor.u32 %v7495_v50, %v3928_v26  ;;  %v3865_v38 = vld [vmem:[#allocation2 + $0x5c] sm:$0x3]  ;;  %v8651_v61 = vld [vmem:[#allocation21_spill] sm:$0xff]  ;;  %v6147_v50 = vld [vmem:[#allocation2 + $0x28] sm:$0x3c]  }
  0xbb   : > { %1496 = vmatprep.mubr.bf16.mxu1 %v5208_v62  ;;  %v7591_v46 = vsel %vm7405_vm7, %v5169_v34, %v1281_v32  ;;  %v8652_v62 = vld [vmem:[#allocation17_spill] sm:$0xff]  ;;  %827 = vmatmul.mubr.bf16.gmra.mrb[4].mxu0 %v5097_v35  ;;  %v3864_v34 = vld [vmem:[#allocation2 + $0x54] sm:$0x3] }
  0xbc   : > { %v1149_v14 = vsel %vm433_vm4, %v8650_v60, %v1127_v19  ;;  %1497 = vmatmul.mubr.bf16.vlgmr.msra.gmra.mrb[0].mxu1 %v5207_v31  ;;  %v8653_v48 = vcombine.low %v8651_v61, %v8652_v62  ;;  %v5210_v29 = vcombine.high %v7591_v46, %v7579_v58  ;;  %v5209_v26 = vcombine.low %v7591_v46, %v7579_v58  ;;  %v6182_v32 = vld [vmem:[%s8472_s1 + $0x1d0] sm:$0xff]   ;;  %v6191_v31 = vld [vmem:[%s8472_s1 + $0x178] sm:$0xff]  }
  0xbd   : > { %v1191_v20 = vshrl.u32 %v1149_v14, 16  ;;  %v1194_v57 = vshll.u32 %v1149_v14, 16  ;;  %3364 = vrot.lane.b32.xlu0 %v7341_v7, %s6378_s29  ;;  %v573_v14 = vpop.permute.xlu1 %572  ;;  %5845 = vmatpush3.bf16.msra.mxu1 %v6172_v12  ;;  %v3841_v58 = vld [vmem:[#allocation2 + $0x58] sm:$0xf]  ;;  %v3849_v7 = vld [vmem:[#allocation2 + $0x5c] sm:$0x1]  ;;  %v571_v12 = vpop.permute.xlu0 %570 }
  0xbe   : > { %v1146_v19 = vsel %vm433_vm4, %v8653_v48, %v1125_v21  ;;  %1504 = vmatprep.mubr.bf16.mxu1 %v5210_v29  ;;  %v8654_v21 = vld [vmem:[#allocation20_spill] sm:$0xff]  ;;  %v7624_v48 = vor.u32 %v7497_v51, %v3921_v33  ;;  %5846 = vmatprep.subr.bf16.mxu1 %v6176_v10  ;;  %v3942_v29 = vshrl.u32 %v7547_v6, 16  ;;  %v6144_v51 = vld [vmem:[#allocation2 + $0x20] sm:$0x3c]   ;;  %v7638_v10 = vcombine.low %v3856_v44, %v3864_v34 }
  0xbf   : > { %v1184_v47 = vshrl.u32 %v1146_v19, 16  ;;  %v1187_v52 = vshll.u32 %v1146_v19, 16  ;;  %v1193_v35 = vrot.slane %v1191_v20, 6  ;;  %v1196_v60 = vrot.slane %v1194_v57, 7  ;;  %v8655_v46 = vld [vmem:[#allocation24_spill] sm:$0xff]  ;;  %3222 = vrot.lane.b32.xlu1 %v7412_v43, %s6378_s29  ;;  %5817 = vmatpush3.bf16.msra.mxu0 %v6186_v36  ;;  %v6184_v36 = vld [vmem:[%s8472_s1 + $0x190] sm:$0xff]  }
  0xc0   : > { %v8656_v61 = vcombine.low %v8654_v21, %v8655_v46  ;;  %v7627_v19 = vcombine.low %v3838_v5, %v7582_v49  ;;  %v3946_v5 = vrot.slane %v3944_v39, 1  ;;  %v7636_v46 = vcombine.low %v3857_v45, %v3865_v38  ;;  %v6188_v45 = vld [vmem:[%s8472_s1 + $0x1d8] sm:$0xff]   ;;  %5818 = vmatprep.subr.bf16.mxu0 %v6191_v31 }
  0xc1   : > { %v1186_v20 = vrot.slane %v1184_v47, 6  ;;  %v1189_v57 = vrot.slane %v1187_v52, 7  ;;  %v6192_v47 = vld [vmem:[%s8472_s1 + $0x138] sm:$0xff]   ;;  %3220 = vrot.lane.b32.xlu0 %v7386_v24, %s6378_s29  ;;  %v1197_v2 = vor.u32 %v1196_v60, %v1193_v35  ;;  %v983_v52 = vpop.permute.xlu1 %982  ;;  %5847 = vmatpush3.bf16.msra.mxu1 %v6178_v25  ;;  %v6214_v24 = vld [vmem:[%s8472_s1 + $0x240] sm:$0xff]   ;;  %v7662_v44 = vcombine.low %v3841_v58, %v3849_v7  ;;  %v981_v25 = vpop.permute.xlu0 %980  ;;  %v3848_v7 = vld [vmem:[#allocation2 + $0x54] sm:$0x1] }
  0xc2   : > { %v595_v62 = vsel %vm433_vm4, %v8656_v61, %v573_v14  ;;  %v8657_v14 = vld [vmem:[#allocation19_spill] sm:$0xff]  ;;  %v8660_v61 = vshrl.u32 %v7481_v40, 16  ;;  %v1005_v38 = vsel %vm433_vm4, %v6147_v50, %v983_v52  ;;  %v3935_v40 = vshrl.u32 %v7627_v19, 16  ;;  %5848 = vmatprep.subr.bf16.mxu1 %v6182_v32 }
  0xc3   : > { %v615_v30 = vrot.slane %v595_v62, 1  ;;  %v8659_v21 = vcombine.low %v8657_v14, %v8658_v53  ;;  %v1190_v6 = vor.u32 %v1189_v57, %v1186_v20  ;;  %v5161_v34 = vcombine.low %v1005_v38, %v1197_v2  ;;  %3964 = vrot.lane.b32.xlu1 %v7437_v0, %s6378_s29  ;;  %v3840_v50 = vld [vmem:[#allocation2 + $0x50] sm:$0xf]  ;;  %v6190_v0 = vld [vmem:[%s8472_s1 + $0x198] sm:$0xff]   ;;  %5819 = vmatpush3.bf16.msra.mxu0 %v6192_v47 }
  0xc4   : > { %v7648_v39 = vor.u32 %v7537_v23, %v8660_v61  ;;  %v3937_v23 = vshll.u32 %v7627_v19, 16  ;;  %v5162_v35 = vcombine.high %v1005_v38, %v1197_v2  ;;  %v8661_v62 = vshrl.u32 %v7484_v15, 16  ;;  %1505 = vmatmul.mubr.bf16.gmra.mrb[4].mxu1 %v5209_v26  ;;  %5884 = vmatprep.subr.bf16.mxu0 %v6214_v24  ;;  %v7689_v2 = vld [vmem:[#allocation2 + $0x18] sm:$0xe] }
  0xc5   : > { %v592_v33 = vsel %vm433_vm4, %v8659_v21, %v571_v12  ;;  %v1002_v57 = vsel %vm433_vm4, %v6144_v51, %v981_v25  ;;  %v7672_v58 = vor.u32 %v3946_v5, %v3942_v29  ;;  %v4102_v32 = vshll.u32 %v7636_v46, 16  ;;  %3962 = vrot.lane.b32.xlu0 %v7422_v8, %s6378_s29  ;;  %v1852_v12 = vpop.permute.xlu1 %1851  ;;  %v6299_v29 = vld [vmem:[#allocation2 + $0x18] sm:$0xf]  ;;  %5849 = vmatpush3.bf16.msra.mxu1 %v6184_v36  ;;  %v6194_v51 = vld [vmem:[%s8472_s1 + $0x1e0] sm:$0xff]   ;;  %v1850_v47 = vpop.permute.xlu0 %1849 }
  0xc6   : > { %v614_v43 = vrot.slane %v592_v33, 1  ;;  %v7669_v20 = vor.u32 %v7544_v63, %v8661_v62  ;;  %v4095_v31 = vshll.u32 %v7638_v10, 16  ;;  %v5159_v15 = vcombine.low %v1002_v57, %v1190_v6  ;;  %5850 = vmatprep.subr.bf16.mxu1 %v6188_v45 }
  0xc7   : > { %v5172_v63 = vrot.slane %v5161_v34, 10  ;;  %v1293_v26 = vrot.slane %v5162_v35, 6  ;;  %v1870_v14 = vsel %vm433_vm4, %v6299_v29, %v1852_v12  ;;  %v3939_v53 = vrot.slane %v3937_v23, 1  ;;  %4112 = vrot.lane.b32.xlu1 %v7443_v41, %s6378_s29  ;;  %v6301_v35 = vld [vmem:[#allocation2 + $0x28] sm:$0xf] }
  0xc8   : > { %v5100_v60 = vcombine.low %v614_v43, %v615_v30  ;;  %v5160_v30 = vcombine.high %v1002_v57, %v1190_v6  ;;  %v4100_v21 = vshrl.u32 %v7636_v46, 16  ;;  %v3958_v33 = vshll.u32 %v7662_v44, 16  ;;  %v6300_v46 = vld [vmem:[#allocation2 + $0x10] sm:$0xf]  ;;  %v7718_v12 = vld [vmem:[#allocation2 + $0x20] sm:$0xe] }
  0xc9   : > { %v5171_v5 = vrot.slane %v5159_v15, 10  ;;  %v1896_v43 = vshrl.u32 %v1870_v14, 16  ;;  %v1899_v6 = vshll.u32 %v1870_v14, 16  ;;  %v1867_v52 = vsel %vm433_vm4, %v6300_v46, %v1850_v47  ;;  %4110 = vrot.lane.b32.xlu0 %v7441_v42, %s6378_s29  ;;  %v428_v25 = vpop.permute.xlu1 %427  ;;  %5851 = vmatpush3.bf16.msra.mxu1 %v6190_v0  ;;  %v426_v42 = vpop.permute.xlu0 %425  ;;  %v7713_v0 = vld [vmem:[#allocation2 + $0x1c] sm:$0x3] }
  0xca   : > { %834 = vmatprep.mubr.bf16.mxu0 %v5100_v60  ;;  %v1289_v8 = vrot.slane %v5160_v30, 6  ;;  %v1294_v61 = vsel %vm7405_vm7, %v5172_v63, %v1293_v26  ;;  %v4093_v36 = vshrl.u32 %v7638_v10, 16  ;;  %v7695_v24 = vcombine.low %v3840_v50, %v3848_v7  ;;  %v6196_v10 = vld [vmem:[%s8472_s1 + $0x1a0] sm:$0xff]   ;;  %5852 = vmatprep.subr.bf16.mxu1 %v6194_v51 }
  0xcb   : > { %v1889_v38 = vshrl.u32 %v1867_v52, 16  ;;  %v1892_v23 = vshll.u32 %v1867_v52, 16  ;;  %v4104_v41 = vrot.slane %v4102_v32, 1  ;;  %v4097_v34 = vrot.slane %v4095_v31, 1  ;;  %3370 = vrot.lane.b32.xlu1 %v7460_v56, %s6378_s29  ;;  %v6302_v31 = vld [vmem:[#allocation2 + $0x20] sm:$0xf] }
  0xcc   : > { %v451_v45 = vsel %vm433_vm4, %v6301_v35, %v428_v25  ;;  %v1290_v60 = vsel %vm7405_vm7, %v5171_v5, %v1289_v8  ;;  %v3956_v62 = vshrl.u32 %v7662_v44, 16  ;;  %v3960_v57 = vrot.slane %v3958_v33, 1  ;;  %v6198_v56 = vld [vmem:[%s8472_s1 + $0x1e8] sm:$0xff]   ;;  %v7727_v33 = vld [vmem:[#allocation2 + $0x10] sm:$0xc]  ;;  %v8662_v51 = vld [vmem:[#allocation29_spill] sm:$0xff] }
  0xcd   : > { %v1898_v50 = vrot.slane %v1896_v43, 6  ;;  %v1901_v7 = vrot.slane %v1899_v6, 7  ;;  %v5212_v15 = vcombine.high %v1290_v60, %v1294_v61  ;;  %v5211_v32 = vcombine.low %v1290_v60, %v1294_v61  ;;  %3368 = vrot.lane.b32.xlu0 %v7458_v27, %s6378_s29  ;;  %v8663_v5 = vld [vmem:[#allocation30_spill] sm:$0xff]  ;;  %v1129_v27 = vpop.permute.xlu0 %1128  ;;  %v8665_v25 = vld [vmem:[#allocation28_spill] sm:$0xff]  ;;  %5853 = vmatpush3.bf16.msra.mxu1 %v6196_v10 }
  0xce   : > { %v448_v30 = vsel %vm433_vm4, %v6302_v31, %v426_v42  ;;  %v7711_v44 = vor.u32 %v3939_v53, %v3935_v40  ;;  %v5233_v63 = vcombine.low %v7689_v2, %v7713_v0  ;;  %v3951_v26 = vshll.u32 %v7695_v24, 16  ;;  %v1131_v40 = vpop.permute.xlu1 %1130  ;;  %v8668_v60 = vld [vmem:[#allocation40_spill] sm:$0xff]  ;;  %5854 = vmatprep.subr.bf16.mxu1 %v6198_v56 }
  0xcf   : > { %v1891_v29 = vrot.slane %v1889_v38, 6  ;;  %v1894_v14 = vrot.slane %v1892_v23, 7  ;;  %v5099_v19 = vcombine.low %v448_v30, %v451_v45  ;;  %1512 = vmatprep.mubr.bf16.mxu1 %v5212_v15  ;;  %v7725_v53 = vor.u32 %v4104_v41, %v4100_v21  ;;  %3226 = vrot.lane.b32.xlu1 %v7512_v11, %s6378_s29  ;;  %v7740_v38 = vld [vmem:[#allocation2 + $0x24] sm:$0x3]  ;;  %v6200_v45 = vld [vmem:[%s8472_s1 + $0x1a8] sm:$0xff]   ;;  %v8679_v56 = vld [vmem:[#allocation32_spill] sm:$0xff] }
  0xd0   : > { %1513 = vmatmul.mubr.bf16.gmra.mrb[8].mxu1 %v5211_v32  ;;  %v8664_v8 = vcombine.low %v8662_v51, %v8663_v5  ;;  %v7733_v43 = vor.u32 %v4097_v34, %v4093_v36  ;;  %v7735_v6 = vor.u32 %v3960_v57, %v3956_v62  ;;  %v3949_v46 = vshrl.u32 %v7695_v24, 16  ;;  %v8666_v36 = vld [vmem:[#allocation25_spill] sm:$0xff]  ;;  %v7759_v15 = vld [vmem:[#allocation2 + $0x14] sm:$0x3]  ;;  %v7827_v24 = vld [vmem:[#allocation2 + $0x18] sm:$0xc] }
  0xd1   : > { %835 = vmatmul.mubr.bf16.gmra.mrb[8].mxu0 %v5099_v19  ;;  %v1902_v21 = vor.u32 %v1901_v7, %v1898_v50  ;;  %v5234_v23 = vcombine.low %v7718_v12, %v7740_v38  ;;  %v8667_v41 = vcombine.low %v8665_v25, %v8666_v36  ;;  %v7748_v35 = vrot.slane %v3951_v26, 1  ;;  %3224 = vrot.lane.b32.xlu0 %v7488_v3, %s6378_s29  ;;  %v6202_v32 = vld [vmem:[%s8472_s1 + $0x1f0] sm:$0xff]   ;;  %v8673_v51 = vld [vmem:[#allocation9_spill] sm:$0xff]  ;;  %v6206_v36 = vld [vmem:[%s8472_s1 + $0x1f8] sm:$0xff]  }
  0xd2   : > { %v1155_v47 = vsel %vm433_vm4, %v8664_v8, %v1131_v40  ;;  %v1895_v7 = vor.u32 %v1894_v14, %v1891_v29  ;;  %v1716_v42 = vpop.permute.xlu1 %1715  ;;  %v5343_v10 = vcombine.low %v7727_v33, %v7759_v15  ;;  %v8669_v30 = vcombine.low %v7394_v4, %v7468_v37  ;;  %v6204_v3 = vld [vmem:[%s8472_s1 + $0x1b0] sm:$0xff]   ;;  %v8670_v29 = vld [vmem:[#allocation5_spill] sm:$0xff]  ;;  %v8672_v40 = vld [vmem:[#allocation6_spill] sm:$0xff]  ;;  %5855 = vmatpush3.bf16.msra.mxu1 %v6200_v45 }
  0xd3   : > { %v1205_v52 = vshrl.u32 %v1155_v47, 16  ;;  %v1208_v61 = vshll.u32 %v1155_v47, 16  ;;  %v1152_v34 = vsel %vm433_vm4, %v8667_v41, %v1129_v27  ;;  %v8671_v14 = vld [vmem:[#allocation7_spill] sm:$0xff]  ;;  %v1714_v47 = vpop.permute.xlu0 %1713  ;;  %3968 = vrot.lane.b32.xlu1 %v7596_v13, %s6378_s29  ;;  %v8674_v37 = vcombine.low %v7378_v54, %v7445_v9  ;;  %v6167_v54 = vld [vmem:[#allocation2 + $0x38] sm:$0x3c]   ;;  %5856 = vmatprep.subr.bf16.mxu1 %v6202_v32  ;;  %v6221_v15 = vld [vmem:[%s8472_s1 + $0x208] sm:$0xff]  }
  0xd4   : > { %v1198_v57 = vshrl.u32 %v1152_v34, 16  ;;  %v1201_v50 = vshll.u32 %v1152_v34, 16  ;;  %v1734_v26 = vsel %vm433_vm4, %v8669_v30, %v1716_v42  ;;  %v8675_v42 = vld [vmem:[#allocation27_spill] sm:$0xff]  ;;  %v8676_v30 = vld [vmem:[#allocation34_spill] sm:$0xff] }
  0xd5   : > { %v1207_v31 = vrot.slane %v1205_v52, 6  ;;  %v1210_v8 = vrot.slane %v1208_v61, 7  ;;  %v5257_v27 = vcombine.low %v1734_v26, %v1902_v21  ;;  %v5258_v52 = vcombine.high %v1734_v26, %v1902_v21  ;;  %3966 = vrot.lane.b32.xlu0 %v7624_v48, %s6378_s29  ;;  %v6162_v61 = vld [vmem:[#allocation2 + $0x30] sm:$0x3c]   ;;  %v7883_v12 = vld [vmem:[#allocation2 + $0x2c] sm:$0x3] }
  0xd6   : > { %v1200_v5 = vrot.slane %v1198_v57, 6  ;;  %v1203_v4 = vrot.slane %v1201_v50, 7  ;;  %v1731_v25 = vsel %vm433_vm4, %v8674_v37, %v1714_v47  ;;  %v577_v9 = vpop.permute.xlu1 %576  ;;  %v8677_v26 = vcombine.low %v8675_v42, %v8676_v30  ;;  %5857 = vmatpush3.bf16.msra.mxu1 %v6204_v3  ;;  %v6203_v33 = vld [vmem:[#allocation2 + $0x50] sm:$0x3c]  }
  0xd7   : > { %v5255_v41 = vcombine.low %v1731_v25, %v1895_v7  ;;  %v5256_v34 = vcombine.high %v1731_v25, %v1895_v7  ;;  %v2023_v13 = vshrl.u32 %v5257_v27, 16  ;;  %v2026_v57 = vshll.u32 %v5257_v27, 16  ;;  %v6207_v7 = vld [vmem:[%s8472_s1 + $0x1b8] sm:$0xff]   ;;  %v575_v48 = vpop.permute.xlu0 %574  ;;  %4116 = vrot.lane.b32.xlu1 %v7648_v39, %s6378_s29  ;;  %5858 = vmatprep.subr.bf16.mxu1 %v6206_v36 }
  0xd8   : > { %v2032_v45 = vshrl.u32 %v5258_v52, 16  ;;  %v2035_v50 = vshll.u32 %v5258_v52, 16  ;;  %v601_v47 = vsel %vm433_vm4, %v8677_v26, %v577_v9  ;;  %v1211_v19 = vor.u32 %v1210_v8, %v1207_v31 }
  0xd9   : > { %v2005_v37 = vshrl.u32 %v5255_v41, 16  ;;  %v2008_v27 = vshll.u32 %v5255_v41, 16  ;;  %v2014_v25 = vshrl.u32 %v5256_v34, 16  ;;  %v2017_v21 = vshll.u32 %v5256_v34, 16  ;;  %4114 = vrot.lane.b32.xlu0 %v7669_v20, %s6378_s29  ;;  %v6232_v34 = vld [vmem:[%s8472_s1 + $0x2c0] sm:$0xff]  }
  0xda   : > { %v2025_v32 = vrot.slane %v2023_v13, 5  ;;  %v2028_v52 = vrot.slane %v2026_v57, 6  ;;  %v2034_v30 = vrot.slane %v2032_v45, 5  ;;  %v1204_v26 = vor.u32 %v1203_v4, %v1200_v5  ;;  %v987_v41 = vpop.permute.xlu1 %986  ;;  %v8678_v57 = vld [vmem:[#allocation26_spill] sm:$0xff]  ;;  %5859 = vmatpush3.bf16.msra.mxu1 %v6207_v7 }
  0xdb   : > { %v2007_v9 = vrot.slane %v2005_v37, 5  ;;  %v2010_v42 = vrot.slane %v2008_v27, 6  ;;  %v2037_v13 = vrot.slane %v2035_v50, 6  ;;  %v8680_v31 = vcombine.low %v8678_v57, %v8679_v56  ;;  %v985_v45 = vpop.permute.xlu0 %984  ;;  %3972 = vrot.lane.b32.xlu1 %v7672_v58, %s6378_s29  ;;  %5924 = vmatprep.subr.bf16.mxu1 %v6232_v34 }
  0xdc   : > { %v2029_v39 = vor.u32 %v2028_v52, %v2025_v32  ;;  %v617_v8 = vrot.slane %v601_v47, 1  ;;  %v7810_v37 = vrot.slane %v2014_v25, 5  ;;  %v2019_v5 = vrot.slane %v2017_v21, 6 }
  0xdd   : > { %v598_v3 = vsel %vm433_vm4, %v8680_v31, %v575_v48  ;;  %v1011_v20 = vsel %vm433_vm4, %v6167_v54, %v987_v41  ;;  %v2011_v36 = vor.u32 %v2010_v42, %v2007_v9  ;;  %v1008_v27 = vsel %vm433_vm4, %v6162_v61, %v985_v45  ;;  %3970 = vrot.lane.b32.xlu0 %v7711_v44, %s6378_s29  ;;  %v6306_v41 = vld [vmem:[#allocation2 + $0x28] sm:$0xf]  ;;  %v6308_v45 = vld [vmem:[#allocation2 + $0x38] sm:$0xf] }
  0xde   : > { %v616_v4 = vrot.slane %v598_v3, 1  ;;  %v5165_v50 = vcombine.low %v1011_v20, %v1211_v19  ;;  %v5166_v32 = vcombine.high %v1011_v20, %v1211_v19  ;;  %v2030_v56 = vrot.slane %v2029_v39, 4  ;;  %v1856_v47 = vpop.permute.xlu1 %1855  ;;  %v6307_v39 = vld [vmem:[#allocation2 + $0x20] sm:$0xf] }
  0xdf   : > { %v5163_v52 = vcombine.low %v1008_v27, %v1204_v26  ;;  %v5164_v48 = vcombine.high %v1008_v27, %v1204_v26  ;;  %v1876_v58 = vsel %vm433_vm4, %v6306_v41, %v1856_v47  ;;  %v3954_v61 = vor.u32 %v7748_v35, %v3949_v46  ;;  %v1854_v9 = vpop.permute.xlu0 %1853  ;;  %4120 = vrot.lane.b32.xlu1 %v7725_v53, %s6378_s29  ;;  %v6187_v27 = vld [vmem:[#allocation2 + $0x28] sm:$0x3c]   ;;  %v6310_v41 = vld [vmem:[#allocation2 + $0x1c] sm:$0x3]  ;;  %v8694_v53 = vld [vmem:[#allocation33_spill] sm:$0xff] }
  0xe0   : > { %v5102_v21 = vcombine.low %v616_v4, %v617_v8  ;;  %v5174_v25 = vrot.slane %v5165_v50, 10  ;;  %v1301_v54 = vrot.slane %v5166_v32, 6  ;;  %v1910_v42 = vshrl.u32 %v1876_v58, 16  ;;  %v7847_v50 = vld [vmem:[#allocation2 + $0x1c] sm:$0x1] }
  0xe1   : > { %v5173_v19 = vrot.slane %v5163_v52, 10  ;;  %v1297_v7 = vrot.slane %v5164_v48, 6  ;;  %v1913_v26 = vshll.u32 %v1876_v58, 16  ;;  %v2012_v44 = vrot.slane %v2011_v36, 4  ;;  %4118 = vrot.lane.b32.xlu0 %v7733_v43, %s6378_s29  ;;  %v7849_v32 = vld [vmem:[#allocation2 + $0x28] sm:$0xe] }
  0xe2   : > { %842 = vmatprep.mubr.bf16.mxu0 %v5102_v21  ;;  %v2038_v34 = vor.u32 %v2037_v13, %v2034_v30  ;;  %v1873_v57 = vsel %vm433_vm4, %v6307_v39, %v1854_v9  ;;  %v1302_v31 = vsel %vm7405_vm7, %v5174_v25, %v1301_v54  ;;  %v1912_v3 = vrot.slane %v1910_v42, 6  ;;  %v432_v4 = vpop.permute.xlu1 %431  ;;  %v7837_v30 = vld [vmem:[#allocation2 + $0x14] sm:$0x1]  ;;  %v6309_v25 = vld [vmem:[#allocation2 + $0x30] sm:$0xf] }
  0xe3   : > { %v1903_v46 = vshrl.u32 %v1873_v57, 16  ;;  %v1906_v35 = vshll.u32 %v1873_v57, 16  ;;  %v1915_v8 = vrot.slane %v1913_v26, 7  ;;  %v2020_v13 = vor.u32 %v2019_v5, %v7810_v37  ;;  %v430_v21 = vpop.permute.xlu0 %429  ;;  %3976 = vrot.lane.b32.xlu1 %v7735_v6, %s6378_s29  ;;  %v6189_v5 = vld [vmem:[#allocation2 + $0x20] sm:$0x3c]  }
  0xe4   : > { %v457_v20 = vsel %vm433_vm4, %v6308_v45, %v432_v4  ;;  %v1298_v36 = vsel %vm7405_vm7, %v5173_v19, %v1297_v7  ;;  %v7845_v43 = vsel %vm7833_vm10, %v2030_v56, %v2038_v34  ;;  %v454_v54 = vsel %vm433_vm4, %v6309_v25, %v430_v21  ;;  %v7859_v19 = vld [vmem:[#allocation2 + $0x10] sm:$0xe]  ;;  %v7865_v6 = vld [vmem:[#allocation2 + $0x20] sm:$0xc]  ;;  %v6193_v39 = vld [vmem:[#allocation2 + $0x48] sm:$0x3c]  }
  0xe5   : > { %v1905_v52 = vrot.slane %v1903_v46, 6  ;;  %v1908_v48 = vrot.slane %v1906_v35, 7  ;;  %v5214_v47 = vcombine.high %v1298_v36, %v1302_v31  ;;  %v5213_v37 = vcombine.low %v1298_v36, %v1302_v31  ;;  %v7863_v9 = vld [vmem:[#allocation2 + $0x30] sm:$0xe]  ;;  %3974 = vrot.lane.b32.xlu0 %v3954_v61, %s6378_s29  ;;  %v7868_v57 = vld [vmem:[#allocation2 + $0x28] sm:$0xc] }
  0xe6   : > { %v7856_v56 = vsel %vm7833_vm10, %v2012_v44, %v2020_v13  ;;  %v5344_v58 = vcombine.low %v7827_v24, %v6310_v41  ;;  %v5101_v42 = vcombine.low %v454_v54, %v457_v20  ;;  %v1916_v34 = vor.u32 %v1915_v8, %v1912_v3  ;;  %v1720_v44 = vpop.permute.xlu1 %1719  ;;  %v7878_v35 = vld [vmem:[#allocation2 + $0x18] sm:$0xe]  ;;  %v6195_v45 = vld [vmem:[#allocation2 + $0x40] sm:$0x3c]   ;;  %v7893_v20 = vld [vmem:[#allocation2 + $0x34] sm:$0x3] }
  0xe7   : > { %v1909_v26 = vor.u32 %v1908_v48, %v1905_v52  ;;  %1520 = vmatprep.mubr.bf16.mxu1 %v5214_v47  ;;  %v1740_v31 = vsel %vm433_vm4, %v5234_v23, %v1720_v44  ;;  %v5303_v24 = vcombine.low %v7856_v56, %v7845_v43  ;;  %v5304_v46 = vcombine.high %v7856_v56, %v7845_v43  ;;  %v1718_v3 = vpop.permute.xlu0 %1717  ;;  %v7887_v23 = vld [vmem:[#allocation2 + $0x24] sm:$0x1]  ;;  %v7901_v48 = vld [vmem:[#allocation2 + $0x2c] sm:$0x3]  ;;  %v6197_v25 = vld [vmem:[#allocation2 + $0x38] sm:$0x3c]  }
  0xe8   : > { %1521 = vmatmul.mubr.bf16.gmra.mrb[12].mxu1 %v5213_v37  ;;  %v5261_v8 = vcombine.low %v1740_v31, %v1916_v34  ;;  %v5262_v4 = vcombine.high %v1740_v31, %v1916_v34  ;;  %843 = vmatmul.mubr.bf16.gmra.mrb[12].mxu0 %v5101_v42  ;;  %v1737_v13 = vsel %vm433_vm4, %v5233_v63, %v1718_v3  ;;  %v7909_v34 = vld [vmem:[#allocation2 + $0x20] sm:$0xe]  ;;  %v7913_v31 = vld [vmem:[#allocation2 + $0x2c] sm:$0x1]  ;;  %v6199_v44 = vld [vmem:[#allocation2 + $0x30] sm:$0x3c]  }
  0xe9   : > { %4478 = vrot.lane.b32.xlu1 %v6187_v27, %s6378_s29  ;;  %2341 = vmatprep.mubr.bf16.mxu0 %v5304_v46  ;;  %v7897_v27 = vld [vmem:[#allocation2 + $0x24] sm:$0x3]  ;;  %v5259_v2 = vcombine.low %v1737_v13, %v1909_v26  ;;  %v5260_v0 = vcombine.high %v1737_v13, %v1909_v26  ;;  %v6201_v61 = vld [vmem:[#allocation2 + $0x58] sm:$0x3c]   ;;  %v6223_v43 = vld [vmem:[%s8472_s1 + $0x250] sm:$0xff]  }
  0xea   : > { %v2059_v63 = vshrl.u32 %v5261_v8, 16  ;;  %v2062_v47 = vshll.u32 %v5261_v8, 16  ;;  %4476 = vrot.lane.b32.xlu0 %v6189_v5, %s6378_s29  ;;  %v2658_v37 = vpop.permute.xlu1 %2657  ;;  %v2068_v54 = vshrl.u32 %v5262_v4, 16  ;;  %v2071_v41 = vshll.u32 %v5262_v4, 16  ;;  %v6217_v26 = vld [vmem:[%s8472_s1 + $0x200] sm:$0xff]  }
  0xeb   : > { %v7907_v42 = vsel %vm433_vm4, %v5344_v58, %v2658_v37  ;;  %v2041_v46 = vshrl.u32 %v5259_v2, 16  ;;  %v2044_v5 = vshll.u32 %v5259_v2, 16  ;;  %v2050_v3 = vshrl.u32 %v5260_v0, 16  ;;  %v2656_v13 = vpop.permute.xlu0 %2655  ;;  %v6219_v58 = vld [vmem:[%s8472_s1 + $0x248] sm:$0xff]  }
  0xec   : > { %v2053_v8 = vshll.u32 %v5260_v0, 16  ;;  %v2061_v4 = vrot.slane %v2059_v63, 5  ;;  %v2064_v37 = vrot.slane %v2062_v47, 6  ;;  %v2070_v11 = vrot.slane %v2068_v54, 5  ;;  %v7927_v63 = vld [vmem:[#allocation2 + $0x28] sm:$0xe] }
  0xed   : > { %4486 = vrot.lane.b32.xlu1 %v6193_v39, %s6378_s29  ;;  %v2073_v62 = vrot.slane %v2071_v41, 6  ;;  %v2043_v52 = vrot.slane %v2041_v46, 5  ;;  %v2046_v21 = vrot.slane %v2044_v5, 6  ;;  %v2052_v38 = vrot.slane %v2050_v3, 5  ;;  %v6319_v5 = vld [vmem:[#allocation2 + $0x38] sm:$0xf] }
  0xee   : > { %v2055_v36 = vrot.slane %v2053_v8, 6  ;;  %4484 = vrot.lane.b32.xlu0 %v6195_v45, %s6378_s29  ;;  %v1860_v2 = vpop.permute.xlu1 %1859  ;;  %v2065_v0 = vor.u32 %v2064_v37, %v2061_v4  ;;  %v2673_v39 = vsel %vm433_vm4, %v5343_v10, %v2656_v13  ;;  %v5330_v47 = vcombine.low %v7927_v63, %v7913_v31 }
  0xef   : > { %v2074_v7 = vor.u32 %v2073_v62, %v2070_v11  ;;  %v2047_v54 = vor.u32 %v2046_v21, %v2043_v52  ;;  %v2704_v45 = vrot.slane %v7907_v42, 1  ;;  %v1858_v46 = vpop.permute.xlu0 %1857  ;;  %v1882_v11 = vsel %vm433_vm4, %v6319_v5, %v1860_v2  ;;  %v7937_v62 = vld [vmem:[#allocation2 + $0x38] sm:$0xe]  ;;  %v7953_v2 = vld [vmem:[#allocation2 + $0x40] sm:$0xe] }
  0xf0   : > { %v2056_v41 = vor.u32 %v2055_v36, %v2052_v38  ;;  %2342 = vmatmul.mubr.bf16.vlgmr.msra.gmra.mrb[16].mxu0 %v5303_v24  ;;  %v2066_v10 = vrot.slane %v2065_v0, 4  ;;  %v6320_v38 = vld [vmem:[#allocation2 + $0x30] sm:$0xf]  ;;  %v1924_v52 = vshrl.u32 %v1882_v11, 16  ;;  %v1927_v21 = vshll.u32 %v1882_v11, 16 }
  0xf1   : > { %4482 = vrot.lane.b32.xlu1 %v6197_v25, %s6378_s29  ;;  %v1879_v36 = vsel %vm433_vm4, %v6320_v38, %v1858_v46  ;;  %5885 = vmatpush3.bf16.msra.mxu0 %v6217_v26  ;;  %v2048_v56 = vrot.slane %v2047_v54, 4  ;;  %v2703_v24 = vrot.slane %v2673_v39, 1  ;;  %v8683_v4 = vcombine.low %v7878_v35, %v7847_v50  ;;  %v7955_v0 = vld [vmem:[#allocation2 + $0x30] sm:$0xc]  ;;  %v7961_v50 = vld [vmem:[#allocation2 + $0x38] sm:$0xc] }
  0xf2   : > { %v1917_v25 = vshrl.u32 %v1879_v36, 16  ;;  %v1920_v42 = vshll.u32 %v1879_v36, 16  ;;  %4480 = vrot.lane.b32.xlu0 %v6199_v44, %s6378_s29  ;;  %v2562_v3 = vpop.permute.xlu1 %2561  ;;  %5886 = vmatprep.subr.bf16.mxu0 %v6219_v58  ;;  %v1926_v8 = vrot.slane %v1924_v52, 6  ;;  %v1929_v13 = vrot.slane %v1927_v21, 7  ;;  %v6225_v44 = vld [vmem:[%s8472_s1 + $0x210] sm:$0xff]  }
  0xf3   : > { %v2580_v37 = vsel %vm433_vm4, %v8683_v4, %v2562_v3  ;;  %v2075_v26 = vsel %vm7833_vm10, %v2066_v10, %v2074_v7  ;;  %v2560_v54 = vpop.permute.xlu0 %2559  ;;  %v6227_v7 = vld [vmem:[%s8472_s1 + $0x258] sm:$0xff]   ;;  %v8684_v35 = vcombine.low %v7859_v19, %v7837_v30  ;;  %v2057_v10 = vsel %vm7833_vm10, %v2048_v56, %v2056_v41  ;;  %v7984_v4 = vld [vmem:[#allocation2 + $0x44] sm:$0x3] }
  0xf4   : > { %v1919_v39 = vrot.slane %v1917_v25, 6  ;;  %v1922_v58 = vrot.slane %v1920_v42, 7  ;;  %v5361_v46 = vcombine.low %v2580_v37, %v2704_v45  ;;  %v5362_v5 = vcombine.high %v2580_v37, %v2704_v45  ;;  %v7972_v36 = vld [vmem:[#allocation2 + $0x3c] sm:$0x3] }
  0xf5   : > { %4490 = vrot.lane.b32.xlu1 %v6201_v61, %s6378_s29  ;;  %v2577_v11 = vsel %vm433_vm4, %v8684_v35, %v2560_v54  ;;  %v1930_v38 = vor.u32 %v1929_v13, %v1926_v8  ;;  %v5237_v61 = vcombine.low %v7937_v62, %v7972_v36  ;;  %5887 = vmatpush3.bf16.msra.mxu0 %v6221_v15  ;;  %v6229_v15 = vld [vmem:[%s8472_s1 + $0x218] sm:$0xff]  }
  0xf6   : > { %v5359_v45 = vcombine.low %v2577_v11, %v2703_v24  ;;  %v5360_v52 = vcombine.high %v2577_v11, %v2703_v24  ;;  %v5376_v21 = vrot.slane %v5361_v46, 9  ;;  %v2776_v25 = vrot.slane %v5362_v5, 5  ;;  %4488 = vrot.lane.b32.xlu0 %v6203_v33, %s6378_s29  ;;  %v1724_v42 = vpop.permute.xlu1 %1723  ;;  %5888 = vmatprep.subr.bf16.mxu0 %v6223_v43  ;;  %v7988_v43 = vld [vmem:[#allocation2 + $0x34] sm:$0x3]  ;;  %v7999_v54 = vld [vmem:[#allocation2 + $0x3c] sm:$0x3] }
  0xf7   : > { %v1923_v30 = vor.u32 %v1922_v58, %v1919_v39  ;;  %v5306_v19 = vcombine.high %v2057_v10, %v2075_v26  ;;  %v8685_v41 = vcombine.low %v7863_v9, %v7893_v20  ;;  %v5305_v3 = vcombine.low %v2057_v10, %v2075_v26  ;;  %v1722_v8 = vpop.permute.xlu0 %1721  ;;  %v6231_v20 = vld [vmem:[%s8472_s1 + $0x260] sm:$0xff]   ;;  %v6250_v36 = vld [vmem:[%s8472_s1 + $0x2d8] sm:$0xff]  }
  0xf8   : > { %v5238_v33 = vcombine.low %v7953_v2, %v7984_v4  ;;  %v5347_v9 = vcombine.low %v7955_v0, %v7988_v43  ;;  %v5375_v37 = vrot.slane %v5359_v45, 9  ;;  %v2772_v26 = vrot.slane %v5360_v52, 5  ;;  %v6253_v43 = vld [vmem:[%s8472_s1 + $0x298] sm:$0xff]  }
  0xf9   : > { %v1746_v56 = vsel %vm433_vm4, %v8685_v41, %v1724_v42  ;;  %v8686_v39 = vcombine.low %v7849_v32, %v7883_v12  ;;  %2349 = vmatprep.mubr.bf16.mxu0 %v5306_v19  ;;  %5889 = vmatpush3.bf16.msra.mxu0 %v6225_v44  ;;  %v8689_v52 = vcombine.low %v7868_v57, %v7901_v48 }
  0xfa   : > { %v5265_v24 = vcombine.low %v1746_v56, %v1930_v38  ;;  %v5266_v13 = vcombine.high %v1746_v56, %v1930_v38  ;;  %2350 = vmatmul.mubr.bf16.gmra.mrb[20].mxu0 %v5305_v3  ;;  %v2662_v38 = vpop.permute.xlu1 %2661  ;;  %5890 = vmatprep.subr.bf16.mxu0 %v6227_v7  ;;  %v2777_v42 = vsel %vm8005_vm13, %v5376_v21, %v2776_v25  ;;  %v6237_v7 = vld [vmem:[%s8472_s1 + $0x268] sm:$0xff]  }
  0xfb   : > { %v1743_v58 = vsel %vm433_vm4, %v8686_v39, %v1722_v8  ;;  %v2682_v44 = vsel %vm433_vm4, %v8689_v52, %v2662_v38  ;;  %v2660_v8 = vpop.permute.xlu0 %2659 }
  0xfc   : > { %v5263_v5 = vcombine.low %v1743_v58, %v1923_v30  ;;  %v5264_v35 = vcombine.high %v1743_v58, %v1923_v30  ;;  %v2095_v11 = vshrl.u32 %v5265_v24, 16  ;;  %v2098_v10 = vshll.u32 %v5265_v24, 16  ;;  %v6234_v30 = vld [vmem:[%s8472_s1 + $0x220] sm:$0xff]  }
  0xfd   : > { %v2104_v32 = vshrl.u32 %v5266_v13, 16  ;;  %v2107_v12 = vshll.u32 %v5266_v13, 16  ;;  %5891 = vmatpush3.bf16.msra.mxu0 %v6229_v15  ;;  %v6235_v15 = vld [vmem:[%s8472_s1 + $0x280] sm:$0xff]  }
  0xfe   : > { %v2077_v19 = vshrl.u32 %v5263_v5, 16  ;;  %v2080_v41 = vshll.u32 %v5263_v5, 16  ;;  %v2086_v56 = vshrl.u32 %v5264_v35, 16  ;;  %v2089_v3 = vshll.u32 %v5264_v35, 16  ;;  %v1864_v38 = vpop.permute.xlu1 %1863  ;;  %5892 = vmatprep.subr.bf16.mxu0 %v6231_v20  ;;  %v6238_v20 = vld [vmem:[%s8472_s1 + $0x2c8] sm:$0xff]  }
  0xff   : > { %v2097_v24 = vrot.slane %v2095_v11, 5  ;;  %v2100_v57 = vrot.slane %v2098_v10, 6  ;;  %v2106_v48 = vrot.slane %v2104_v32, 5  ;;  %v2109_v13 = vrot.slane %v2107_v12, 6 }
 0x100   : > { %v2079_v39 = vrot.slane %v2077_v19, 5  ;;  %v2082_v21 = vrot.slane %v2080_v41, 6  ;;  %v2088_v25 = vrot.slane %v2086_v56, 5  ;;  %v2091_v58 = vrot.slane %v2089_v3, 6  ;;  %v1862_v19 = vpop.permute.xlu0 %1861  ;;  %v6325_v56 = vld [vmem:[#allocation2 + $0x40] sm:$0xf] }
 0x101   : > { %v2101_v52 = vor.u32 %v2100_v57, %v2097_v24  ;;  %v2110_v5 = vor.u32 %v2109_v13, %v2106_v48  ;;  %v8690_v35 = vcombine.low %v7865_v6, %v7897_v27  ;;  %v2773_v11 = vsel %vm8005_vm13, %v5375_v37, %v2772_v26  ;;  %v6240_v6 = vld [vmem:[%s8472_s1 + $0x228] sm:$0xff]   ;;  %5893 = vmatpush3.bf16.msra.mxu0 %v6234_v30 }
 0x102   : > { %v2083_v10 = vor.u32 %v2082_v21, %v2079_v39  ;;  %v2092_v32 = vor.u32 %v2091_v58, %v2088_v25  ;;  %v2706_v12 = vrot.slane %v2682_v44, 1  ;;  %v5415_v41 = vcombine.low %v2773_v11, %v2777_v42  ;;  %v6326_v3 = vld [vmem:[#allocation2 + $0x48] sm:$0xf]  ;;  %v6243_v44 = vld [vmem:[%s8472_s1 + $0x270] sm:$0xff]   ;;  %v2566_v39 = vpop.permute.xlu1 %2565  ;;  %5894 = vmatprep.subr.bf16.mxu0 %v6237_v7 }
 0x103   : > { %v2679_v46 = vsel %vm433_vm4, %v8690_v35, %v2660_v8  ;;  %v2102_v27 = vrot.slane %v2101_v52, 4  ;;  %v1885_v37 = vsel %vm433_vm4, %v6325_v56, %v1862_v19  ;;  %v5416_v26 = vcombine.high %v2773_v11, %v2777_v42  ;;  %v8047_v58 = vld [vmem:[#allocation2 + $0x34] sm:$0x1] }
 0x104   : > { %v1888_v8 = vsel %vm433_vm4, %v6326_v3, %v1864_v38  ;;  %v2084_v24 = vrot.slane %v2083_v10, 4  ;;  %v1931_v57 = vshrl.u32 %v1885_v37, 16  ;;  %v1934_v48 = vshll.u32 %v1885_v37, 16  ;;  %v2564_v11 = vpop.permute.xlu0 %2563 }
 0x105   : > { %v1938_v13 = vshrl.u32 %v1888_v8, 16  ;;  %v2705_v21 = vrot.slane %v2679_v46, 1  ;;  %2995 = vmatprep.mubr.bf16.mxu1 %v5416_v26  ;;  %v1941_v25 = vshll.u32 %v1888_v8, 16  ;;  %v2586_v42 = vsel %vm433_vm4, %v5330_v47, %v2566_v39  ;;  %v8055_v47 = vld [vmem:[#allocation2 + $0x3c] sm:$0x1]  ;;  %5895 = vmatpush3.bf16.msra.mxu0 %v6240_v6  ;;  %v6246_v6 = vld [vmem:[%s8472_s1 + $0x230] sm:$0xff]  }
 0x106   : > { %v2111_v30 = vsel %vm7833_vm10, %v2102_v27, %v2110_v5  ;;  %v1933_v38 = vrot.slane %v1931_v57, 6  ;;  %v1936_v52 = vrot.slane %v1934_v48, 7  ;;  %2996 = vmatmul.mubr.bf16.vlgmr.msra.gmra.mrb[16].mxu1 %v5415_v41  ;;  %v5365_v10 = vcombine.low %v2586_v42, %v2706_v12  ;;  %v6241_v5 = vld [vmem:[%s8472_s1 + $0x288] sm:$0xff]   ;;  %v1728_v26 = vpop.permute.xlu1 %1727  ;;  %5896 = vmatprep.subr.bf16.mxu0 %v6243_v44  ;;  %v6327_v57 = vld [vmem:[#allocation2 + $0x30] sm:$0xe] }
 0x107   : > { %v1940_v35 = vrot.slane %v1938_v13, 6  ;;  %v1943_v7 = vrot.slane %v1941_v25, 7  ;;  %v8691_v46 = vcombine.low %v7909_v34, %v7887_v23  ;;  %v5366_v31 = vcombine.high %v2586_v42, %v2706_v12  ;;  %5925 = vmatpush3.bf16.msra.mxu1 %v6235_v15  ;;  %v6244_v23 = vld [vmem:[%s8472_s1 + $0x2d0] sm:$0xff]   ;;  %v6328_v13 = vld [vmem:[#allocation2 + $0x38] sm:$0xe] }
 0x108   : > { %v2093_v63 = vsel %vm7833_vm10, %v2084_v24, %v2092_v32  ;;  %v5378_v56 = vrot.slane %v5365_v10, 9  ;;  %v1937_v37 = vor.u32 %v1936_v52, %v1933_v38  ;;  %5926 = vmatprep.subr.bf16.mxu1 %v6238_v20  ;;  %v1752_v15 = vsel %vm433_vm4, %v5238_v33, %v1728_v26  ;;  %v6249_v20 = vld [vmem:[%s8472_s1 + $0x278] sm:$0xff]   ;;  %v1726_v44 = vpop.permute.xlu0 %1725  ;;  %v8095_v10 = vld [vmem:[%s8472_s1 + $0x340] sm:$0xff]  }
 0x109   : > { %v2583_v19 = vsel %vm433_vm4, %v8691_v46, %v2564_v11  ;;  %v2784_v34 = vrot.slane %v5366_v31, 5  ;;  %v5308_v32 = vcombine.high %v2093_v63, %v2111_v30  ;;  %v1944_v12 = vor.u32 %v1943_v7, %v1940_v35  ;;  %5897 = vmatpush3.bf16.msra.mxu0 %v6246_v6  ;;  %v6252_v11 = vld [vmem:[%s8472_s1 + $0x238] sm:$0xff]  }
 0x10a   : > { %v5363_v41 = vcombine.low %v2583_v19, %v2705_v21  ;;  %v5364_v27 = vcombine.high %v2583_v19, %v2705_v21  ;;  %v5307_v24 = vcombine.low %v2093_v63, %v2111_v30  ;;  %v5331_v48 = vcombine.low %v6327_v57, %v8047_v58  ;;  %v6247_v21 = vld [vmem:[%s8472_s1 + $0x290] sm:$0xff]   ;;  %v2666_v30 = vpop.permute.xlu1 %2665  ;;  %5898 = vmatprep.subr.bf16.mxu0 %v6249_v20 }
 0x10b   : > { %v1749_v2 = vsel %vm433_vm4, %v5237_v61, %v1726_v44  ;;  %2357 = vmatprep.mubr.bf16.mxu0 %v5308_v32  ;;  %v5269_v4 = vcombine.low %v1752_v15, %v1944_v12  ;;  %v5270_v33 = vcombine.high %v1752_v15, %v1944_v12  ;;  %v5332_v39 = vcombine.low %v6328_v13, %v8055_v47 }
 0x10c   : > { %v5377_v3 = vrot.slane %v5363_v41, 9  ;;  %v2780_v8 = vrot.slane %v5364_v27, 5  ;;  %v5267_v25 = vcombine.low %v1749_v2, %v1937_v37  ;;  %v5268_v42 = vcombine.high %v1749_v2, %v1937_v37  ;;  %2358 = vmatmul.mubr.bf16.gmra.mrb[24].mxu0 %v5307_v24  ;;  %5927 = vmatpush3.bf16.msra.mxu1 %v6241_v5  ;;  %v2664_v63 = vpop.permute.xlu0 %2663 }
 0x10d   : > { %v2785_v62 = vsel %vm8005_vm13, %v5378_v56, %v2784_v34  ;;  %v2131_v61 = vshrl.u32 %v5269_v4, 16  ;;  %v2134_v38 = vshll.u32 %v5269_v4, 16  ;;  %v2140_v52 = vshrl.u32 %v5270_v33, 16  ;;  %5928 = vmatprep.subr.bf16.mxu1 %v6244_v23  ;;  %5899 = vmatpush3.bf16.msra.mxu0 %v6252_v11 }
 0x10e   : > { %v2781_v58 = vsel %vm8005_vm13, %v5377_v3, %v2780_v8  ;;  %v2143_v35 = vshll.u32 %v5270_v33, 16  ;;  %v2113_v7 = vshrl.u32 %v5267_v25, 16  ;;  %v2116_v46 = vshll.u32 %v5267_v25, 16  ;;  %v2570_v32 = vpop.permute.xlu1 %2569  ;;  %5964 = vmatprep.subr.bf16.mxu0 %v8095_v10  ;;  %v6255_v25 = vld [vmem:[%s8472_s1 + $0x2e0] sm:$0xff]  }
 0x10f   : > { %v2122_v19 = vshrl.u32 %v5268_v42, 16  ;;  %v2125_v31 = vshll.u32 %v5268_v42, 16  ;;  %v2133_v47 = vrot.slane %v2131_v61, 5  ;;  %v2136_v41 = vrot.slane %v2134_v38, 6  ;;  %v2428_v38 = vld [vmem:[#allocation2 + $0x40] sm:$0xc] }
 0x110   : > { %v2142_v5 = vrot.slane %v2140_v52, 5  ;;  %v2145_v27 = vrot.slane %v2143_v35, 6  ;;  %v2115_v56 = vrot.slane %v2113_v7, 5  ;;  %v2118_v37 = vrot.slane %v2116_v46, 6  ;;  %5929 = vmatpush3.bf16.msra.mxu1 %v6247_v21  ;;  %v2568_v57 = vpop.permute.xlu0 %2567  ;;  %v3052_v52 = vld [vmem:[#allocation2 + $0x18] sm:$0xf] }
 0x111   : > { %v2124_v26 = vrot.slane %v2122_v19, 5  ;;  %v2127_v34 = vrot.slane %v2125_v31, 6  ;;  %v2137_v12 = vor.u32 %v2136_v41, %v2133_v47  ;;  %v2685_v6 = vsel %vm433_vm4, %v5347_v9, %v2664_v63  ;;  %5930 = vmatprep.subr.bf16.mxu1 %v6250_v36  ;;  %v3054_v35 = vld [vmem:[#allocation2 + $0x20] sm:$0xf]  ;;  %v6259_v47 = vld [vmem:[%s8472_s1 + $0x2e8] sm:$0xff]   ;;  %v8693_v41 = vld [vmem:[#allocation36_spill] sm:$0xff] }
 0x112   : > { %v2146_v15 = vor.u32 %v2145_v27, %v2142_v5  ;;  %v8692_v23 = vcombine.low %v7961_v50, %v7999_v54  ;;  %v2119_v3 = vor.u32 %v2118_v37, %v2115_v56  ;;  %v2707_v44 = vrot.slane %v2685_v6, 1  ;;  %v3359_v21 = vpop.permute.xlu1 %3358  ;;  %v6257_v19 = vld [vmem:[%s8472_s1 + $0x2a0] sm:$0xff]  }
 0x113   : > { %v2128_v8 = vor.u32 %v2127_v34, %v2124_v26  ;;  %v2138_v2 = vrot.slane %v2137_v12, 4  ;;  %v2589_v4 = vsel %vm433_vm4, %v5331_v48, %v2568_v57  ;;  %v5418_v33 = vcombine.high %v2781_v58, %v2785_v62  ;;  %v6329_v26 = vld [vmem:[#allocation2 + $0x24] sm:$0x1]  ;;  %v6330_v12 = vld [vmem:[#allocation2 + $0x4c] sm:$0x3] }
 0x114   : > { %v2688_v20 = vsel %vm433_vm4, %v8692_v23, %v2666_v30  ;;  %v5417_v0 = vcombine.low %v2781_v58, %v2785_v62  ;;  %v2120_v50 = vrot.slane %v2119_v3, 4  ;;  %v5367_v9 = vcombine.low %v2589_v4, %v2707_v44  ;;  %v2429_v58 = vld [vmem:[#allocation2 + $0x48] sm:$0xc]  ;;  %v3357_v61 = vpop.permute.xlu0 %3356  ;;  %5931 = vmatpush3.bf16.msra.mxu1 %v6253_v43  ;;  %v2413_v3 = vld [vmem:[#allocation2 + $0x4c] sm:$0x1] }
 0x115   : > { %v2708_v24 = vrot.slane %v2688_v20, 1  ;;  %v5368_v54 = vcombine.high %v2589_v4, %v2707_v44  ;;  %v2592_v13 = vsel %vm433_vm4, %v5332_v39, %v2570_v32  ;;  %3003 = vmatprep.mubr.bf16.mxu1 %v5418_v33  ;;  %v2147_v30 = vsel %vm7833_vm10, %v2138_v2, %v2146_v15  ;;  %5932 = vmatprep.subr.bf16.mxu1 %v6255_v25  ;;  %v2411_v20 = vld [vmem:[#allocation2 + $0x44] sm:$0x1]  ;;  %v8697_v44 = vld [vmem:[#allocation35_spill] sm:$0xff]  ;;  %v6332_v33 = vld [vmem:[#allocation2 + $0x1c] sm:$0x1] }
 0x116   : > { %v5379_v62 = vrot.slane %v5367_v9, 9  ;;  %3004 = vmatmul.mubr.bf16.gmra.mrb[20].mxu1 %v5417_v0  ;;  %v2129_v39 = vsel %vm7833_vm10, %v2120_v50, %v2128_v8  ;;  %v2670_v31 = vpop.permute.xlu1 %2669  ;;  %v8695_v5 = vcombine.low %v8693_v41, %v8694_v53  ;;  %v5440_v34 = vcombine.low %v3054_v35, %v6329_v26  ;;  %v8696_v8 = vld [vmem:[#allocation31_spill] sm:$0xff]  ;;  %v6331_v2 = vld [vmem:[#allocation2 + $0x44] sm:$0x3]  ;;  %v6261_v43 = vld [vmem:[%s8472_s1 + $0x2a8] sm:$0xff]  }
 0x117   : > { %v5369_v48 = vcombine.low %v2592_v13, %v2708_v24  ;;  %v5370_v42 = vcombine.high %v2592_v13, %v2708_v24  ;;  %v2788_v36 = vrot.slane %v5368_v54, 5  ;;  %v5310_v46 = vcombine.high %v2129_v39, %v2147_v30  ;;  %v8139_v54 = vld [vmem:[#allocation2 + $0x30] sm:$0xf]  ;;  %v6333_v25 = vld [vmem:[#allocation2 + $0x48] sm:$0xe] }
 0x118   : > { %v5309_v63 = vcombine.low %v2129_v39, %v2147_v30  ;;  %v3377_v27 = vsel %vm433_vm4, %v8695_v5, %v3359_v21  ;;  %v2668_v32 = vpop.permute.xlu0 %2667  ;;  %v5350_v15 = vcombine.low %v2429_v58, %v6330_v12  ;;  %v8698_v24 = vcombine.low %v8696_v8, %v8697_v44  ;;  %5933 = vmatpush3.bf16.msra.mxu1 %v6257_v19  ;;  %v6263_v13 = vld [vmem:[%s8472_s1 + $0x2f0] sm:$0xff]   ;;  %v8147_v30 = vld [vmem:[#allocation2 + $0x2c] sm:$0x1]  ;;  %v6336_v39 = vld [vmem:[#allocation2 + $0x40] sm:$0xe] }
 0x119   : > { %v5380_v11 = vrot.slane %v5369_v48, 9  ;;  %v2792_v7 = vrot.slane %v5370_v42, 5  ;;  %2365 = vmatprep.mubr.bf16.mxu0 %v5310_v46  ;;  %v2789_v56 = vsel %vm8005_vm13, %v5379_v62, %v2788_v36  ;;  %v5349_v4 = vcombine.low %v2428_v38, %v6331_v2  ;;  %5934 = vmatprep.subr.bf16.mxu1 %v6259_v47  ;;  %v8145_v42 = vld [vmem:[#allocation2 + $0x28] sm:$0xe]  ;;  %v6337_v46 = vld [vmem:[#allocation2 + $0x34] sm:$0x1] }
 0x11a   : > { %2366 = vmatmul.mubr.bf16.gmra.mrb[28].mxu0 %v5309_v63  ;;  %v3374_v57 = vsel %vm433_vm4, %v8698_v24, %v3357_v61  ;;  %v5439_v0 = vcombine.low %v3052_v52, %v6332_v33  ;;  %v3405_v50 = vrot.slane %v3377_v27, 1  ;;  %v3215_v9 = vpop.permute.xlu1 %3214  ;;  %v5334_v48 = vcombine.low %v6333_v25, %v2413_v3  ;;  %v6264_v63 = vld [vmem:[%s8472_s1 + $0x2b0] sm:$0xff]   ;;  %v6265_v27 = vld [vmem:[%s8472_s1 + $0x2f8] sm:$0xff]   ;;  %v3056_v8 = vld [vmem:[#allocation2 + $0x28] sm:$0xf] }
 0x11b   : > { %v2793_v37 = vsel %vm8005_vm13, %v5380_v11, %v2792_v7  ;;  %v3233_v21 = vsel %vm433_vm4, %v5440_v34, %v3215_v9  ;;  %v5552_v58 = vcombine.low %v8145_v42, %v8147_v30  ;;  %v3404_v62 = vrot.slane %v3374_v57, 1  ;;  %v6267_v44 = vld [vmem:[%s8472_s1 + $0x2b8] sm:$0xff]   ;;  %v8699_v25 = vld [vmem:[#allocation38_spill] sm:$0xff] }
 0x11c   : > { %v5420_v6 = vcombine.high %v2789_v56, %v2793_v37  ;;  %v5419_v23 = vcombine.low %v2789_v56, %v2793_v37  ;;  %v2694_v36 = vsel %vm433_vm4, %v5350_v15, %v2670_v31  ;;  %v3213_v61 = vpop.permute.xlu0 %3212  ;;  %v5473_v38 = vcombine.low %v3233_v21, %v3405_v50  ;;  %5935 = vmatpush3.bf16.msra.mxu1 %v6261_v43  ;;  %v8203_v42 = vld [vmem:[%s8472_s1 + $0x348] sm:$0xff]  }
 0x11d   : > { %v5333_v52 = vcombine.low %v6336_v39, %v2411_v20  ;;  %v2691_v35 = vsel %vm433_vm4, %v5349_v4, %v2668_v32  ;;  %v3230_v11 = vsel %vm433_vm4, %v5439_v0, %v3213_v61  ;;  %v5474_v7 = vcombine.high %v3233_v21, %v3405_v50  ;;  %5936 = vmatprep.subr.bf16.mxu1 %v6263_v13 }
 0x11e   : > { %3011 = vmatprep.mubr.bf16.mxu1 %v5420_v6  ;;  %v5442_v19 = vcombine.low %v8139_v54, %v6337_v46  ;;  %v5471_v47 = vcombine.low %v3230_v11, %v3404_v62  ;;  %v5472_v31 = vcombine.high %v3230_v11, %v3404_v62  ;;  %v3486_v41 = vshrl.u32 %v5473_v38, 16  ;;  %v2574_v5 = vpop.permute.xlu1 %2573  ;;  %v8702_v11 = vld [vmem:[#allocation37_spill] sm:$0xff] }
 0x11f   : > { %3012 = vmatmul.mubr.bf16.gmra.mrb[24].mxu1 %v5419_v23  ;;  %v3489_v53 = vshll.u32 %v5473_v38, 16  ;;  %v2710_v56 = vrot.slane %v2694_v36, 1  ;;  %v2598_v37 = vsel %vm433_vm4, %v5334_v48, %v2574_v5  ;;  %v2709_v26 = vrot.slane %v2691_v35, 1  ;;  %v6338_v36 = vld [vmem:[#allocation2 + $0x2c] sm:$0x1]  ;;  %v8701_v35 = vld [vmem:[#allocation39_spill] sm:$0xff] }
 0x120   : > { %v3472_v34 = vshrl.u32 %v5471_v47, 16  ;;  %v3475_v32 = vshll.u32 %v5471_v47, 16  ;;  %v3488_v12 = vrot.slane %v3486_v41, 4  ;;  %v2572_v15 = vpop.permute.xlu0 %2571  ;;  %v3495_v23 = vshll.u32 %v5474_v7, 16  ;;  %5937 = vmatpush3.bf16.msra.mxu1 %v6264_v63 }
 0x121   : > { %v3491_v6 = vrot.slane %v3489_v53, 5  ;;  %v2595_v20 = vsel %vm433_vm4, %v5333_v52, %v2572_v15  ;;  %v5373_v3 = vcombine.low %v2598_v37, %v2710_v56  ;;  %v3481_v2 = vshll.u32 %v5472_v31, 16  ;;  %5938 = vmatprep.subr.bf16.mxu1 %v6265_v27 }
 0x122   : > { %v3474_v24 = vrot.slane %v3472_v34, 4  ;;  %v3477_v57 = vrot.slane %v3475_v32, 5  ;;  %v5371_v4 = vcombine.low %v2595_v20, %v2709_v26  ;;  %v3363_v33 = vpop.permute.xlu1 %3362  ;;  %v5372_v43 = vcombine.high %v2595_v20, %v2709_v26  ;;  %v6340_v20 = vld [vmem:[#allocation2 + $0x24] sm:$0x1] }
 0x123   : > { %v3492_v0 = vor.u32 %v3491_v6, %v3488_v12  ;;  %v5374_v50 = vcombine.high %v2598_v37, %v2710_v56  ;;  %v5382_v9 = vrot.slane %v5373_v3, 9  ;;  %v8700_v48 = vcombine.low %v7141_v22, %v8699_v25 }
 0x124   : > { %v3478_v54 = vor.u32 %v3477_v57, %v3474_v24  ;;  %v5381_v13 = vrot.slane %v5371_v4, 9  ;;  %v3361_v21 = vpop.permute.xlu0 %3360  ;;  %v5441_v61 = vcombine.low %v3056_v8, %v6338_v36  ;;  %v2796_v39 = vrot.slane %v5372_v43, 5  ;;  %5939 = vmatpush3.bf16.msra.mxu1 %v6267_v44  ;;  %v6342_v43 = vld [vmem:[#allocation2 + $0x40] sm:$0xe] }
 0x125   : > { %v3383_v62 = vsel %vm433_vm4, %v8700_v48, %v3363_v33  ;;  %v3493_v38 = vrot.slane %v3492_v0, 4  ;;  %v2800_v52 = vrot.slane %v5374_v50, 5  ;;  %v8703_v7 = vcombine.low %v8701_v35, %v8702_v11  ;;  %6004 = vmatprep.subr.bf16.mxu1 %v8095_v10  ;;  %v6339_v10 = vld [vmem:[#allocation2 + $0x20] sm:$0xe]  ;;  %v6341_v0 = vld [vmem:[#allocation2 + $0x44] sm:$0x3] }
 0x126   : > { %v3479_v63 = vrot.slane %v3478_v54, 4  ;;  %v3497_v47 = vrot.slane %v3495_v23, 5  ;;  %v3407_v41 = vrot.slane %v3383_v62, 1  ;;  %v3219_v53 = vpop.permute.xlu1 %3218  ;;  %v3483_v5 = vrot.slane %v3481_v2, 5  ;;  %v6343_v48 = vld [vmem:[#allocation2 + $0x3c] sm:$0x3] }
 0x127   : > { %v3380_v46 = vsel %vm433_vm4, %v8703_v7, %v3361_v21  ;;  %v3239_v27 = vsel %vm433_vm4, %v5442_v19, %v3219_v53  ;;  %v2797_v56 = vsel %vm8005_vm13, %v5381_v13, %v2796_v39  ;;  %v2801_v37 = vsel %vm8005_vm13, %v5382_v9, %v2800_v52  ;;  %v8198_v9 = vld [vmem:[%s8472_s1 + $0x300] sm:$0xff]   ;;  %v6344_v62 = vld [vmem:[#allocation2 + $0x38] sm:$0xe] }
 0x128   : > { %v3406_v31 = vrot.slane %v3380_v46, 1  ;;  %v3217_v26 = vpop.permute.xlu0 %3216  ;;  %v5477_v34 = vcombine.low %v3239_v27, %v3407_v41  ;;  %v5422_v32 = vcombine.high %v2797_v56, %v2801_v37  ;;  %v5421_v12 = vcombine.low %v2797_v56, %v2801_v37 }
 0x129   : > { %v3498_v15 = vsel %vm8176_vm0, %v3493_v38, %v3497_v47  ;;  %v3236_v6 = vsel %vm433_vm4, %v5441_v61, %v3217_v26  ;;  %v5478_v23 = vcombine.high %v3239_v27, %v3407_v41  ;;  %v5551_v3 = vcombine.low %v6339_v10, %v6340_v20  ;;  %v3062_v61 = vld [vmem:[#allocation2 + $0x40] sm:$0xf]  ;;  %v6345_v41 = vld [vmem:[#allocation2 + $0x44] sm:$0x1]  ;;  %v8217_v26 = vld [vmem:[%s8472_s1 + $0x350] sm:$0xff]  }
 0x12a   : > { %v3484_v19 = vsel %vm8176_vm0, %v3479_v63, %v3483_v5  ;;  %v5475_v8 = vcombine.low %v3236_v6, %v3406_v31  ;;  %v5476_v44 = vcombine.high %v3236_v6, %v3406_v31  ;;  %v3514_v45 = vshrl.u32 %v5477_v34, 16  ;;  %3019 = vmatprep.mubr.bf16.mxu1 %v5422_v32  ;;  %v4109_v57 = vpop.permute.xlu1 %4108  ;;  %v3060_v63 = vld [vmem:[#allocation2 + $0x38] sm:$0xf]  ;;  %v8211_v5 = vld [vmem:[%s8472_s1 + $0x308] sm:$0xff]  }
 0x12b   : > { %v3517_v24 = vshll.u32 %v5477_v34, 16  ;;  %3020 = vmatmul.mubr.bf16.gmra.mrb[28].mxu1 %v5421_v12  ;;  %v5519_v2 = vcombine.low %v3484_v19, %v3498_v15  ;;  %v5520_v4 = vcombine.high %v3484_v19, %v3498_v15  ;;  %v4127_v33 = vsel %vm433_vm4, %v5552_v58, %v4109_v57  ;;  %v6346_v15 = vld [vmem:[#allocation2 + $0x3c] sm:$0x1] }
 0x12c   : > { %v5460_v50 = vcombine.low %v6342_v43, %v6341_v0  ;;  %v3500_v54 = vshrl.u32 %v5475_v8, 16  ;;  %v3503_v13 = vshll.u32 %v5475_v8, 16  ;;  %v3516_v21 = vrot.slane %v3514_v45, 4  ;;  %v4107_v25 = vpop.permute.xlu0 %4106  ;;  %v8227_v45 = vld [vmem:[%s8472_s1 + $0x310] sm:$0xff]  }
 0x12d   : > { %v5459_v36 = vcombine.low %v6344_v62, %v6343_v48  ;;  %v3519_v30 = vrot.slane %v3517_v24, 5  ;;  %v3523_v58 = vshll.u32 %v5478_v23, 16  ;;  %v4124_v38 = vsel %vm433_vm4, %v5551_v3, %v4107_v25  ;;  %3776 = vmatprep.mubr.bf16.mxu0 %v5520_v4  ;;  %v8235_v4 = vld [vmem:[%s8472_s1 + $0x358] sm:$0xff]   ;;  %v6347_v62 = vld [vmem:[#allocation2 + $0x28] sm:$0xf] }
 0x12e   : > { %v4155_v39 = vrot.slane %v4127_v33, 1  ;;  %v3502_v52 = vrot.slane %v3500_v54, 4  ;;  %v3505_v35 = vrot.slane %v3503_v13, 5  ;;  %v3509_v11 = vshll.u32 %v5476_v44, 16  ;;  %3777 = vmatmul.mubr.bf16.vlgmr.msra.gmra.mrb[32].mxu0 %v5519_v2  ;;  %v3367_v46 = vpop.permute.xlu1 %3366 }
 0x12f   : > { %v4154_v7 = vrot.slane %v4124_v38, 1  ;;  %v3520_v47 = vor.u32 %v3519_v30, %v3516_v21  ;;  %v3389_v31 = vsel %vm433_vm4, %v5460_v50, %v3367_v46  ;;  %v5444_v53 = vcombine.low %v3062_v61, %v6345_v41  ;;  %5965 = vmatpush3.bf16.msra.mxu0 %v8198_v9  ;;  %v8243_v61 = vld [vmem:[%s8472_s1 + $0x318] sm:$0xff]  }
 0x130   : > { %v3506_v27 = vor.u32 %v3505_v35, %v3502_v52  ;;  %v3365_v56 = vpop.permute.xlu0 %3364  ;;  %5966 = vmatprep.subr.bf16.mxu0 %v8203_v42  ;;  %v3525_v32 = vrot.slane %v3523_v58, 5  ;;  %v5443_v6 = vcombine.low %v3060_v63, %v6346_v15  ;;  %v3511_v10 = vrot.slane %v3509_v11, 5  ;;  %v8249_v52 = vld [vmem:[%s8472_s1 + $0x360] sm:$0xff]  }
 0x131   : > { %v5600_v37 = vcombine.low %v4154_v7, %v4155_v39  ;;  %v3521_v34 = vrot.slane %v3520_v47, 4  ;;  %v3386_v12 = vsel %vm433_vm4, %v5459_v36, %v3365_v56  ;;  %v3409_v3 = vrot.slane %v3389_v31, 1  ;;  %v6348_v7 = vld [vmem:[#allocation2 + $0x20] sm:$0xf] }
 0x132   : > { %v3507_v23 = vrot.slane %v3506_v27, 4  ;;  %v3408_v20 = vrot.slane %v3386_v12, 1  ;;  %v3223_v19 = vpop.permute.xlu1 %3222  ;;  %v8706_v56 = vcombine.low %v8668_v60, %v7364_v28  ;;  %v8266_v28 = vld [vmem:[%s8472_s1 + $0x368] sm:$0xff]  }
 0x133   : > { %4363 = vmatprep.mubr.bf16.mxu1 %v5600_v37  ;;  %v3245_v8 = vsel %vm433_vm4, %v5444_v53, %v3223_v19  ;;  %v3526_v44 = vsel %vm8176_vm0, %v3521_v34, %v3525_v32  ;;  %5967 = vmatpush3.bf16.msra.mxu0 %v8211_v5  ;;  %v8260_v34 = vld [vmem:[%s8472_s1 + $0x320] sm:$0xff]  }
 0x134   : > { %v3221_v24 = vpop.permute.xlu0 %3220  ;;  %v5481_v57 = vcombine.low %v3245_v8, %v3409_v3  ;;  %v3512_v2 = vsel %vm8176_vm0, %v3507_v23, %v3511_v10  ;;  %5968 = vmatprep.subr.bf16.mxu0 %v8217_v26  ;;  %v5482_v0 = vcombine.high %v3245_v8, %v3409_v3  ;;  %v8707_v10 = vcombine.low %v7236_v18, %v7373_v16  ;;  %v6349_v18 = vld [vmem:[#allocation2 + $0x54] sm:$0x1] }
 0x135   : > { %v3242_v33 = vsel %vm433_vm4, %v5443_v6, %v3221_v24  ;;  %v5522_v43 = vcombine.high %v3512_v2, %v3526_v44  ;;  %v5521_v50 = vcombine.low %v3512_v2, %v3526_v44  ;;  %v3066_v6 = vld [vmem:[#allocation2 + $0x50] sm:$0xf]  ;;  %v3064_v24 = vld [vmem:[#allocation2 + $0x48] sm:$0xf] }
 0x136   : > { %v5479_v54 = vcombine.low %v3242_v33, %v3408_v20  ;;  %v5480_v13 = vcombine.high %v3242_v33, %v3408_v20  ;;  %v3542_v21 = vshrl.u32 %v5481_v57, 16  ;;  %v3545_v25 = vshll.u32 %v5481_v57, 16  ;;  %v3965_v48 = vpop.permute.xlu1 %3964 }
 0x137   : > { %3784 = vmatprep.mubr.bf16.mxu0 %v5522_v43  ;;  %v3983_v36 = vsel %vm433_vm4, %v6347_v62, %v3965_v48  ;;  %5969 = vmatpush3.bf16.msra.mxu0 %v8227_v45  ;;  %v3551_v11 = vshll.u32 %v5482_v0, 16  ;;  %v8708_v57 = vcombine.low %v8673_v51, %v8672_v40  ;;  %v5446_v16 = vcombine.low %v3066_v6, %v6349_v18  ;;  %v8292_v40 = vld [vmem:[%s8472_s1 + $0x370] sm:$0xff]   ;;  %v6353_v18 = vld [vmem:[#allocation2 + $0x48] sm:$0xf] }
 0x138   : > { %v3528_v30 = vshrl.u32 %v5479_v54, 16  ;;  %v3531_v58 = vshll.u32 %v5479_v54, 16  ;;  %v3544_v38 = vrot.slane %v3542_v21, 4  ;;  %v3963_v39 = vpop.permute.xlu0 %3962  ;;  %3785 = vmatmul.mubr.bf16.gmra.mrb[36].mxu0 %v5521_v50  ;;  %5970 = vmatprep.subr.bf16.mxu0 %v8235_v4  ;;  %v3547_v35 = vrot.slane %v3545_v25, 5  ;;  %v6350_v54 = vld [vmem:[#allocation2 + $0x4c] sm:$0x1] }
 0x139   : > { %v3980_v46 = vsel %vm433_vm4, %v6348_v7, %v3963_v39  ;;  %v3537_v31 = vshll.u32 %v5480_v13, 16  ;;  %v3553_v23 = vrot.slane %v3551_v11, 5  ;;  %v8709_v51 = vcombine.low %v8671_v14, %v8670_v29  ;;  %v8305_v29 = vld [vmem:[%s8472_s1 + $0x330] sm:$0xff]  }
 0x13a   : > { %v3530_v63 = vrot.slane %v3528_v30, 4  ;;  %v3533_v47 = vrot.slane %v3531_v58, 5  ;;  %v5599_v41 = vcombine.low %v3980_v46, %v3983_v36  ;;  %v4113_v53 = vpop.permute.xlu1 %4112  ;;  %v3548_v27 = vor.u32 %v3547_v35, %v3544_v38 }
 0x13b   : > { %v4133_v37 = vsel %vm433_vm4, %v8706_v56, %v4113_v53  ;;  %5971 = vmatpush3.bf16.msra.mxu0 %v8243_v61  ;;  %v3539_v19 = vrot.slane %v3537_v31, 5  ;;  %v5445_v13 = vcombine.low %v3064_v24, %v6350_v54  ;;  %v8321_v31 = vld [vmem:[%s8472_s1 + $0x338] sm:$0xff]  }
 0x13c   : > { %v3534_v32 = vor.u32 %v3533_v47, %v3530_v63  ;;  %v4111_v12 = vpop.permute.xlu0 %4110  ;;  %v4157_v15 = vrot.slane %v4133_v37, 1  ;;  %4364 = vmatmul.mubr.bf16.vlgmr.msra.gmra.mrb[32].mxu1 %v5599_v41  ;;  %5972 = vmatprep.subr.bf16.mxu0 %v8249_v52  ;;  %v3549_v60 = vrot.slane %v3548_v27, 4  ;;  %v6351_v63 = vld [vmem:[#allocation2 + $0x38] sm:$0xf] }
 0x13d   : > { %v4130_v20 = vsel %vm433_vm4, %v8707_v10, %v4111_v12  ;;  %6012 = vmatpush3.bf16.msra.mxu1 %v8198_v9  ;;  %v8284_v9 = vld [vmem:[%s8472_s1 + $0x328] sm:$0xff]  }
 0x13e   : > { %v3535_v3 = vrot.slane %v3534_v32, 4  ;;  %v4156_v8 = vrot.slane %v4130_v20, 1  ;;  %v3371_v44 = vpop.permute.xlu1 %3370  ;;  %6005 = vmatprep.subr.bf16.mxu1 %v8203_v42  ;;  %v3554_v33 = vsel %vm8176_vm0, %v3549_v60, %v3553_v23  ;;  %v6352_v32 = vld [vmem:[#allocation2 + $0x30] sm:$0xf]  ;;  %v8710_v20 = vcombine.low %v7429_v55, %v7527_v59 }
 0x13f   : > { %v3395_v2 = vsel %vm433_vm4, %v8708_v57, %v3371_v44  ;;  %5973 = vmatpush3.bf16.msra.mxu0 %v8260_v34  ;;  %v8711_v57 = vcombine.low %v7449_v1, %v7582_v49 }
 0x140   : > { %v3369_v0 = vpop.permute.xlu0 %3368  ;;  %v5602_v43 = vcombine.low %v4156_v8, %v4157_v15  ;;  %v3540_v42 = vsel %vm8176_vm0, %v3535_v3, %v3539_v19  ;;  %5974 = vmatprep.subr.bf16.mxu0 %v8266_v28  ;;  %v3411_v62 = vrot.slane %v3395_v2, 1 }
 0x141   : > { %v3392_v50 = vsel %vm433_vm4, %v8709_v51, %v3369_v0  ;;  %v5524_v21 = vcombine.high %v3540_v42, %v3554_v33  ;;  %v5523_v25 = vcombine.low %v3540_v42, %v3554_v33  ;;  %6013 = vmatpush3.bf16.msra.mxu1 %v8211_v5  ;;  %v8311_v5 = vld [vmem:[%s8472_s1 + $0x378] sm:$0xff]  }
 0x142   : > { %v3410_v48 = vrot.slane %v3392_v50, 1  ;;  %4371 = vmatprep.mubr.bf16.mxu1 %v5602_v43  ;;  %v3227_v36 = vpop.permute.xlu1 %3226  ;;  %6006 = vmatprep.subr.bf16.mxu1 %v8217_v26  ;;  %v6354_v43 = vld [vmem:[#allocation2 + $0x58] sm:$0xe]  ;;  %v6355_v42 = vld [vmem:[#allocation2 + $0x5c] sm:$0x1] }
 0x143   : > { %3792 = vmatprep.mubr.bf16.mxu0 %v5524_v21  ;;  %v3251_v30 = vsel %vm433_vm4, %v5446_v16, %v3227_v36  ;;  %5975 = vmatpush3.bf16.msra.mxu0 %v8284_v9  ;;  %v5558_v51 = vcombine.low %v6354_v43, %v6355_v42  ;;  %v6356_v50 = vld [vmem:[#allocation2 + $0x40] sm:$0xf]  ;;  %v6366_v42 = vld [vmem:[#allocation2 + $0x30] sm:$0x3c]  }
 0x144   : > { %v3225_v14 = vpop.permute.xlu0 %3224  ;;  %v5485_v58 = vcombine.low %v3251_v30, %v3411_v62  ;;  %3793 = vmatmul.mubr.bf16.gmra.mrb[40].mxu0 %v5523_v25  ;;  %5976 = vmatprep.subr.bf16.mxu0 %v8292_v40  ;;  %v5486_v38 = vcombine.high %v3251_v30, %v3411_v62  ;;  %v6358_v25 = vld [vmem:[#allocation2 + $0x54] sm:$0x1] }
 0x145   : > { %v3248_v26 = vsel %vm433_vm4, %v5445_v13, %v3225_v14  ;;  %6014 = vmatpush3.bf16.msra.mxu1 %v8227_v45 }
 0x146   : > { %v5483_v39 = vcombine.low %v3248_v26, %v3410_v48  ;;  %v5484_v35 = vcombine.high %v3248_v26, %v3410_v48  ;;  %v3570_v11 = vshrl.u32 %v5485_v58, 16  ;;  %v3573_v7 = vshll.u32 %v5485_v58, 16  ;;  %v3969_v46 = vpop.permute.xlu1 %3968  ;;  %6007 = vmatprep.subr.bf16.mxu1 %v8235_v4 }
 0x147   : > { %v3989_v47 = vsel %vm433_vm4, %v6351_v63, %v3969_v46  ;;  %5977 = vmatpush3.bf16.msra.mxu0 %v8305_v29  ;;  %v3579_v37 = vshll.u32 %v5486_v38, 16 }
 0x148   : > { %v3556_v41 = vshrl.u32 %v5483_v39, 16  ;;  %v3559_v53 = vshll.u32 %v5483_v39, 16  ;;  %v3572_v45 = vrot.slane %v3570_v11, 4  ;;  %v3967_v27 = vpop.permute.xlu0 %3966  ;;  %5978 = vmatprep.subr.bf16.mxu0 %v8311_v5  ;;  %v3575_v56 = vrot.slane %v3573_v7, 5  ;;  %v6360_v11 = vld [vmem:[#allocation2 + $0x50] sm:$0xf] }
 0x149   : > { %v3986_v4 = vsel %vm433_vm4, %v6352_v32, %v3967_v27  ;;  %6015 = vmatpush3.bf16.msra.mxu1 %v8243_v61  ;;  %v3565_v6 = vshll.u32 %v5484_v35, 16  ;;  %v3581_v24 = vrot.slane %v3579_v37, 5 }
 0x14a   : > { %v3558_v12 = vrot.slane %v3556_v41, 4  ;;  %v3561_v15 = vrot.slane %v3559_v53, 5  ;;  %v5601_v60 = vcombine.low %v3986_v4, %v3989_v47  ;;  %v4117_v23 = vpop.permute.xlu1 %4116  ;;  %6008 = vmatprep.subr.bf16.mxu1 %v8249_v52  ;;  %v3576_v10 = vor.u32 %v3575_v56, %v3572_v45  ;;  %v6361_v47 = vld [vmem:[#allocation2 + $0x28] sm:$0x3c]   ;;  %v6362_v45 = vld [vmem:[#allocation2 + $0x20] sm:$0x3c]  }
 0x14b   : > { %v4139_v3 = vsel %vm433_vm4, %v8710_v20, %v4117_v23  ;;  %5979 = vmatpush3.bf16.msra.mxu0 %v8321_v31  ;;  %v3567_v33 = vrot.slane %v3565_v6, 5 }
 0x14c   : > { %v3562_v19 = vor.u32 %v3561_v15, %v3558_v12  ;;  %v4159_v8 = vrot.slane %v4139_v3, 1  ;;  %4372 = vmatmul.mubr.bf16.gmra.mrb[36].mxu1 %v5601_v60  ;;  %v4115_v44 = vpop.permute.xlu0 %4114  ;;  %v3577_v61 = vrot.slane %v3576_v10, 4  ;;  %v6363_v15 = vld [vmem:[#allocation2 + $0x48] sm:$0x3c]   ;;  %v6364_v3 = vld [vmem:[#allocation2 + $0x40] sm:$0x3c]  }
 0x14d   : > { %v4136_v2 = vsel %vm433_vm4, %v8711_v57, %v4115_v44  ;;  %6016 = vmatpush3.bf16.msra.mxu1 %v8260_v34 }
 0x14e   : > { %v3563_v52 = vrot.slane %v3562_v19, 4  ;;  %v4158_v55 = vrot.slane %v4136_v2, 1  ;;  %v3973_v59 = vpop.permute.xlu1 %3972  ;;  %6009 = vmatprep.subr.bf16.mxu1 %v8266_v28  ;;  %v3582_v0 = vsel %vm8176_vm0, %v3577_v61, %v3581_v24  ;;  %v6357_v28 = vld [vmem:[#allocation2 + $0x50] sm:$0xe] }
 0x14f   : > { %v3995_v16 = vsel %vm433_vm4, %v6353_v18, %v3973_v59  ;;  %v5557_v48 = vcombine.low %v6357_v28, %v6358_v25  ;;  %v6367_v25 = vld [vmem:[#allocation2 + $0x58] sm:$0x3c]  }
 0x150   : > { %v3971_v1 = vpop.permute.xlu0 %3970  ;;  %v5604_v49 = vcombine.low %v4158_v55, %v4159_v8  ;;  %v3568_v34 = vsel %vm8176_vm0, %v3563_v52, %v3567_v33  ;;  %v6365_v52 = vld [vmem:[#allocation2 + $0x38] sm:$0x3c]  }
 0x151   : > { %v3992_v54 = vsel %vm433_vm4, %v6356_v50, %v3971_v1  ;;  %v5526_v13 = vcombine.high %v3568_v34, %v3582_v0  ;;  %v5525_v21 = vcombine.low %v3568_v34, %v3582_v0  ;;  %6017 = vmatpush3.bf16.msra.mxu1 %v8284_v9  ;;  %v6359_v9 = vld [vmem:[#allocation2 + $0x58] sm:$0xf] }
 0x152   : > { %v5603_v62 = vcombine.low %v3992_v54, %v3995_v16  ;;  %4379 = vmatprep.mubr.bf16.mxu1 %v5604_v49  ;;  %v4121_v36 = vpop.permute.xlu1 %4120  ;;  %6010 = vmatprep.subr.bf16.mxu1 %v8292_v40 }
 0x153   : > { %3800 = vmatprep.mubr.bf16.mxu0 %v5526_v13  ;;  %v4145_v30 = vsel %vm433_vm4, %v5558_v51, %v4121_v36 }
 0x154   : > { %v4161_v22 = vrot.slane %v4145_v30, 1  ;;  %3801 = vmatmul.mubr.bf16.gmra.mrb[44].mxu0 %v5525_v21  ;;  %4380 = vmatmul.mubr.bf16.gmra.mrb[40].mxu1 %v5603_v62  ;;  %v4119_v14 = vpop.permute.xlu0 %4118 }
 0x155   : > { %v4142_v58 = vsel %vm433_vm4, %v5557_v48, %v4119_v14  ;;  %6018 = vmatpush3.bf16.msra.mxu1 %v8305_v29 }
 0x156   : > { %v4160_v26 = vrot.slane %v4142_v58, 1  ;;  %v3977_v38 = vpop.permute.xlu1 %3976  ;;  %6011 = vmatprep.subr.bf16.mxu1 %v8311_v5 }
 0x157   : > { %v4001_v39 = vsel %vm433_vm4, %v6359_v9, %v3977_v38 }
 0x158   : > { %v3975_v35 = vpop.permute.xlu0 %3974  ;;  %v5606_v40 = vcombine.low %v4160_v26, %v4161_v22  ;;  %v6368_v26 = vld [vmem:[#allocation2 + $0x50] sm:$0x3c]  }
 0x159   : > { %v3998_v7 = vsel %vm433_vm4, %v6360_v11, %v3975_v35  ;;  %6019 = vmatpush3.bf16.msra.mxu1 %v8321_v31 }
 0x15a   : > { %v5605_v46 = vcombine.low %v3998_v7, %v4001_v39  ;;  %4387 = vmatprep.mubr.bf16.mxu1 %v5606_v40 }
 0x15b   : > { %v4479_v63 = vpop.permute.xlu1 %4478 }
 0x15c   : > { %v4497_v29 = vsel %vm433_vm4, %v6361_v47, %v4479_v63  ;;  %4388 = vmatmul.mubr.bf16.gmra.mrb[44].mxu1 %v5605_v46  ;;  %v4477_v5 = vpop.permute.xlu0 %4476 }
 0x15d   : > { %v5633_v41 = vcombine.low %v4497_v29, %v4497_v29  ;;  %v5634_v53 = vcombine.high %v4497_v29, %v4497_v29  ;;  %v4494_v27 = vsel %vm433_vm4, %v6362_v45, %v4477_v5 }
 0x15e   : > { %v5631_v32 = vcombine.low %v4494_v27, %v4494_v27  ;;  %v5632_v4 = vcombine.high %v4494_v27, %v4494_v27 }
 0x15f   : > { %v5648_v56 = vrot.slane %v5633_v41, 10  ;;  %v4562_v37 = vrot.slane %v5634_v53, 6  ;;  %v4487_v12 = vpop.permute.xlu1 %4486 }
 0x160   : > { %v4509_v31 = vsel %vm433_vm4, %v6363_v15, %v4487_v12  ;;  %v5647_v6 = vrot.slane %v5631_v32, 10  ;;  %v4558_v60 = vrot.slane %v5632_v4, 6  ;;  %v4485_v20 = vpop.permute.xlu0 %4484 }
 0x161   : > { %v5641_v23 = vcombine.low %v4509_v31, %v4509_v31  ;;  %v5642_v10 = vcombine.high %v4509_v31, %v4509_v31  ;;  %v4506_v19 = vsel %vm433_vm4, %v6364_v3, %v4485_v20  ;;  %v4563_v8 = vsel %vm7405_vm7, %v5648_v56, %v4562_v37 }
 0x162   : > { %v5639_v24 = vcombine.low %v4506_v19, %v4506_v19  ;;  %v5640_v57 = vcombine.high %v4506_v19, %v4506_v19  ;;  %v4559_v55 = vsel %vm7405_vm7, %v5647_v6, %v4558_v60 }
 0x163   : > { %v5652_v44 = vrot.slane %v5641_v23, 10  ;;  %v4578_v61 = vrot.slane %v5642_v10, 6  ;;  %v4483_v2 = vpop.permute.xlu1 %4482  ;;  %v5687_v1 = vcombine.low %v4559_v55, %v4563_v8  ;;  %v5688_v49 = vcombine.high %v4559_v55, %v4563_v8 }
 0x164   : > { %v4503_v33 = vsel %vm433_vm4, %v6365_v52, %v4483_v2  ;;  %v5651_v59 = vrot.slane %v5639_v24, 10  ;;  %v4574_v18 = vrot.slane %v5640_v57, 6  ;;  %v4481_v43 = vpop.permute.xlu0 %4480 }
 0x165   : > { %v5637_v16 = vcombine.low %v4503_v33, %v4503_v33  ;;  %v5638_v0 = vcombine.high %v4503_v33, %v4503_v33  ;;  %v4500_v51 = vsel %vm433_vm4, %v6366_v42, %v4481_v43  ;;  %v4579_v34 = vsel %vm7405_vm7, %v5652_v44, %v4578_v61  ;;  %4781 = vmatprep.mubr.bf16.mxu0 %v5688_v49 }
 0x166   : > { %v5635_v13 = vcombine.low %v4500_v51, %v4500_v51  ;;  %v5636_v21 = vcombine.high %v4500_v51, %v4500_v51  ;;  %v4575_v62 = vsel %vm7405_vm7, %v5651_v59, %v4574_v18  ;;  %4782 = vmatmul.mubr.bf16.vlgmr.msra.gmra.mrb[48].mxu0 %v5687_v1 }
 0x167   : > { %v5650_v50 = vrot.slane %v5637_v16, 10  ;;  %v4570_v54 = vrot.slane %v5638_v0, 6  ;;  %v4491_v28 = vpop.permute.xlu1 %4490  ;;  %v5691_v9 = vcombine.low %v4575_v62, %v4579_v34  ;;  %v5692_v39 = vcombine.high %v4575_v62, %v4579_v34 }
 0x168   : > { %v4515_v48 = vsel %vm433_vm4, %v6367_v25, %v4491_v28  ;;  %v5649_v36 = vrot.slane %v5635_v13, 10  ;;  %v4566_v30 = vrot.slane %v5636_v21, 6  ;;  %v4489_v58 = vpop.permute.xlu0 %4488 }
 0x169   : > { %v5645_v22 = vcombine.low %v4515_v48, %v4515_v48  ;;  %v5646_v14 = vcombine.high %v4515_v48, %v4515_v48  ;;  %v4512_v38 = vsel %vm433_vm4, %v6368_v26, %v4489_v58  ;;  %v4571_v35 = vsel %vm7405_vm7, %v5650_v50, %v4570_v54  ;;  %4797 = vmatprep.mubr.bf16.mxu1 %v5692_v39 }
 0x16a   : > { %v5643_v7 = vcombine.low %v4512_v38, %v4512_v38  ;;  %v5644_v46 = vcombine.high %v4512_v38, %v4512_v38  ;;  %v4567_v63 = vsel %vm7405_vm7, %v5649_v36, %v4566_v30  ;;  %4798 = vmatmul.mubr.bf16.vlgmr.msra.gmra.mrb[48].mxu1 %v5691_v9 }
 0x16b   : > { %v5654_v40 = vrot.slane %v5645_v22, 10  ;;  %v4586_v11 = vrot.slane %v5646_v14, 6  ;;  %v5690_v41 = vcombine.high %v4567_v63, %v4571_v35  ;;  %v5689_v53 = vcombine.low %v4567_v63, %v4571_v35 }
 0x16c   : > { %v5653_v47 = vrot.slane %v5643_v7, 10  ;;  %v4582_v29 = vrot.slane %v5644_v46, 6 }
 0x16d   : > { %v4587_v5 = vsel %vm7405_vm7, %v5654_v40, %v4586_v11  ;;  %4789 = vmatprep.mubr.bf16.mxu0 %v5690_v41 }
 0x16e   : > { %v4583_v45 = vsel %vm7405_vm7, %v5653_v47, %v4582_v29  ;;  %4790 = vmatmul.mubr.bf16.gmra.mrb[52].mxu0 %v5689_v53 }
 0x16f   : > { %v5694_v27 = vcombine.high %v4583_v45, %v4587_v5  ;;  %v5693_v56 = vcombine.low %v4583_v45, %v4587_v5 }
 0x171   : > { %4805 = vmatprep.mubr.bf16.mxu1 %v5694_v27 }
 0x172   : > { %4806 = vmatmul.mubr.bf16.gmra.mrb[52].mxu1 %v5693_v56 }
 0x175   : > { %v5740_v37 = vpop.f32.mrb[0].mxu0 }
 0x176   : > { %v5741_v32 = vpop.f32.mrb[1].mxu0 }
 0x177   : > { %v5742_v4 = vadd.f32 %v5741_v32, %v5740_v37  ;;  %v5743_v12 = vpop.f32.mrb[2].mxu0 }
 0x178   : > { %v5744_v15 = vpop.f32.mrb[3].mxu0 }
 0x179   : > { %851 = vst.msk [vmem:[#allocation3] sm:$0xff] %vm433_vm4, %v5742_v4  ;;  %v5745_v31 = vadd.f32 %v5744_v15, %v5743_v12 }
 0x17b   : > { %852 = vst.msk [vmem:[#allocation3 + $0x8] sm:$0xff] %vm433_vm4, %v5745_v31 }
 0x180   : > { %v1529_v8 = vld [vmem:[#allocation3] sm:$0xff] }
 0x182   : > { %v1530_v52 = vld [vmem:[#allocation3 + $0x8] sm:$0xff] }
 0x18e   : > { %v5746_v60 = vpop.f32.mrb[4].mxu0 }
 0x18f   : > { %v5780_v6 = vpop.f32.mrb[0].mxu1  ;;  %v5747_v17 = vpop.f32.mrb[5].mxu0 }
 0x190   : > { %v5781_v23 = vpop.f32.mrb[1].mxu1  ;;  %v5748_v3 = vadd.f32 %v5747_v17, %v5746_v60  ;;  %v5749_v19 = vpop.f32.mrb[6].mxu0 }
 0x191   : > { %v5782_v10 = vadd.f32 %v5781_v23, %v5780_v6  ;;  %v5783_v20 = vpop.f32.mrb[2].mxu1  ;;  %v5750_v61 = vpop.f32.mrb[7].mxu0 }
 0x192   : > { %v5784_v44 = vpop.f32.mrb[3].mxu1  ;;  %853 = vst.msk [vmem:[#allocation3 + $0x10] sm:$0xff] %vm433_vm4, %v5748_v3  ;;  %v5751_v2 = vadd.f32 %v5750_v61, %v5749_v19 }
 0x193   : > { %v1537_v24 = vadd.f32 %v5782_v10, %v1529_v8  ;;  %v5785_v57 = vadd.f32 %v5784_v44, %v5783_v20 }
 0x194   : > { %854 = vst.msk [vmem:[#allocation3 + $0x18] sm:$0xff] %vm433_vm4, %v5751_v2 }
 0x195   : > { %1545 = vst.msk [vmem:[#allocation3] sm:$0xff] %vm433_vm4, %v1537_v24  ;;  %v1538_v33 = vadd.f32 %v5785_v57, %v1530_v52 }
 0x197   : > { %1546 = vst.msk [vmem:[#allocation3 + $0x8] sm:$0xff] %vm433_vm4, %v1538_v33  ;;  %v5786_v55 = vpop.f32.mrb[4].mxu1 }
 0x198   : > { %v5787_v59 = vpop.f32.mrb[5].mxu1 }
 0x199   : > { %v5788_v18 = vadd.f32 %v5787_v59, %v5786_v55  ;;  %v5789_v16 = vpop.f32.mrb[6].mxu1  ;;  %v1531_v0 = vld [vmem:[#allocation3 + $0x10] sm:$0xff] }
 0x19a   : > { %v5790_v43 = vpop.f32.mrb[7].mxu1 }
 0x19b   : > { %v1539_v42 = vadd.f32 %v5788_v18, %v1531_v0  ;;  %v5791_v51 = vadd.f32 %v5790_v43, %v5789_v16  ;;  %v1532_v1 = vld [vmem:[#allocation3 + $0x18] sm:$0xff] }
 0x19c   : > { %v2374_v32 = vld [vmem:[#allocation3] sm:$0xff] }
 0x19d   : > { %1547 = vst.msk [vmem:[#allocation3 + $0x10] sm:$0xff] %vm433_vm4, %v1539_v42  ;;  %v1540_v49 = vadd.f32 %v5791_v51, %v1532_v1 }
 0x19e   : > { %v2375_v60 = vld [vmem:[#allocation3 + $0x8] sm:$0xff] }
 0x19f   : > { %1548 = vst.msk [vmem:[#allocation3 + $0x18] sm:$0xff] %vm433_vm4, %v1540_v49 }
 0x1a3   : > { %v5792_v34 = vpop.f32.mrb[8].mxu1 }
 0x1a4   : > { %v5793_v50 = vpop.f32.mrb[9].mxu1  ;;  %v5752_v54 = vpop.f32.mrb[8].mxu0  ;;  %v2376_v8 = vld [vmem:[#allocation3 + $0x10] sm:$0xff] }
 0x1a5   : > { %v5794_v13 = vadd.f32 %v5793_v50, %v5792_v34  ;;  %v5795_v21 = vpop.f32.mrb[10].mxu1  ;;  %v5753_v28 = vpop.f32.mrb[9].mxu0 }
 0x1a6   : > { %v5754_v25 = vadd.f32 %v5753_v28, %v5752_v54  ;;  %v5796_v48 = vpop.f32.mrb[11].mxu1  ;;  %v5755_v62 = vpop.f32.mrb[10].mxu0  ;;  %v2377_v57 = vld [vmem:[#allocation3 + $0x18] sm:$0xff] }
 0x1a7   : > { %v5797_v36 = vadd.f32 %v5796_v48, %v5795_v21  ;;  %v5756_v30 = vpop.f32.mrb[11].mxu0 }
 0x1a8   : > { %855 = vst.msk [vmem:[#allocation3 + $0x20] sm:$0xff] %vm433_vm4, %v5754_v25  ;;  %v5757_v22 = vadd.f32 %v5756_v30, %v5755_v62 }
 0x1aa   : > { %856 = vst.msk [vmem:[#allocation3 + $0x28] sm:$0xff] %vm433_vm4, %v5757_v22 }
 0x1af   : > { %v1533_v14 = vld [vmem:[#allocation3 + $0x20] sm:$0xff] }
 0x1b0   : > { %v1541_v58 = vadd.f32 %v5794_v13, %v1533_v14 }
 0x1b1   : > { %v1534_v26 = vld [vmem:[#allocation3 + $0x28] sm:$0xff] }
 0x1b2   : > { %1549 = vst.msk [vmem:[#allocation3 + $0x20] sm:$0xff] %vm433_vm4, %v1541_v58  ;;  %v1542_v38 = vadd.f32 %v5797_v36, %v1534_v26 }
 0x1b4   : > { %1550 = vst.msk [vmem:[#allocation3 + $0x28] sm:$0xff] %vm433_vm4, %v1542_v38 }
 0x1b9   : > { %v2378_v54 = vld [vmem:[#allocation3 + $0x20] sm:$0xff] }
 0x1bb   : > { %v5798_v9 = vpop.f32.mrb[12].mxu1  ;;  %v5758_v35 = vpop.f32.mrb[12].mxu0  ;;  %v2379_v25 = vld [vmem:[#allocation3 + $0x28] sm:$0xff] }
 0x1bc   : > { %v5799_v39 = vpop.f32.mrb[13].mxu1  ;;  %v5759_v7 = vpop.f32.mrb[13].mxu0 }
 0x1bd   : > { %v5800_v40 = vadd.f32 %v5799_v39, %v5798_v9  ;;  %v5801_v11 = vpop.f32.mrb[14].mxu1  ;;  %v5760_v46 = vadd.f32 %v5759_v7, %v5758_v35  ;;  %v5761_v47 = vpop.f32.mrb[14].mxu0 }
 0x1be   : > { %v5802_v63 = vpop.f32.mrb[15].mxu1  ;;  %v5762_v41 = vpop.f32.mrb[15].mxu0 }
 0x1bf   : > { %v5803_v29 = vadd.f32 %v5802_v63, %v5801_v11  ;;  %857 = vst.msk [vmem:[#allocation3 + $0x30] sm:$0xff] %vm433_vm4, %v5760_v46  ;;  %v5763_v53 = vadd.f32 %v5762_v41, %v5761_v47 }
 0x1c1   : > { %858 = vst.msk [vmem:[#allocation3 + $0x38] sm:$0xff] %vm433_vm4, %v5763_v53 }
 0x1c3   : > { %v5820_v5 = vpop.f32.mrb[16].mxu0 }
 0x1c4   : > { %v5821_v45 = vpop.f32.mrb[17].mxu0 }
 0x1c5   : > { %v5822_v27 = vadd.f32 %v5821_v45, %v5820_v5  ;;  %v5823_v56 = vpop.f32.mrb[18].mxu0 }
 0x1c6   : > { %v1535_v37 = vld [vmem:[#allocation3 + $0x30] sm:$0xff]  ;;  %v5824_v4 = vpop.f32.mrb[19].mxu0 }
 0x1c7   : > { %v1543_v12 = vadd.f32 %v5800_v40, %v1535_v37  ;;  %v2382_v15 = vadd.f32 %v5822_v27, %v2374_v32  ;;  %v5825_v31 = vadd.f32 %v5824_v4, %v5823_v56 }
 0x1c8   : > { %v1536_v6 = vld [vmem:[#allocation3 + $0x38] sm:$0xff] }
 0x1c9   : > { %1551 = vst.msk [vmem:[#allocation3 + $0x30] sm:$0xff] %vm433_vm4, %v1543_v12  ;;  %v1544_v23 = vadd.f32 %v5803_v29, %v1536_v6  ;;  %2390 = vst.msk [vmem:[#allocation3] sm:$0xff] %vm433_vm4, %v2382_v15  ;;  %v2383_v17 = vadd.f32 %v5825_v31, %v2375_v60 }
 0x1cb   : > { %1552 = vst.msk [vmem:[#allocation3 + $0x38] sm:$0xff] %vm433_vm4, %v1544_v23  ;;  %2391 = vst.msk [vmem:[#allocation3 + $0x8] sm:$0xff] %vm433_vm4, %v2383_v17 }
 0x1cd   : > { %v5826_v10 = vpop.f32.mrb[20].mxu0 }
 0x1ce   : > { %v5827_v20 = vpop.f32.mrb[21].mxu0 }
 0x1cf   : > { %v5828_v3 = vadd.f32 %v5827_v20, %v5826_v10  ;;  %v5829_v19 = vpop.f32.mrb[22].mxu0 }
 0x1d0   : > { %v5830_v44 = vpop.f32.mrb[23].mxu0  ;;  %v3028_v18 = vld [vmem:[#allocation3] sm:$0xff]  ;;  %v2380_v46 = vld [vmem:[#allocation3 + $0x30] sm:$0xff] }
 0x1d1   : > { %v2384_v61 = vadd.f32 %v5828_v3, %v2376_v8  ;;  %v5831_v24 = vadd.f32 %v5830_v44, %v5829_v19 }
 0x1d2   : > { %v3029_v42 = vld [vmem:[#allocation3 + $0x8] sm:$0xff]  ;;  %v2381_v53 = vld [vmem:[#allocation3 + $0x38] sm:$0xff] }
 0x1d3   : > { %2392 = vst.msk [vmem:[#allocation3 + $0x10] sm:$0xff] %vm433_vm4, %v2384_v61  ;;  %v2385_v2 = vadd.f32 %v5831_v24, %v2377_v57 }
 0x1d5   : > { %2393 = vst.msk [vmem:[#allocation3 + $0x18] sm:$0xff] %vm433_vm4, %v2385_v2 }
 0x1d9   : > { %v5860_v52 = vpop.f32.mrb[16].mxu1 }
 0x1da   : > { %v5861_v33 = vpop.f32.mrb[17].mxu1  ;;  %v3030_v14 = vld [vmem:[#allocation3 + $0x10] sm:$0xff] }
 0x1db   : > { %v5862_v55 = vadd.f32 %v5861_v33, %v5860_v52  ;;  %v5863_v59 = vpop.f32.mrb[18].mxu1 }
 0x1dc   : > { %v5864_v16 = vpop.f32.mrb[19].mxu1  ;;  %v3031_v39 = vld [vmem:[#allocation3 + $0x18] sm:$0xff] }
 0x1dd   : > { %v3036_v0 = vadd.f32 %v5862_v55, %v3028_v18  ;;  %v5865_v43 = vadd.f32 %v5864_v16, %v5863_v59 }
 0x1df   : > { %3044 = vst.msk [vmem:[#allocation3] sm:$0xff] %vm433_vm4, %v3036_v0  ;;  %v3037_v51 = vadd.f32 %v5865_v43, %v3029_v42  ;;  %v5832_v1 = vpop.f32.mrb[24].mxu0 }
 0x1e0   : > { %v5833_v49 = vpop.f32.mrb[25].mxu0 }
 0x1e1   : > { %3045 = vst.msk [vmem:[#allocation3 + $0x8] sm:$0xff] %vm433_vm4, %v3037_v51  ;;  %v5834_v34 = vadd.f32 %v5833_v49, %v5832_v1  ;;  %v5835_v50 = vpop.f32.mrb[26].mxu0 }
 0x1e2   : > { %v5836_v13 = vpop.f32.mrb[27].mxu0 }
 0x1e3   : > { %v2386_v21 = vadd.f32 %v5834_v34, %v2378_v54  ;;  %v5837_v28 = vadd.f32 %v5836_v13, %v5835_v50 }
 0x1e5   : > { %2394 = vst.msk [vmem:[#allocation3 + $0x20] sm:$0xff] %vm433_vm4, %v2386_v21  ;;  %v2387_v48 = vadd.f32 %v5837_v28, %v2379_v25 }
 0x1e6   : > { %v3809_v52 = vld [vmem:[#allocation3] sm:$0xff] }
 0x1e7   : > { %2395 = vst.msk [vmem:[#allocation3 + $0x28] sm:$0xff] %vm433_vm4, %v2387_v48 }
 0x1e8   : > { %v3810_v18 = vld [vmem:[#allocation3 + $0x8] sm:$0xff] }
 0x1e9   : > { %v5866_v62 = vpop.f32.mrb[20].mxu1 }
 0x1ea   : > { %v5867_v36 = vpop.f32.mrb[21].mxu1 }
 0x1eb   : > { %v5868_v30 = vadd.f32 %v5867_v36, %v5866_v62  ;;  %v5869_v22 = vpop.f32.mrb[22].mxu1 }
 0x1ec   : > { %v5870_v58 = vpop.f32.mrb[23].mxu1  ;;  %v3032_v37 = vld [vmem:[#allocation3 + $0x20] sm:$0xff] }
 0x1ed   : > { %v3038_v26 = vadd.f32 %v5868_v30, %v3030_v14  ;;  %v5871_v38 = vadd.f32 %v5870_v58, %v5869_v22  ;;  %v5838_v9 = vpop.f32.mrb[28].mxu0 }
 0x1ee   : > { %v5839_v35 = vpop.f32.mrb[29].mxu0  ;;  %v3033_v15 = vld [vmem:[#allocation3 + $0x28] sm:$0xff] }
 0x1ef   : > { %3046 = vst.msk [vmem:[#allocation3 + $0x10] sm:$0xff] %vm433_vm4, %v3038_v26  ;;  %v3039_v40 = vadd.f32 %v5871_v38, %v3031_v39  ;;  %v5840_v11 = vadd.f32 %v5839_v35, %v5838_v9  ;;  %v5841_v7 = vpop.f32.mrb[30].mxu0 }
 0x1f0   : > { %v5842_v63 = vpop.f32.mrb[31].mxu0 }
 0x1f1   : > { %3047 = vst.msk [vmem:[#allocation3 + $0x18] sm:$0xff] %vm433_vm4, %v3039_v40  ;;  %v2388_v47 = vadd.f32 %v5840_v11, %v2380_v46  ;;  %v5843_v41 = vadd.f32 %v5842_v63, %v5841_v7 }
 0x1f2   : > { %v5872_v29 = vpop.f32.mrb[24].mxu1 }
 0x1f3   : > { %v5873_v5 = vpop.f32.mrb[25].mxu1  ;;  %2396 = vst.msk [vmem:[#allocation3 + $0x30] sm:$0xff] %vm433_vm4, %v2388_v47  ;;  %v2389_v45 = vadd.f32 %v5843_v41, %v2381_v53 }
 0x1f4   : > { %v5874_v27 = vadd.f32 %v5873_v5, %v5872_v29  ;;  %v5875_v56 = vpop.f32.mrb[26].mxu1 }
 0x1f5   : > { %v5876_v32 = vpop.f32.mrb[27].mxu1  ;;  %2397 = vst.msk [vmem:[#allocation3 + $0x38] sm:$0xff] %vm433_vm4, %v2389_v45 }
 0x1f6   : > { %v3040_v4 = vadd.f32 %v5874_v27, %v3032_v37  ;;  %v5877_v12 = vadd.f32 %v5876_v32, %v5875_v56  ;;  %v3811_v1 = vld [vmem:[#allocation3 + $0x10] sm:$0xff] }
 0x1f8   : > { %3048 = vst.msk [vmem:[#allocation3 + $0x20] sm:$0xff] %vm433_vm4, %v3040_v4  ;;  %v3041_v31 = vadd.f32 %v5877_v12, %v3033_v15  ;;  %v3812_v13 = vld [vmem:[#allocation3 + $0x18] sm:$0xff] }
 0x1fa   : > { %3049 = vst.msk [vmem:[#allocation3 + $0x28] sm:$0xff] %vm433_vm4, %v3041_v31  ;;  %v3034_v10 = vld [vmem:[#allocation3 + $0x30] sm:$0xff] }
 0x1fc   : > { %v3035_v61 = vld [vmem:[#allocation3 + $0x38] sm:$0xff] }
 0x1fe   : > { %v5878_v6 = vpop.f32.mrb[28].mxu1 }
 0x1ff   : > { %v5879_v60 = vpop.f32.mrb[29].mxu1  ;;  %v3813_v35 = vld [vmem:[#allocation3 + $0x20] sm:$0xff] }
 0x200   : > { %v5880_v23 = vadd.f32 %v5879_v60, %v5878_v6  ;;  %v5881_v17 = vpop.f32.mrb[30].mxu1 }
 0x201   : > { %v5900_v20 = vpop.f32.mrb[32].mxu0  ;;  %v5882_v3 = vpop.f32.mrb[31].mxu1  ;;  %v3814_v46 = vld [vmem:[#allocation3 + $0x28] sm:$0xff] }
 0x202   : > { %v3042_v19 = vadd.f32 %v5880_v23, %v3034_v10  ;;  %v5883_v8 = vadd.f32 %v5882_v3, %v5881_v17  ;;  %v5901_v44 = vpop.f32.mrb[33].mxu0 }
 0x203   : > { %v5902_v24 = vadd.f32 %v5901_v44, %v5900_v20  ;;  %v5903_v57 = vpop.f32.mrb[34].mxu0 }
 0x204   : > { %3050 = vst.msk [vmem:[#allocation3 + $0x30] sm:$0xff] %vm433_vm4, %v3042_v19  ;;  %v3043_v2 = vadd.f32 %v5883_v8, %v3035_v61  ;;  %v5904_v33 = vpop.f32.mrb[35].mxu0 }
 0x205   : > { %v3817_v55 = vadd.f32 %v5902_v24, %v3809_v52  ;;  %v5905_v59 = vadd.f32 %v5904_v33, %v5903_v57 }
 0x206   : > { %3051 = vst.msk [vmem:[#allocation3 + $0x38] sm:$0xff] %vm433_vm4, %v3043_v2 }
 0x207   : > { %3825 = vst.msk [vmem:[#allocation3] sm:$0xff] %vm433_vm4, %v3817_v55  ;;  %v3818_v16 = vadd.f32 %v5905_v59, %v3810_v18 }
 0x209   : > { %3826 = vst.msk [vmem:[#allocation3 + $0x8] sm:$0xff] %vm433_vm4, %v3818_v16 }
 0x20b   : > { %v5906_v0 = vpop.f32.mrb[36].mxu0  ;;  %v3815_v10 = vld [vmem:[#allocation3 + $0x30] sm:$0xff] }
 0x20c   : > { %v5907_v43 = vpop.f32.mrb[37].mxu0 }
 0x20d   : > { %v5908_v42 = vadd.f32 %v5907_v43, %v5906_v0  ;;  %v5909_v51 = vpop.f32.mrb[38].mxu0  ;;  %v3816_v57 = vld [vmem:[#allocation3 + $0x38] sm:$0xff] }
 0x20e   : > { %v5910_v49 = vpop.f32.mrb[39].mxu0  ;;  %v4396_v62 = vld [vmem:[#allocation3] sm:$0xff] }
 0x20f   : > { %v3819_v34 = vadd.f32 %v5908_v42, %v3811_v1  ;;  %v5911_v50 = vadd.f32 %v5910_v49, %v5909_v51  ;;  %v5940_v54 = vpop.f32.mrb[32].mxu1 }
 0x210   : > { %v5941_v21 = vpop.f32.mrb[33].mxu1  ;;  %v4397_v14 = vld [vmem:[#allocation3 + $0x8] sm:$0xff] }
 0x211   : > { %3827 = vst.msk [vmem:[#allocation3 + $0x10] sm:$0xff] %vm433_vm4, %v3819_v34  ;;  %v3820_v28 = vadd.f32 %v5911_v50, %v3812_v13  ;;  %v5942_v25 = vadd.f32 %v5941_v21, %v5940_v54  ;;  %v5943_v48 = vpop.f32.mrb[34].mxu1 }
 0x212   : > { %v5944_v36 = vpop.f32.mrb[35].mxu1 }
 0x213   : > { %3828 = vst.msk [vmem:[#allocation3 + $0x18] sm:$0xff] %vm433_vm4, %v3820_v28  ;;  %v4404_v30 = vadd.f32 %v5942_v25, %v4396_v62  ;;  %v5945_v22 = vadd.f32 %v5944_v36, %v5943_v48 }
 0x215   : > { %4412 = vst.msk [vmem:[#allocation3] sm:$0xff] %vm433_vm4, %v4404_v30  ;;  %v4405_v58 = vadd.f32 %v5945_v22, %v4397_v14 }
 0x217   : > { %4413 = vst.msk [vmem:[#allocation3 + $0x8] sm:$0xff] %vm433_vm4, %v4405_v58  ;;  %v5912_v26 = vpop.f32.mrb[40].mxu0 }
 0x218   : > { %v5913_v38 = vpop.f32.mrb[41].mxu0  ;;  %v4398_v5 = vld [vmem:[#allocation3 + $0x10] sm:$0xff] }
 0x219   : > { %v5914_v9 = vadd.f32 %v5913_v38, %v5912_v26  ;;  %v5915_v39 = vpop.f32.mrb[42].mxu0 }
 0x21a   : > { %v5916_v40 = vpop.f32.mrb[43].mxu0  ;;  %v4399_v37 = vld [vmem:[#allocation3 + $0x18] sm:$0xff] }
 0x21b   : > { %v3821_v11 = vadd.f32 %v5914_v9, %v3813_v35  ;;  %v5917_v7 = vadd.f32 %v5916_v40, %v5915_v39 }
 0x21c   : > { %v4814_v21 = vld [vmem:[#allocation3] sm:$0xff] }
 0x21d   : > { %3829 = vst.msk [vmem:[#allocation3 + $0x20] sm:$0xff] %vm433_vm4, %v3821_v11  ;;  %v3822_v63 = vadd.f32 %v5917_v7, %v3814_v46 }
 0x21e   : > { %v4815_v36 = vld [vmem:[#allocation3 + $0x8] sm:$0xff] }
 0x21f   : > { %3830 = vst.msk [vmem:[#allocation3 + $0x28] sm:$0xff] %vm433_vm4, %v3822_v63  ;;  %v5946_v47 = vpop.f32.mrb[36].mxu1 }
 0x220   : > { %v5947_v29 = vpop.f32.mrb[37].mxu1 }
 0x221   : > { %v5948_v41 = vadd.f32 %v5947_v29, %v5946_v47  ;;  %v5949_v53 = vpop.f32.mrb[38].mxu1  ;;  %v5711_v47 = vld [vmem:[%s8473_s2] ss:$0 sm:$0xff] }
 0x222   : > { %v5950_v45 = vpop.f32.mrb[39].mxu1 }
 0x223   : > { %v4406_v27 = vadd.f32 %v5948_v41, %v4398_v5  ;;  %v5951_v56 = vadd.f32 %v5950_v45, %v5949_v53 }
 0x224   : > { %v4400_v20 = vld [vmem:[#allocation3 + $0x20] sm:$0xff] }
 0x225   : > { %4414 = vst.msk [vmem:[#allocation3 + $0x10] sm:$0xff] %vm433_vm4, %v4406_v27  ;;  %v4407_v32 = vadd.f32 %v5951_v56, %v4399_v37 }
 0x226   : > { %v4401_v2 = vld [vmem:[#allocation3 + $0x28] sm:$0xff] }
 0x227   : > { %4415 = vst.msk [vmem:[#allocation3 + $0x18] sm:$0xff] %vm433_vm4, %v4407_v32  ;;  %v5918_v4 = vpop.f32.mrb[44].mxu0  ;;  %v5952_v12 = vpop.f32.mrb[40].mxu1 }
 0x228   : > { %v5919_v15 = vpop.f32.mrb[45].mxu0  ;;  %v5953_v31 = vpop.f32.mrb[41].mxu1 }
 0x229   : > { %v5920_v6 = vadd.f32 %v5919_v15, %v5918_v4  ;;  %v5954_v60 = vadd.f32 %v5953_v31, %v5952_v12  ;;  %v5921_v23 = vpop.f32.mrb[46].mxu0  ;;  %v5955_v17 = vpop.f32.mrb[42].mxu1 }
 0x22a   : > { %v5922_v3 = vpop.f32.mrb[47].mxu0  ;;  %v5956_v19 = vpop.f32.mrb[43].mxu1 }
 0x22b   : > { %v3823_v8 = vadd.f32 %v5920_v6, %v3815_v10  ;;  %v4408_v44 = vadd.f32 %v5954_v60, %v4400_v20  ;;  %v5923_v61 = vadd.f32 %v5922_v3, %v5921_v23  ;;  %v5957_v24 = vadd.f32 %v5956_v19, %v5955_v17  ;;  %v4869_v17 = vld [vmem:[%s6459_s26] sm:$0xff]  ;;  %v4870_v19 = vld [vmem:[%s6459_s26 + $0x8] sm:$0xff] }
 0x22c   : > { %v4816_v29 = vld [vmem:[#allocation3 + $0x10] sm:$0xff] }
 0x22d   : > { %3831 = vst.msk [vmem:[#allocation3 + $0x30] sm:$0xff] %vm433_vm4, %v3823_v8  ;;  %4416 = vst.msk [vmem:[#allocation3 + $0x20] sm:$0xff] %vm433_vm4, %v4408_v44  ;;  %v3824_v52 = vadd.f32 %v5923_v61, %v3816_v57  ;;  %v4409_v33 = vadd.f32 %v5957_v24, %v4401_v2 }
 0x22e   : > { %v4817_v56 = vld [vmem:[#allocation3 + $0x18] sm:$0xff] }
 0x22f   : > { %3832 = vst.msk [vmem:[#allocation3 + $0x38] sm:$0xff] %vm433_vm4, %v3824_v52  ;;  %4417 = vst.msk [vmem:[#allocation3 + $0x28] sm:$0xff] %vm433_vm4, %v4409_v33  ;;  %v5958_v55 = vpop.f32.mrb[44].mxu1 }
 0x230   : > { %v5959_v59 = vpop.f32.mrb[45].mxu1 }
 0x231   : > { %v5960_v18 = vadd.f32 %v5959_v59, %v5958_v55  ;;  %v5961_v16 = vpop.f32.mrb[46].mxu1 }
 0x232   : > { %v5962_v0 = vpop.f32.mrb[47].mxu1 }
 0x233   : > { %v5963_v43 = vadd.f32 %v5962_v0, %v5961_v16  ;;  %v4874_v16 = vld [vmem:[%s6459_s26 + $0x28] sm:$0xff] }
 0x234   : > { %v4402_v42 = vld [vmem:[#allocation3 + $0x30] sm:$0xff]  ;;  %v4818_v26 = vld [vmem:[#allocation3 + $0x20] sm:$0xff] }
 0x235   : > { %v4410_v51 = vadd.f32 %v5960_v18, %v4402_v42  ;;  %v4873_v18 = vld [vmem:[%s6459_s26 + $0x20] sm:$0xff] }
 0x236   : > { %v4403_v1 = vld [vmem:[#allocation3 + $0x38] sm:$0xff]  ;;  %v4819_v40 = vld [vmem:[#allocation3 + $0x28] sm:$0xff] }
 0x237   : > { %4418 = vst.msk [vmem:[#allocation3 + $0x30] sm:$0xff] %vm433_vm4, %v4410_v51  ;;  %v4411_v49 = vadd.f32 %v5963_v43, %v4403_v1 }
 0x239   : > { %4419 = vst.msk [vmem:[#allocation3 + $0x38] sm:$0xff] %vm433_vm4, %v4411_v49  ;;  %v5980_v34 = vpop.f32.mrb[48].mxu0 }
 0x23a   : > { %v5981_v50 = vpop.f32.mrb[49].mxu0 }
 0x23b   : > { %v5982_v54 = vadd.f32 %v5981_v50, %v5980_v34  ;;  %v5983_v13 = vpop.f32.mrb[50].mxu0 }
 0x23c   : > { %v5984_v28 = vpop.f32.mrb[51].mxu0 }
 0x23d   : > { %v4822_v25 = vadd.f32 %v5982_v54, %v4814_v21  ;;  %v5985_v48 = vadd.f32 %v5984_v28, %v5983_v13  ;;  %v5992_v62 = vpop.f32.mrb[48].mxu1  ;;  %v4871_v13 = vld [vmem:[%s6459_s26 + $0x10] sm:$0xff]  ;;  %v4872_v21 = vld [vmem:[%s6459_s26 + $0x18] sm:$0xff] }
 0x23e   : > { %v5993_v30 = vpop.f32.mrb[49].mxu1  ;;  %v4820_v6 = vld [vmem:[#allocation3 + $0x30] sm:$0xff] }
 0x23f   : > { %4830 = vst.msk [vmem:[#allocation3] sm:$0xff] %vm433_vm4, %v4822_v25  ;;  %v4823_v22 = vadd.f32 %v5985_v48, %v4815_v36  ;;  %v5994_v14 = vadd.f32 %v5993_v30, %v5992_v62  ;;  %v5995_v58 = vpop.f32.mrb[50].mxu1 }
 0x240   : > { %v5996_v38 = vpop.f32.mrb[51].mxu1  ;;  %v4821_v44 = vld [vmem:[#allocation3 + $0x38] sm:$0xff] }
 0x241   : > { %4831 = vst.msk [vmem:[#allocation3 + $0x8] sm:$0xff] %vm433_vm4, %v4823_v22  ;;  %v4826_v9 = vadd.f32 %v5994_v14, %v4818_v26  ;;  %v5997_v39 = vadd.f32 %v5996_v38, %v5995_v58  ;;  %v5986_v35 = vpop.f32.mrb[52].mxu0  ;;  %v4875_v26 = vld [vmem:[%s6459_s26 + $0x30] sm:$0xff]  ;;  %v4876_v38 = vld [vmem:[%s6459_s26 + $0x38] sm:$0xff]  ;;  %s5715_s26 = sshll.u32 %s8713_s13, 3 }
 0x242   : > { %v5987_v11 = vpop.f32.mrb[53].mxu0  ;;  %s170_s16 = scalar_lea.vmem %s8474_s3, %s5715_s26 }
 0x243   : > { %4834 = vst.msk [vmem:[#allocation3 + $0x20] sm:$0xff] %vm433_vm4, %v4826_v9  ;;  %v4827_v7 = vadd.f32 %v5997_v39, %v4819_v40  ;;  %v5988_v46 = vadd.f32 %v5987_v11, %v5986_v35  ;;  %v5989_v63 = vpop.f32.mrb[54].mxu0 }
 0x244   : > { %v5990_v41 = vpop.f32.mrb[55].mxu0 }
 0x245   : > { %4835 = vst.msk [vmem:[#allocation3 + $0x28] sm:$0xff] %vm433_vm4, %v4827_v7  ;;  %v4824_v53 = vadd.f32 %v5988_v46, %v4816_v29  ;;  %v5991_v5 = vadd.f32 %v5990_v41, %v5989_v63  ;;  %v5998_v45 = vpop.f32.mrb[52].mxu1 }
 0x246   : > { %v4838_v27 = vld [vmem:[#allocation3] sm:$0xff]  ;;  %v5999_v37 = vpop.f32.mrb[53].mxu1 }
 0x247   : > { %v4853_v32 = vadd.f32 %v5711_v47, %v4838_v27  ;;  %4832 = vst.msk [vmem:[#allocation3 + $0x10] sm:$0xff] %vm433_vm4, %v4824_v53  ;;  %v4825_v4 = vadd.f32 %v5991_v5, %v4817_v56  ;;  %v6000_v12 = vadd.f32 %v5999_v37, %v5998_v45  ;;  %v6001_v15 = vpop.f32.mrb[54].mxu1 }
 0x248   : > { %v4839_v31 = vld [vmem:[#allocation3 + $0x8] sm:$0xff]  ;;  %v6002_v60 = vpop.f32.mrb[55].mxu1 }
 0x249   : > { %v4861_v23 = vmax.f32 %v4853_v32, 0.0  ;;  %v4854_v10 = vadd.f32 %v5711_v47, %v4839_v31  ;;  %4833 = vst.msk [vmem:[#allocation3 + $0x18] sm:$0xff] %vm433_vm4, %v4825_v4  ;;  %v4828_v20 = vadd.f32 %v6000_v12, %v4820_v6  ;;  %v6003_v3 = vadd.f32 %v6002_v60, %v6001_v15 }
 0x24a   : > { %v4842_v8 = vld [vmem:[#allocation3 + $0x20] sm:$0xff] }
 0x24b   : > { %v4862_v61 = vmax.f32 %v4854_v10, 0.0  ;;  %v4857_v24 = vadd.f32 %v5711_v47, %v4842_v8  ;;  %4836 = vst.msk [vmem:[#allocation3 + $0x30] sm:$0xff] %vm433_vm4, %v4828_v20  ;;  %v4829_v57 = vadd.f32 %v6003_v3, %v4821_v44  ;;  %v4877_v52 = vadd.f32 %v4869_v17, %v4861_v23 }
 0x24c   : > { %v4843_v2 = vld [vmem:[#allocation3 + $0x28] sm:$0xff] }
 0x24d   : > { %v4878_v33 = vadd.f32 %v4870_v19, %v4862_v61  ;;  %v4865_v55 = vmax.f32 %v4857_v24, 0.0  ;;  %v4858_v59 = vadd.f32 %v5711_v47, %v4843_v2  ;;  %4837 = vst.msk [vmem:[#allocation3 + $0x38] sm:$0xff] %vm433_vm4, %v4829_v57 }
 0x24e   : > { %v4840_v0 = vld [vmem:[#allocation3 + $0x10] sm:$0xff] }
 0x24f   : > { %v4885_v43 = vmax.f32 %v4877_v52, %v4878_v33  ;;  %v4866_v42 = vmax.f32 %v4858_v59, 0.0  ;;  %v4855_v51 = vadd.f32 %v5711_v47, %v4840_v0  ;;  %v4881_v49 = vadd.f32 %v4873_v18, %v4865_v55 }
 0x250   : > { %v4841_v1 = vld [vmem:[#allocation3 + $0x18] sm:$0xff] }
 0x251   : > { %4889 = vst.msk [vmem:[#allocation4] sm:$0xff] %vm433_vm4, %v4885_v43  ;;  %v4882_v34 = vadd.f32 %v4874_v16, %v4866_v42  ;;  %v4863_v50 = vmax.f32 %v4855_v51, 0.0  ;;  %v4856_v54 = vadd.f32 %v5711_v47, %v4841_v1 }
 0x252   : > { %v4844_v28 = vld [vmem:[#allocation3 + $0x30] sm:$0xff] }
 0x253   : > { %v4887_v25 = vmax.f32 %v4881_v49, %v4882_v34  ;;  %v4864_v48 = vmax.f32 %v4856_v54, 0.0  ;;  %v4859_v62 = vadd.f32 %v5711_v47, %v4844_v28  ;;  %v4879_v30 = vadd.f32 %v4871_v13, %v4863_v50 }
 0x254   : > { %v4845_v36 = vld [vmem:[#allocation3 + $0x38] sm:$0xff] }
 0x255   : > { %4891 = vst.msk [vmem:[#allocation4 + $0x10] sm:$0xff] %vm433_vm4, %v4887_v25  ;;  %v4880_v22 = vadd.f32 %v4872_v21, %v4864_v48  ;;  %v4867_v14 = vmax.f32 %v4859_v62, 0.0  ;;  %v4860_v58 = vadd.f32 %v5711_v47, %v4845_v36 }
 0x257   : > { %v4886_v9 = vmax.f32 %v4879_v30, %v4880_v22  ;;  %v4868_v39 = vmax.f32 %v4860_v58, 0.0  ;;  %v4883_v35 = vadd.f32 %v4875_v26, %v4867_v14 }
 0x258   : > { %v4929_v47 = vld [vmem:[#allocation4 + $0x6] sm:$0x1]  ;;  %v4933_v45 = vld [vmem:[#allocation4 + $0x7] sm:$0x1]  ;;  %v4905_v56 = vld [vmem:[#allocation4 + $0x2] sm:$0x1] }
 0x259   : > { %4890 = vst.msk [vmem:[#allocation4 + $0x8] sm:$0xff] %vm433_vm4, %v4886_v9  ;;  %v4884_v40 = vadd.f32 %v4876_v38, %v4868_v39  ;;  %v4909_v37 = vld [vmem:[#allocation4 + $0x3] sm:$0x1]  ;;  %v4917_v32 = vld [vmem:[#allocation4 + $0x4] sm:$0x1]  ;;  %v4937_v61 = vmax.f32 %v4929_v47, %v4933_v45 }
 0x25a   : > { %v4921_v4 = vld [vmem:[#allocation4 + $0x5] sm:$0x1]  ;;  %v4893_v15 = vld [vmem:[#allocation4] sm:$0x1]  ;;  %v4897_v6 = vld [vmem:[#allocation4 + $0x1] sm:$0x1]  ;;  %v4913_v51 = vmax.f32 %v4905_v56, %v4909_v37 }
 0x25b   : > { %v4888_v11 = vmax.f32 %v4883_v35, %v4884_v40  ;;  %v4925_v1 = vmax.f32 %v4917_v32, %v4921_v4  ;;  %v4901_v49 = vmax.f32 %v4893_v15, %v4897_v6 }
 0x25c   : > { %v4931_v7 = vld [vmem:[#allocation4 + $0x16] sm:$0x1]  ;;  %v4935_v46 = vld [vmem:[#allocation4 + $0x17] sm:$0x1]  ;;  %v4907_v63 = vld [vmem:[#allocation4 + $0x12] sm:$0x1] }
 0x25d   : > { %4892 = vst.msk [vmem:[#allocation4 + $0x18] sm:$0xff] %vm433_vm4, %v4888_v11  ;;  %v4939_v29 = vmax.f32 %v4931_v7, %v4935_v46  ;;  %v4911_v41 = vld [vmem:[#allocation4 + $0x13] sm:$0x1]  ;;  %v4919_v53 = vld [vmem:[#allocation4 + $0x14] sm:$0x1] }
 0x25e   : > { %v4923_v5 = vld [vmem:[#allocation4 + $0x15] sm:$0x1]  ;;  %v4915_v27 = vmax.f32 %v4907_v63, %v4911_v41  ;;  %v4895_v31 = vld [vmem:[#allocation4 + $0x10] sm:$0x1]  ;;  %v4899_v60 = vld [vmem:[#allocation4 + $0x11] sm:$0x1] }
 0x25f   : > { %v4927_v12 = vmax.f32 %v4919_v53, %v4923_v5  ;;  %v4986_v3 = vrot.slane %v4939_v29, 6  ;;  %v4903_v33 = vmax.f32 %v4895_v31, %v4899_v60 }
 0x260   : > { %v4930_v23 = vld [vmem:[#allocation4 + $0xe] sm:$0x1]  ;;  %v4934_v17 = vld [vmem:[#allocation4 + $0xf] sm:$0x1]  ;;  %v4906_v10 = vld [vmem:[#allocation4 + $0xa] sm:$0x1] }
 0x261   : > { %v4938_v20 = vmax.f32 %v4930_v23, %v4934_v17  ;;  %v4910_v19 = vld [vmem:[#allocation4 + $0xb] sm:$0x1]  ;;  %v4961_v8 = vrot.slane %v4915_v27, 6  ;;  %v4918_v44 = vld [vmem:[#allocation4 + $0xc] sm:$0x1]  ;;  %v4975_v18 = vrot.slane %v4927_v12, 6 }
 0x262   : > { %v4914_v24 = vmax.f32 %v4906_v10, %v4910_v19  ;;  %v4922_v57 = vld [vmem:[#allocation4 + $0xd] sm:$0x1]  ;;  %v4894_v2 = vld [vmem:[#allocation4 + $0x8] sm:$0x1]  ;;  %v4898_v52 = vld [vmem:[#allocation4 + $0x9] sm:$0x1] }
 0x263   : > { %v4984_v55 = vrot.slane %v4938_v20, 7  ;;  %v4926_v59 = vmax.f32 %v4918_v44, %v4922_v57  ;;  %v4902_v16 = vmax.f32 %v4894_v2, %v4898_v52  ;;  %v4948_v30 = vrot.slane %v4903_v33, 6 }
 0x264   : > { %v4932_v0 = vld [vmem:[#allocation4 + $0x1e] sm:$0x1]  ;;  %v4936_v43 = vld [vmem:[#allocation4 + $0x1f] sm:$0x1]  ;;  %v4908_v42 = vld [vmem:[#allocation4 + $0x1a] sm:$0x1] }
 0x265   : > { %v4940_v34 = vmax.f32 %v4932_v0, %v4936_v43  ;;  %v4985_v50 = vsel %vm4946_vm1, %v4984_v55, %v4937_v61  ;;  %v4912_v54 = vld [vmem:[#allocation4 + $0x1b] sm:$0x1]  ;;  %v4959_v13 = vrot.slane %v4914_v24, 7  ;;  %v4973_v21 = vrot.slane %v4926_v59, 7  ;;  %v4920_v28 = vld [vmem:[#allocation4 + $0x1c] sm:$0x1] }
 0x266   : > { %v4987_v25 = vsel %vm4949_vm2, %v4986_v3, %v4985_v50  ;;  %v4916_v48 = vmax.f32 %v4908_v42, %v4912_v54  ;;  %v4924_v62 = vld [vmem:[#allocation4 + $0x1d] sm:$0x1]  ;;  %v4945_v36 = vrot.slane %v4902_v16, 7  ;;  %v4896_v22 = vld [vmem:[#allocation4 + $0x18] sm:$0x1] }
 0x267   : > { %v4988_v14 = vrot.slane %v4940_v34, 5  ;;  %v4960_v58 = vsel %vm4946_vm1, %v4959_v13, %v4913_v51  ;;  %v4974_v26 = vsel %vm4946_vm1, %v4973_v21, %v4925_v1  ;;  %v4928_v38 = vmax.f32 %v4920_v28, %v4924_v62  ;;  %v4900_v9 = vld [vmem:[#allocation4 + $0x19] sm:$0x1] }
 0x268   : > { %v4962_v39 = vsel %vm4949_vm2, %v4961_v8, %v4960_v58  ;;  %v4963_v35 = vrot.slane %v4916_v48, 5  ;;  %v4976_v40 = vsel %vm4949_vm2, %v4975_v18, %v4974_v26  ;;  %v4947_v11 = vsel %vm4946_vm1, %v4945_v36, %v4901_v49 }
 0x269   : > { %v4989_v7 = vsel %vm4952_vm3, %v4988_v14, %v4987_v25  ;;  %v4977_v46 = vrot.slane %v4928_v38, 5  ;;  %v4950_v63 = vsel %vm4949_vm2, %v4948_v30, %v4947_v11  ;;  %v4904_v29 = vmax.f32 %v4896_v22, %v4900_v9 }
 0x26a   : > { %4990 = vrot.lane.b32.xlu1 %v4989_v7, %s6378_s29  ;;  %v4964_v41 = vsel %vm4952_vm3, %v4963_v35, %v4962_v39 }
 0x26b   : > { %4965 = vrot.lane.b32.xlu0 %v4964_v41, %s6378_s29  ;;  %v4978_v53 = vsel %vm4952_vm3, %v4977_v46, %v4976_v40  ;;  %v4951_v5 = vrot.slane %v4904_v29, 5 }
 0x26d   : > { %v4953_v47 = vsel %vm4952_vm3, %v4951_v5, %v4950_v63 }
 0x2dc   : > { %v4991_v45 = vpop.permute.xlu1 %4990 }
 0x2dd   : > { %v4993_v27 = vsel %vm433_vm4, %v4978_v53, %v4991_v45  ;;  %v4966_v56 = vpop.permute.xlu0 %4965 }
 0x2de   : > { %v4968_v37 = vsel %vm433_vm4, %v4953_v47, %v4966_v56 }
 0x2df   : > { %v4996_v32 = vcombine.low %v4968_v37, %v4993_v27 }
 0x2e1   : > { %4998 = vst [vmem:[%s170_s16] sm:$0xff] %v4996_v32 }
 0x2e2 PF: > { %s13_s12 = sadd.s32 1, %s6375_s12  }
 0x2e3   : > { %p10_p4 = scmp.ge.s32.totalorder %s13_s12, 4  }
 0x2e5   :  { %12 = sbr.rel (!%p10_p4) target bundleno = 1 (0x1), region = 72 }

</bundles_post_ra>
